<compile_context>
chip_gen: v7x
topology: tpu7x:2x2x1
jax: 0.10.0
libtpu: 0.0.40
codegen_flags: <defaults>
</compile_context>

<pallas_src>
import functools

import jax
import jax.numpy as jnp
from jax.experimental import pallas as pl
from jax.experimental.pallas import tpu as pltpu


# -------------------- kernel 1: conv1 + BN1 + ReLU (gridded) -----------------

def _stage1_kernel(p_ref, w_ref, gb_ref, o_ref, sum_ref, sq_ref, *, m_true, eps):
    """Grid = (pass, M tile).  Transposed layout: M = N*30*30 on the lane axis.

    pass 0: acc = W1(C,K) @ P(K,TM) on the MXU (bf16 in / f32 acc); accumulate
            per-channel sum / sumsq (training-mode BatchNorm stats) in scratch.
    pass 1: recompute acc for the tile (re-reading patches is as cheap as a
            raw-activation round trip and keeps this a single pallas_call),
            normalize with the completed batch stats, affine + ReLU, store bf16.
    Zero-padded M columns contribute nothing to the stats (conv bias dropped),
    and m_true is the un-padded element count, so the statistics are exact.
    """
    pas = pl.program_id(0)
    tile = pl.program_id(1)

    @pl.when(jnp.logical_and(pas == 0, tile == 0))
    def _init():
        sum_ref[...] = jnp.zeros_like(sum_ref)
        sq_ref[...] = jnp.zeros_like(sq_ref)

    acc = jnp.dot(w_ref[...], p_ref[...], preferred_element_type=jnp.float32)

    @pl.when(pas == 0)
    def _accumulate_stats():
        sum_ref[...] += jnp.sum(acc, axis=1, keepdims=True)
        sq_ref[...] += jnp.sum(acc * acc, axis=1, keepdims=True)

    @pl.when(pas == 1)
    def _normalize_store():
        inv_m = 1.0 / m_true
        mean = sum_ref[...] * inv_m
        # one-pass E[x^2]-E[x]^2 with clamp (see review note on cancellation).
        var = jnp.maximum(sq_ref[...] * inv_m - mean * mean, 0.0)
        inv = jax.lax.rsqrt(var + eps)
        y = (acc - mean) * (inv * gb_ref[:, 0:1]) + gb_ref[:, 1:2]
        o_ref[...] = jnp.maximum(y, 0.0).astype(o_ref.dtype)


def conv1_bn_relu(p1, w1, gb1, m_true, *, tile_m, eps):
    k, mp = p1.shape
    c = w1.shape[0]
    assert mp % tile_m == 0
    n_tiles = mp // tile_m
    kern = functools.partial(_stage1_kernel, m_true=float(m_true), eps=eps)
    return pl.pallas_call(
        kern,
        out_shape=jax.ShapeDtypeStruct((c, mp), jnp.bfloat16),
        grid_spec=pltpu.PrefetchScalarGridSpec(
            num_scalar_prefetch=0,
            grid=(2, n_tiles),
            in_specs=[
                pl.BlockSpec((k, tile_m), lambda p, t: (0, t)),   # patches (K, M)
                pl.BlockSpec((c, k), lambda p, t: (0, 0)),        # conv1 weight
                pl.BlockSpec((c, 2), lambda p, t: (0, 0)),        # [gamma | beta]
            ],
            # Pass 0 never writes; park the output block on tile 0 so nothing
            # is flushed until pass 1 walks the real tiles with final data.
            out_specs=pl.BlockSpec((c, tile_m), lambda p, t: (0, t * p)),
            scratch_shapes=[pltpu.VMEM((c, 1), jnp.float32),      # sum
                            pltpu.VMEM((c, 1), jnp.float32)],     # sum of squares
        ),
        compiler_params=pltpu.CompilerParams(
            # BN stats are carried in scratch across both axes -> sequential.
            dimension_semantics=("arbitrary", "arbitrary"),
            vmem_limit_bytes=32 * 1024 * 1024,
        ),
    )(p1, w1, gb1)


# ------------- kernel 2: fused tail conv2+BN2+ReLU -> conv3+BN3+ReLU -> fc1 --

def _tail_kernel(p2_ref, msk_ref, w2_ref, gb2_ref, w3_ref, gb3_ref,
                 wf_ref, bf_ref, o_ref, *, n_img, n_slot, eps):
    # conv2 (10->10, k3, s2): one MXU matmul over all 49 output positions x
    # n_slot image slots.  Rows ordered (spatial position s, image slot).
    x2 = jnp.dot(p2_ref[...], w2_ref[...], preferred_element_type=jnp.float32)

    # BN2 training-mode stats over the N*7*7 real samples (zero-padded image
    # slots contribute nothing because the conv bias was dropped), + affine +
    # ReLU; then re-zero the padded slots so they stay inert downstream.
    inv_m2 = 1.0 / (49.0 * n_img)
    mean2 = jnp.sum(x2, axis=0, keepdims=True) * inv_m2
    var2 = jnp.maximum(
        jnp.sum(x2 * x2, axis=0, keepdims=True) * inv_m2 - mean2 * mean2, 0.0)
    inv2 = jax.lax.rsqrt(var2 + eps)
    x2 = (x2 - mean2) * (inv2 * gb2_ref[0:1, :]) + gb2_ref[1:2, :]
    x2 = jnp.maximum(x2, 0.0) * msk_ref[...]

    # conv3 (10->10, k3, s2) with in-kernel im2col: the 7x7 map lives as 49
    # sublane-tile-aligned row groups of x2 (n_slot = 8-multiple rows each),
    # so every tap is a static, tile-aligned row slice.  Accumulate the 3x3
    # taps per output position and the BN3 sum/sumsq along the way.
    acc3 = []
    s3 = jnp.zeros((1, x2.shape[1]), jnp.float32)
    q3 = jnp.zeros((1, x2.shape[1]), jnp.float32)
    for h3 in range(3):
        for w3 in range(3):
            a = jnp.zeros((n_slot, x2.shape[1]), jnp.float32)
            for di in range(3):
                for dj in range(3):
                    s = (2 * h3 + di) * 7 + (2 * w3 + dj)
                    xs = x2[s * n_slot:(s + 1) * n_slot, :]
                    a = a + jnp.dot(xs, w3_ref[di * 3 + dj],
                                    preferred_element_type=jnp.float32)
            acc3.append(a)
            s3 = s3 + jnp.sum(a, axis=0, keepdims=True)
            q3 = q3 + jnp.sum(a * a, axis=0, keepdims=True)

    # BN3 + ReLU, then fc1 over the flattened 3x3x10 features.  The fc weight
    # was pre-permuted to this (position, channel) ordering in the wrapper.
    # Raw logits (no ReLU); fc1 bias kept.
    inv_m3 = 1.0 / (9.0 * n_img)
    mean3 = s3 * inv_m3
    var3 = jnp.maximum(q3 * inv_m3 - mean3 * mean3, 0.0)
    inv3 = jax.lax.rsqrt(var3 + eps)
    scale3 = inv3 * gb3_ref[0:1, :]
    shift3 = gb3_ref[1:2, :]

    logits = jnp.zeros(o_ref.shape, jnp.float32)
    for so3 in range(9):
        x3 = jnp.maximum((acc3[so3] - mean3) * scale3 + shift3, 0.0)
        logits = logits + jnp.dot(x3, wf_ref[so3],
                                  preferred_element_type=jnp.float32)
    o_ref[...] = logits + bf_ref[...]


def fused_tail(p2, mask, w2, gb2, w3, gb3, wf, bf, *, n_img, n_slot, eps):
    kern = functools.partial(_tail_kernel, n_img=n_img, n_slot=n_slot, eps=eps)
    return pl.pallas_call(
        kern,
        out_shape=jax.ShapeDtypeStruct((n_slot, wf.shape[2]), jnp.float32),
        compiler_params=pltpu.CompilerParams(
            vmem_limit_bytes=32 * 1024 * 1024),
    )(p2, mask, w2, gb2, w3, gb3, wf, bf)


# ------------------------------ model wrapper --------------------------------

def init_params(key):
    keys = jax.random.split(key, 8)

    def w(kk, shape, scale=0.1):
        return scale * jax.random.normal(kk, shape, dtype=jnp.float32)

    return {
        # conv biases are kept for module parity but are mathematically
        # cancelled by training-mode BatchNorm, so the kernels never see them.
        'conv1_w': w(keys[0], (10, 3, 3, 3)),   'conv1_b': w(keys[1], (10,)),
        'conv2_w': w(keys[2], (10, 10, 3, 3)),  'conv2_b': w(keys[3], (10,)),
        'conv3_w': w(keys[4], (10, 10, 3, 3)),  'conv3_b': w(keys[5], (10,)),
        'fc1_w':   w(keys[6], (10, 10 * 3 * 3)), 'fc1_b': w(keys[7], (10,)),
        'bn1_g': jnp.ones((10,), jnp.float32), 'bn1_b': jnp.zeros((10,), jnp.float32),
        'bn2_g': jnp.ones((10,), jnp.float32), 'bn2_b': jnp.zeros((10,), jnp.float32),
        'bn3_g': jnp.ones((10,), jnp.float32), 'bn3_b': jnp.zeros((10,), jnp.float32),
    }


def small_cnn_forward(params, x_nchw, *, eps=1e-5, tile_m=512):
    n = x_nchw.shape[0]
    xb = x_nchw.astype(jnp.bfloat16)          # cast BEFORE im2col (half traffic)

    # ---- stage 1: conv1 (3->10, k3, s1) + BN1 + ReLU, (C, M) layout ----------
    ho, wo = 30, 30
    cols = []
    for di in range(3):
        for dj in range(3):
            cols.append(xb[:, :, di:di + ho, dj:dj + wo])       # (N,3,30,30)
    p1 = jnp.stack(cols, 0).transpose(0, 2, 1, 3, 4).reshape(27, n * ho * wo)
    m1 = n * ho * wo
    n_tiles = -(-m1 // tile_m)
    mp = n_tiles * tile_m
    p1 = jnp.pad(p1, ((0, 0), (0, mp - m1)))                    # zero cols: inert

    w1 = params['conv1_w'].transpose(0, 2, 3, 1).reshape(10, 27).astype(jnp.bfloat16)
    gb1 = jnp.stack([params['bn1_g'], params['bn1_b']], axis=1)  # (10, 2)
    y1 = conv1_bn_relu(p1, w1, gb1, m1, tile_m=tile_m, eps=eps)  # (10, mp) bf16
    y1 = y1[:, :m1].reshape(10, n, ho, wo)

    # ---- 2x2/2 max-pool: elementwise max of 4 strided views (pure XLA) ------
    yp = jnp.maximum(jnp.maximum(y1[:, :, 0::2, 0::2], y1[:, :, 0::2, 1::2]),
                     jnp.maximum(y1[:, :, 1::2, 0::2], y1[:, :, 1::2, 1::2]))
    # (10, N, 15, 15) bf16

    # ---- fused tail: conv2+BN2+ReLU -> conv3+BN3+ReLU -> fc1 (one kernel) ----
    n_slot = -(-n // 8) * 8            # pad image slots to an 8-sublane group
    cols = []
    for di in range(3):
        for dj in range(3):
            cols.append(yp[:, :, di:di + 13:2, dj:dj + 13:2])   # (10,N,7,7)
    p2 = jnp.stack(cols, 0)                       # (9,10,N,7,7) [dij,cin,n,ho,wo]
    p2 = p2.transpose(3, 4, 2, 0, 1).reshape(49, n, 90)
    p2 = jnp.pad(p2, ((0, 0), (0, n_slot - n), (0, 0))).reshape(49 * n_slot, 90)
    mask = jnp.tile((jnp.arange(n_slot) < n).astype(jnp.float32),
                    49).reshape(49 * n_slot, 1)

    w2 = params['conv2_w'].transpose(2, 3, 1, 0).reshape(90, 10).astype(jnp.bfloat16)
    gb2 = jnp.stack([params['bn2_g'], params['bn2_b']], axis=0)  # (2, 10)
    w3 = params['conv3_w'].transpose(2, 3, 1, 0).reshape(9, 10, 10)  # [dij,cin,cout]
    gb3 = jnp.stack([params['bn3_g'], params['bn3_b']], axis=0)
    # fc1 consumes PyTorch's NCHW flatten (c*9 + position); fold that
    # permutation into the weight at trace time: wf[pos][cin, out].
    wf = params['fc1_w'].reshape(10, 10, 9).transpose(2, 1, 0)
    bf = params['fc1_b'].reshape(1, 10)

    out = fused_tail(p2, mask, w2, gb2, w3, gb3, wf, bf,
                     n_img=n, n_slot=n_slot, eps=eps)            # (n_slot, 10) f32
    return out[:n]                                               # (N, 10) logits

# TODO(synk): calculate_loss (CrossEntropyLoss) and predict (argmax) are not
# part of forward() and are not implemented as kernels here.


if __name__ == "__main__":
    key = jax.random.PRNGKey(0)
    pkey, xkey = jax.random.split(key)
    params = init_params(pkey)
    # fc1 in-features = 10*3*3 forces a 32x32 spatial input; batch = 2.
    x = jax.random.normal(xkey, (2, 3, 32, 32), dtype=jnp.float32)
    fwd = jax.jit(small_cnn_forward)
    out = jax.block_until_ready(fwd(params, x))
    assert out.shape == (2, 10) and out.dtype == jnp.float32
    print("KERNEL_OK")
</pallas_src>

<mosaic_0001>
module attributes {stable_mosaic.version = 11 : i64} {
  func.func @_stage1_kernel(%arg0: i32, %arg1: i32, %arg2: memref<27x512xbf16, #tpu.memory_space<vmem>>, %arg3: memref<10x27xbf16, #tpu.memory_space<vmem>>, %arg4: memref<10x2xf32, #tpu.memory_space<vmem>>, %arg5: memref<10x512xbf16, #tpu.memory_space<vmem>>, %arg6: memref<10x1xf32, #tpu.memory_space<vmem>>, %arg7: memref<10x1xf32, #tpu.memory_space<vmem>>) attributes {dimension_semantics = [#tpu.dimension_semantics<arbitrary>, #tpu.dimension_semantics<arbitrary>], iteration_bounds = array<i64: 2, 4>, scalar_prefetch = 0 : i64, scratch_operands = 2 : i64, tpu.core_type = #tpu.core_type<tc>, window_params = [{transform_indices = @transform_0, window_bounds = array<i64: 27, 512>}, {pipeline_mode = #tpu.pipeline_mode<synchronous>, transform_indices = @transform_1, window_bounds = array<i64: 10, 27>}, {pipeline_mode = #tpu.pipeline_mode<synchronous>, transform_indices = @transform_2, window_bounds = array<i64: 10, 2>}, {transform_indices = @transform_3, window_bounds = array<i64: 10, 512>}]} {
    %c0_i32 = arith.constant 0 : i32
    %0 = arith.cmpi eq, %arg0, %c0_i32 : i32
    %c0_i32_0 = arith.constant 0 : i32
    %1 = arith.cmpi eq, %arg1, %c0_i32_0 : i32
    %2 = arith.andi %0, %1 : i1
    %3 = arith.extui %2 : i1 to i32
    %c0_i32_1 = arith.constant 0 : i32
    %4 = arith.cmpi ne, %3, %c0_i32_1 : i32
    scf.if %4 {
      %cst_8 = arith.constant 0.000000e+00 : f32
      %14 = vector.broadcast %cst_8 : f32 to vector<10x1xf32>
      %c0_9 = arith.constant 0 : index
      %c0_10 = arith.constant 0 : index
      %15 = vector.load %arg6[%c0_9, %c0_10] : memref<10x1xf32, #tpu.memory_space<vmem>>, vector<10x1xf32>
      tpu.vector_store %arg6[%c0_9, %c0_10], %14 {strides = array<i32>} : memref<10x1xf32, #tpu.memory_space<vmem>>, vector<10x1xf32>,
      %cst_11 = arith.constant 0.000000e+00 : f32
      %16 = vector.broadcast %cst_11 : f32 to vector<10x1xf32>
      %c0_12 = arith.constant 0 : index
      %c0_13 = arith.constant 0 : index
      %17 = vector.load %arg7[%c0_12, %c0_13] : memref<10x1xf32, #tpu.memory_space<vmem>>, vector<10x1xf32>
      tpu.vector_store %arg7[%c0_12, %c0_13], %16 {strides = array<i32>} : memref<10x1xf32, #tpu.memory_space<vmem>>, vector<10x1xf32>,
    } else {
    }
    %c0 = arith.constant 0 : index
    %c0_2 = arith.constant 0 : index
    %5 = vector.load %arg3[%c0, %c0_2] : memref<10x27xbf16, #tpu.memory_space<vmem>>, vector<10x27xbf16>
    %c0_3 = arith.constant 0 : index
    %c0_4 = arith.constant 0 : index
    %6 = vector.load %arg2[%c0_3, %c0_4] : memref<27x512xbf16, #tpu.memory_space<vmem>>, vector<27x512xbf16>
    %cst = arith.constant dense<0.000000e+00> : vector<10x512xf32>
    %7 = tpu.matmul %5, %6, %cst {dimension_numbers = #tpu.dot_dimension_numbers<[1], [0], [0], [1], [0, 0, 1, 1], [], []>} : vector<10x27xbf16>, vector<27x512xbf16>, vector<10x512xf32> -> vector<10x512xf32>
    %c0_i32_5 = arith.constant 0 : i32
    %8 = arith.cmpi eq, %arg0, %c0_i32_5 : i32
    %9 = arith.extui %8 : i1 to i32
    %c0_i32_6 = arith.constant 0 : i32
    %10 = arith.cmpi ne, %9, %c0_i32_6 : i32
    scf.if %10 {
      %c0_8 = arith.constant 0 : index
      %c0_9 = arith.constant 0 : index
      %14 = vector.load %arg6[%c0_8, %c0_9] : memref<10x1xf32, #tpu.memory_space<vmem>>, vector<10x1xf32>
      %cst_10 = arith.constant dense<0.000000e+00> : vector<10xf32>
      %15 = vector.multi_reduction <add>, %7, %cst_10 [1] : vector<10x512xf32> to vector<10xf32>
      %16 = vector.shape_cast %15 : vector<10xf32> to vector<10x1xf32>
      %17 = arith.addf %14, %16 : vector<10x1xf32>
      %c0_11 = arith.constant 0 : index
      %c0_12 = arith.constant 0 : index
      %18 = vector.load %arg6[%c0_11, %c0_12] : memref<10x1xf32, #tpu.memory_space<vmem>>, vector<10x1xf32>
      tpu.vector_store %arg6[%c0_11, %c0_12], %17 {strides = array<i32>} : memref<10x1xf32, #tpu.memory_space<vmem>>, vector<10x1xf32>,
      %c0_13 = arith.constant 0 : index
      %c0_14 = arith.constant 0 : index
      %19 = vector.load %arg7[%c0_13, %c0_14] : memref<10x1xf32, #tpu.memory_space<vmem>>, vector<10x1xf32>
      %20 = arith.mulf %7, %7 : vector<10x512xf32>
      %cst_15 = arith.constant dense<0.000000e+00> : vector<10xf32>
      %21 = vector.multi_reduction <add>, %20, %cst_15 [1] : vector<10x512xf32> to vector<10xf32>
      %22 = vector.shape_cast %21 : vector<10xf32> to vector<10x1xf32>
      %23 = arith.addf %19, %22 : vector<10x1xf32>
      %c0_16 = arith.constant 0 : index
      %c0_17 = arith.constant 0 : index
      %24 = vector.load %arg7[%c0_16, %c0_17] : memref<10x1xf32, #tpu.memory_space<vmem>>, vector<10x1xf32>
      tpu.vector_store %arg7[%c0_16, %c0_17], %23 {strides = array<i32>} : memref<10x1xf32, #tpu.memory_space<vmem>>, vector<10x1xf32>,
    } else {
    }
    %c1_i32 = arith.constant 1 : i32
    %11 = arith.cmpi eq, %arg0, %c1_i32 : i32
    %12 = arith.extui %11 : i1 to i32
    %c0_i32_7 = arith.constant 0 : i32
    %13 = arith.cmpi ne, %12, %c0_i32_7 : i32
    scf.if %13 {
      %c0_8 = arith.constant 0 : index
      %c0_9 = arith.constant 0 : index
      %14 = vector.load %arg6[%c0_8, %c0_9] : memref<10x1xf32, #tpu.memory_space<vmem>>, vector<10x1xf32>
      %cst_10 = arith.constant 5.55555569E-4 : f32
      %15 = vector.broadcast %cst_10 : f32 to vector<10x1xf32>
      %16 = arith.mulf %14, %15 : vector<10x1xf32>
      %c0_11 = arith.constant 0 : index
      %c0_12 = arith.constant 0 : index
      %17 = vector.load %arg7[%c0_11, %c0_12] : memref<10x1xf32, #tpu.memory_space<vmem>>, vector<10x1xf32>
      %cst_13 = arith.constant 5.55555569E-4 : f32
      %18 = vector.broadcast %cst_13 : f32 to vector<10x1xf32>
      %19 = arith.mulf %17, %18 : vector<10x1xf32>
      %20 = arith.mulf %16, %16 : vector<10x1xf32>
      %21 = arith.subf %19, %20 : vector<10x1xf32>
      %cst_14 = arith.constant 0.000000e+00 : f32
      %22 = vector.broadcast %cst_14 : f32 to vector<10x1xf32>
      %23 = arith.maximumf %21, %22 : vector<10x1xf32>
      %cst_15 = arith.constant 9.99999974E-6 : f32
      %24 = vector.broadcast %cst_15 : f32 to vector<10x1xf32>
      %25 = arith.addf %23, %24 : vector<10x1xf32>
      %26 = math.rsqrt %25 : vector<10x1xf32>
      %27 = vector.broadcast %16 : vector<10x1xf32> to vector<10x512xf32>
      %28 = arith.subf %7, %27 : vector<10x512xf32>
      %c0_16 = arith.constant 0 : index
      %c0_17 = arith.constant 0 : index
      %29 = vector.load %arg4[%c0_16, %c0_17] : memref<10x2xf32, #tpu.memory_space<vmem>>, vector<10x1xf32>
      %30 = arith.mulf %26, %29 : vector<10x1xf32>
      %31 = vector.broadcast %30 : vector<10x1xf32> to vector<10x512xf32>
      %32 = arith.mulf %28, %31 : vector<10x512xf32>
      %c0_18 = arith.constant 0 : index
      %c1 = arith.constant 1 : index
      %33 = vector.load %arg4[%c0_18, %c1] : memref<10x2xf32, #tpu.memory_space<vmem>>, vector<10x1xf32>
      %34 = vector.broadcast %33 : vector<10x1xf32> to vector<10x512xf32>
      %35 = arith.addf %32, %34 : vector<10x512xf32>
      %cst_19 = arith.constant 0.000000e+00 : f32
      %36 = vector.broadcast %cst_19 : f32 to vector<10x512xf32>
      %37 = arith.maximumf %35, %36 : vector<10x512xf32>
      %38 = arith.truncf %37 : vector<10x512xf32> to vector<10x512xbf16>
      %c0_20 = arith.constant 0 : index
      %c0_21 = arith.constant 0 : index
      %39 = vector.load %arg5[%c0_20, %c0_21] : memref<10x512xbf16, #tpu.memory_space<vmem>>, vector<10x512xbf16>
      tpu.vector_store %arg5[%c0_20, %c0_21], %38 {strides = array<i32>} : memref<10x512xbf16, #tpu.memory_space<vmem>>, vector<10x512xbf16>,
    } else {
    }
    return
  }
  func.func @transform_0(%arg0: i32, %arg1: i32) -> (i32, i32) {
    %c0_i32 = arith.constant 0 : i32
    %c0_i32_0 = arith.constant 0 : i32
    return %c0_i32, %arg1 : i32, i32
  }
  func.func @transform_1(%arg0: i32, %arg1: i32) -> (i32, i32) {
    %c0_i32 = arith.constant 0 : i32
    %c0_i32_0 = arith.constant 0 : i32
    %c0_i32_1 = arith.constant 0 : i32
    return %c0_i32, %c0_i32_0 : i32, i32
  }
  func.func @transform_2(%arg0: i32, %arg1: i32) -> (i32, i32) {
    %c0_i32 = arith.constant 0 : i32
    %c0_i32_0 = arith.constant 0 : i32
    %c0_i32_1 = arith.constant 0 : i32
    return %c0_i32, %c0_i32_0 : i32, i32
  }
  func.func @transform_3(%arg0: i32, %arg1: i32) -> (i32, i32) {
    %0 = arith.muli %arg1, %arg0 : i32
    %c0_i32 = arith.constant 0 : i32
    %c0_i32_0 = arith.constant 0 : i32
    return %c0_i32, %0 : i32, i32
  }
}

module attributes {stable_mosaic.version = 11 : i64} {
  func.func @_tail_kernel(%arg0: memref<392x90xbf16, #tpu.memory_space<vmem>>, %arg1: memref<392x1xf32, #tpu.memory_space<vmem>>, %arg2: memref<90x10xbf16, #tpu.memory_space<vmem>>, %arg3: memref<2x10xf32, #tpu.memory_space<vmem>>, %arg4: memref<9x10x10xf32, #tpu.memory_space<vmem>>, %arg5: memref<2x10xf32, #tpu.memory_space<vmem>>, %arg6: memref<9x10x10xf32, #tpu.memory_space<vmem>>, %arg7: memref<1x10xf32, #tpu.memory_space<vmem>>, %arg8: memref<8x10xf32, #tpu.memory_space<vmem>>) attributes {dimension_semantics = [], scalar_prefetch = 0 : i64, scratch_operands = 0 : i64, tpu.core_type = #tpu.core_type<tc>} {
    %c0 = arith.constant 0 : index
    %c0_0 = arith.constant 0 : index
    %0 = vector.load %arg0[%c0, %c0_0] : memref<392x90xbf16, #tpu.memory_space<vmem>>, vector<392x90xbf16>
    %c0_1 = arith.constant 0 : index
    %c0_2 = arith.constant 0 : index
    %1 = vector.load %arg2[%c0_1, %c0_2] : memref<90x10xbf16, #tpu.memory_space<vmem>>, vector<90x10xbf16>
    %cst = arith.constant dense<0.000000e+00> : vector<392x10xf32>
    %2 = tpu.matmul %0, %1, %cst {dimension_numbers = #tpu.dot_dimension_numbers<[1], [0], [0], [1], [0, 0, 1, 1], [], []>} : vector<392x90xbf16>, vector<90x10xbf16>, vector<392x10xf32> -> vector<392x10xf32>
    %cst_3 = arith.constant dense<0.000000e+00> : vector<10xf32>
    %3 = vector.multi_reduction <add>, %2, %cst_3 [0] : vector<392x10xf32> to vector<10xf32>
    %4 = vector.shape_cast %3 : vector<10xf32> to vector<1x10xf32>
    %cst_4 = arith.constant 0.0102040814 : f32
    %5 = vector.broadcast %cst_4 : f32 to vector<1x10xf32>
    %6 = arith.mulf %4, %5 : vector<1x10xf32>
    %7 = arith.mulf %2, %2 : vector<392x10xf32>
    %cst_5 = arith.constant dense<0.000000e+00> : vector<10xf32>
    %8 = vector.multi_reduction <add>, %7, %cst_5 [0] : vector<392x10xf32> to vector<10xf32>
    %9 = vector.shape_cast %8 : vector<10xf32> to vector<1x10xf32>
    %cst_6 = arith.constant 0.0102040814 : f32
    %10 = vector.broadcast %cst_6 : f32 to vector<1x10xf32>
    %11 = arith.mulf %9, %10 : vector<1x10xf32>
    %12 = arith.mulf %6, %6 : vector<1x10xf32>
    %13 = arith.subf %11, %12 : vector<1x10xf32>
    %cst_7 = arith.constant 0.000000e+00 : f32
    %14 = vector.broadcast %cst_7 : f32 to vector<1x10xf32>
    %15 = arith.maximumf %13, %14 : vector<1x10xf32>
    %cst_8 = arith.constant 9.99999974E-6 : f32
    %16 = vector.broadcast %cst_8 : f32 to vector<1x10xf32>
    %17 = arith.addf %15, %16 : vector<1x10xf32>
    %18 = math.rsqrt %17 : vector<1x10xf32>
    %19 = vector.broadcast %6 : vector<1x10xf32> to vector<392x10xf32>
    %20 = arith.subf %2, %19 : vector<392x10xf32>
    %c0_9 = arith.constant 0 : index
    %c0_10 = arith.constant 0 : index
    %21 = vector.load %arg3[%c0_9, %c0_10] : memref<2x10xf32, #tpu.memory_space<vmem>>, vector<1x10xf32>
    %22 = arith.mulf %18, %21 : vector<1x10xf32>
    %23 = vector.broadcast %22 : vector<1x10xf32> to vector<392x10xf32>
    %24 = arith.mulf %20, %23 : vector<392x10xf32>
    %c1 = arith.constant 1 : index
    %c0_11 = arith.constant 0 : index
    %25 = vector.load %arg3[%c1, %c0_11] : memref<2x10xf32, #tpu.memory_space<vmem>>, vector<1x10xf32>
    %26 = vector.broadcast %25 : vector<1x10xf32> to vector<392x10xf32>
    %27 = arith.addf %24, %26 : vector<392x10xf32>
    %cst_12 = arith.constant 0.000000e+00 : f32
    %28 = vector.broadcast %cst_12 : f32 to vector<392x10xf32>
    %29 = arith.maximumf %27, %28 : vector<392x10xf32>
    %c0_13 = arith.constant 0 : index
    %c0_14 = arith.constant 0 : index
    %30 = vector.load %arg1[%c0_13, %c0_14] : memref<392x1xf32, #tpu.memory_space<vmem>>, vector<392x1xf32>
    %31 = vector.broadcast %30 : vector<392x1xf32> to vector<392x10xf32>
    %32 = arith.mulf %29, %31 : vector<392x10xf32>
    %cst_15 = arith.constant 0.000000e+00 : f32
    %33 = vector.broadcast %cst_15 : f32 to vector<1x10xf32>
    %cst_16 = arith.constant 0.000000e+00 : f32
    %34 = vector.broadcast %cst_16 : f32 to vector<1x10xf32>
    %cst_17 = arith.constant 0.000000e+00 : f32
    %35 = vector.broadcast %cst_17 : f32 to vector<8x10xf32>
    %36 = vector.extract_strided_slice %32 {offsets = [0, 0], sizes = [8, 10], strides = [1, 1]} : vector<392x10xf32> to vector<8x10xf32>
    %c0_18 = arith.constant 0 : index
    %c0_19 = arith.constant 0 : index
    %c0_20 = arith.constant 0 : index
    %37 = vector.load %arg4[%c0_18, %c0_19, %c0_20] : memref<9x10x10xf32, #tpu.memory_space<vmem>>, vector<1x10x10xf32>
    %38 = vector.shape_cast %37 : vector<1x10x10xf32> to vector<10x10xf32>
    %cst_21 = arith.constant dense<0.000000e+00> : vector<8x10xf32>
    %39 = tpu.matmul %36, %38, %cst_21 {dimension_numbers = #tpu.dot_dimension_numbers<[1], [0], [0], [1], [0, 0, 1, 1], [], []>} : vector<8x10xf32>, vector<10x10xf32>, vector<8x10xf32> -> vector<8x10xf32>
    %40 = arith.addf %35, %39 : vector<8x10xf32>
    %41 = vector.extract_strided_slice %32 {offsets = [8, 0], sizes = [8, 10], strides = [1, 1]} : vector<392x10xf32> to vector<8x10xf32>
    %c1_22 = arith.constant 1 : index
    %c0_23 = arith.constant 0 : index
    %c0_24 = arith.constant 0 : index
    %42 = vector.load %arg4[%c1_22, %c0_23, %c0_24] : memref<9x10x10xf32, #tpu.memory_space<vmem>>, vector<1x10x10xf32>
    %43 = vector.shape_cast %42 : vector<1x10x10xf32> to vector<10x10xf32>
    %cst_25 = arith.constant dense<0.000000e+00> : vector<8x10xf32>
    %44 = tpu.matmul %41, %43, %cst_25 {dimension_numbers = #tpu.dot_dimension_numbers<[1], [0], [0], [1], [0, 0, 1, 1], [], []>} : vector<8x10xf32>, vector<10x10xf32>, vector<8x10xf32> -> vector<8x10xf32>
    %45 = arith.addf %40, %44 : vector<8x10xf32>
    %46 = vector.extract_strided_slice %32 {offsets = [16, 0], sizes = [8, 10], strides = [1, 1]} : vector<392x10xf32> to vector<8x10xf32>
    %c2 = arith.constant 2 : index
    %c0_26 = arith.constant 0 : index
    %c0_27 = arith.constant 0 : index
    %47 = vector.load %arg4[%c2, %c0_26, %c0_27] : memref<9x10x10xf32, #tpu.memory_space<vmem>>, vector<1x10x10xf32>
    %48 = vector.shape_cast %47 : vector<1x10x10xf32> to vector<10x10xf32>
    %cst_28 = arith.constant dense<0.000000e+00> : vector<8x10xf32>
    %49 = tpu.matmul %46, %48, %cst_28 {dimension_numbers = #tpu.dot_dimension_numbers<[1], [0], [0], [1], [0, 0, 1, 1], [], []>} : vector<8x10xf32>, vector<10x10xf32>, vector<8x10xf32> -> vector<8x10xf32>
    %50 = arith.addf %45, %49 : vector<8x10xf32>
    %51 = vector.extract_strided_slice %32 {offsets = [56, 0], sizes = [8, 10], strides = [1, 1]} : vector<392x10xf32> to vector<8x10xf32>
    %c3 = arith.constant 3 : index
    %c0_29 = arith.constant 0 : index
    %c0_30 = arith.constant 0 : index
    %52 = vector.load %arg4[%c3, %c0_29, %c0_30] : memref<9x10x10xf32, #tpu.memory_space<vmem>>, vector<1x10x10xf32>
    %53 = vector.shape_cast %52 : vector<1x10x10xf32> to vector<10x10xf32>
    %cst_31 = arith.constant dense<0.000000e+00> : vector<8x10xf32>
    %54 = tpu.matmul %51, %53, %cst_31 {dimension_numbers = #tpu.dot_dimension_numbers<[1], [0], [0], [1], [0, 0, 1, 1], [], []>} : vector<8x10xf32>, vector<10x10xf32>, vector<8x10xf32> -> vector<8x10xf32>
    %55 = arith.addf %50, %54 : vector<8x10xf32>
    %56 = vector.extract_strided_slice %32 {offsets = [64, 0], sizes = [8, 10], strides = [1, 1]} : vector<392x10xf32> to vector<8x10xf32>
    %c4 = arith.constant 4 : index
    %c0_32 = arith.constant 0 : index
    %c0_33 = arith.constant 0 : index
    %57 = vector.load %arg4[%c4, %c0_32, %c0_33] : memref<9x10x10xf32, #tpu.memory_space<vmem>>, vector<1x10x10xf32>
    %58 = vector.shape_cast %57 : vector<1x10x10xf32> to vector<10x10xf32>
    %cst_34 = arith.constant dense<0.000000e+00> : vector<8x10xf32>
    %59 = tpu.matmul %56, %58, %cst_34 {dimension_numbers = #tpu.dot_dimension_numbers<[1], [0], [0], [1], [0, 0, 1, 1], [], []>} : vector<8x10xf32>, vector<10x10xf32>, vector<8x10xf32> -> vector<8x10xf32>
    %60 = arith.addf %55, %59 : vector<8x10xf32>
    %61 = vector.extract_strided_slice %32 {offsets = [72, 0], sizes = [8, 10], strides = [1, 1]} : vector<392x10xf32> to vector<8x10xf32>
    %c5 = arith.constant 5 : index
    %c0_35 = arith.constant 0 : index
    %c0_36 = arith.constant 0 : index
    %62 = vector.load %arg4[%c5, %c0_35, %c0_36] : memref<9x10x10xf32, #tpu.memory_space<vmem>>, vector<1x10x10xf32>
    %63 = vector.shape_cast %62 : vector<1x10x10xf32> to vector<10x10xf32>
    %cst_37 = arith.constant dense<0.000000e+00> : vector<8x10xf32>
    %64 = tpu.matmul %61, %63, %cst_37 {dimension_numbers = #tpu.dot_dimension_numbers<[1], [0], [0], [1], [0, 0, 1, 1], [], []>} : vector<8x10xf32>, vector<10x10xf32>, vector<8x10xf32> -> vector<8x10xf32>
    %65 = arith.addf %60, %64 : vector<8x10xf32>
    %66 = vector.extract_strided_slice %32 {offsets = [112, 0], sizes = [8, 10], strides = [1, 1]} : vector<392x10xf32> to vector<8x10xf32>
    %c6 = arith.constant 6 : index
    %c0_38 = arith.constant 0 : index
    %c0_39 = arith.constant 0 : index
    %67 = vector.load %arg4[%c6, %c0_38, %c0_39] : memref<9x10x10xf32, #tpu.memory_space<vmem>>, vector<1x10x10xf32>
    %68 = vector.shape_cast %67 : vector<1x10x10xf32> to vector<10x10xf32>
    %cst_40 = arith.constant dense<0.000000e+00> : vector<8x10xf32>
    %69 = tpu.matmul %66, %68, %cst_40 {dimension_numbers = #tpu.dot_dimension_numbers<[1], [0], [0], [1], [0, 0, 1, 1], [], []>} : vector<8x10xf32>, vector<10x10xf32>, vector<8x10xf32> -> vector<8x10xf32>
    %70 = arith.addf %65, %69 : vector<8x10xf32>
    %71 = vector.extract_strided_slice %32 {offsets = [120, 0], sizes = [8, 10], strides = [1, 1]} : vector<392x10xf32> to vector<8x10xf32>
    %c7 = arith.constant 7 : index
    %c0_41 = arith.constant 0 : index
    %c0_42 = arith.constant 0 : index
    %72 = vector.load %arg4[%c7, %c0_41, %c0_42] : memref<9x10x10xf32, #tpu.memory_space<vmem>>, vector<1x10x10xf32>
    %73 = vector.shape_cast %72 : vector<1x10x10xf32> to vector<10x10xf32>
    %cst_43 = arith.constant dense<0.000000e+00> : vector<8x10xf32>
    %74 = tpu.matmul %71, %73, %cst_43 {dimension_numbers = #tpu.dot_dimension_numbers<[1], [0], [0], [1], [0, 0, 1, 1], [], []>} : vector<8x10xf32>, vector<10x10xf32>, vector<8x10xf32> -> vector<8x10xf32>
    %75 = arith.addf %70, %74 : vector<8x10xf32>
    %76 = vector.extract_strided_slice %32 {offsets = [128, 0], sizes = [8, 10], strides = [1, 1]} : vector<392x10xf32> to vector<8x10xf32>
    %c8 = arith.constant 8 : index
    %c0_44 = arith.constant 0 : index
    %c0_45 = arith.constant 0 : index
    %77 = vector.load %arg4[%c8, %c0_44, %c0_45] : memref<9x10x10xf32, #tpu.memory_space<vmem>>, vector<1x10x10xf32>
    %78 = vector.shape_cast %77 : vector<1x10x10xf32> to vector<10x10xf32>
    %cst_46 = arith.constant dense<0.000000e+00> : vector<8x10xf32>
    %79 = tpu.matmul %76, %78, %cst_46 {dimension_numbers = #tpu.dot_dimension_numbers<[1], [0], [0], [1], [0, 0, 1, 1], [], []>} : vector<8x10xf32>, vector<10x10xf32>, vector<8x10xf32> -> vector<8x10xf32>
    %80 = arith.addf %75, %79 : vector<8x10xf32>
    %cst_47 = arith.constant dense<0.000000e+00> : vector<10xf32>
    %81 = vector.multi_reduction <add>, %80, %cst_47 [0] : vector<8x10xf32> to vector<10xf32>
    %82 = vector.shape_cast %81 : vector<10xf32> to vector<1x10xf32>
    %83 = arith.addf %33, %82 : vector<1x10xf32>
    %84 = arith.mulf %80, %80 : vector<8x10xf32>
    %cst_48 = arith.constant dense<0.000000e+00> : vector<10xf32>
    %85 = vector.multi_reduction <add>, %84, %cst_48 [0] : vector<8x10xf32> to vector<10xf32>
    %86 = vector.shape_cast %85 : vector<10xf32> to vector<1x10xf32>
    %87 = arith.addf %34, %86 : vector<1x10xf32>
    %cst_49 = arith.constant 0.000000e+00 : f32
    %88 = vector.broadcast %cst_49 : f32 to vector<8x10xf32>
    %89 = vector.extract_strided_slice %32 {offsets = [16, 0], sizes = [8, 10], strides = [1, 1]} : vector<392x10xf32> to vector<8x10xf32>
    %c0_50 = arith.constant 0 : index
    %c0_51 = arith.constant 0 : index
    %c0_52 = arith.constant 0 : index
    %90 = vector.load %arg4[%c0_50, %c0_51, %c0_52] : memref<9x10x10xf32, #tpu.memory_space<vmem>>, vector<1x10x10xf32>
    %91 = vector.shape_cast %90 : vector<1x10x10xf32> to vector<10x10xf32>
    %cst_53 = arith.constant dense<0.000000e+00> : vector<8x10xf32>
    %92 = tpu.matmul %89, %91, %cst_53 {dimension_numbers = #tpu.dot_dimension_numbers<[1], [0], [0], [1], [0, 0, 1, 1], [], []>} : vector<8x10xf32>, vector<10x10xf32>, vector<8x10xf32> -> vector<8x10xf32>
    %93 = arith.addf %88, %92 : vector<8x10xf32>
    %94 = vector.extract_strided_slice %32 {offsets = [24, 0], sizes = [8, 10], strides = [1, 1]} : vector<392x10xf32> to vector<8x10xf32>
    %c1_54 = arith.constant 1 : index
    %c0_55 = arith.constant 0 : index
    %c0_56 = arith.constant 0 : index
    %95 = vector.load %arg4[%c1_54, %c0_55, %c0_56] : memref<9x10x10xf32, #tpu.memory_space<vmem>>, vector<1x10x10xf32>
    %96 = vector.shape_cast %95 : vector<1x10x10xf32> to vector<10x10xf32>
    %cst_57 = arith.constant dense<0.000000e+00> : vector<8x10xf32>
    %97 = tpu.matmul %94, %96, %cst_57 {dimension_numbers = #tpu.dot_dimension_numbers<[1], [0], [0], [1], [0, 0, 1, 1], [], []>} : vector<8x10xf32>, vector<10x10xf32>, vector<8x10xf32> -> vector<8x10xf32>
    %98 = arith.addf %93, %97 : vector<8x10xf32>
    %99 = vector.extract_strided_slice %32 {offsets = [32, 0], sizes = [8, 10], strides = [1, 1]} : vector<392x10xf32> to vector<8x10xf32>
    %c2_58 = arith.constant 2 : index
    %c0_59 = arith.constant 0 : index
    %c0_60 = arith.constant 0 : index
    %100 = vector.load %arg4[%c2_58, %c0_59, %c0_60] : memref<9x10x10xf32, #tpu.memory_space<vmem>>, vector<1x10x10xf32>
    %101 = vector.shape_cast %100 : vector<1x10x10xf32> to vector<10x10xf32>
    %cst_61 = arith.constant dense<0.000000e+00> : vector<8x10xf32>
    %102 = tpu.matmul %99, %101, %cst_61 {dimension_numbers = #tpu.dot_dimension_numbers<[1], [0], [0], [1], [0, 0, 1, 1], [], []>} : vector<8x10xf32>, vector<10x10xf32>, vector<8x10xf32> -> vector<8x10xf32>
    %103 = arith.addf %98, %102 : vector<8x10xf32>
    %104 = vector.extract_strided_slice %32 {offsets = [72, 0], sizes = [8, 10], strides = [1, 1]} : vector<392x10xf32> to vector<8x10xf32>
    %c3_62 = arith.constant 3 : index
    %c0_63 = arith.constant 0 : index
    %c0_64 = arith.constant 0 : index
    %105 = vector.load %arg4[%c3_62, %c0_63, %c0_64] : memref<9x10x10xf32, #tpu.memory_space<vmem>>, vector<1x10x10xf32>
    %106 = vector.shape_cast %105 : vector<1x10x10xf32> to vector<10x10xf32>
    %cst_65 = arith.constant dense<0.000000e+00> : vector<8x10xf32>
    %107 = tpu.matmul %104, %106, %cst_65 {dimension_numbers = #tpu.dot_dimension_numbers<[1], [0], [0], [1], [0, 0, 1, 1], [], []>} : vector<8x10xf32>, vector<10x10xf32>, vector<8x10xf32> -> vector<8x10xf32>
    %108 = arith.addf %103, %107 : vector<8x10xf32>
    %109 = vector.extract_strided_slice %32 {offsets = [80, 0], sizes = [8, 10], strides = [1, 1]} : vector<392x10xf32> to vector<8x10xf32>
    %c4_66 = arith.constant 4 : index
    %c0_67 = arith.constant 0 : index
    %c0_68 = arith.constant 0 : index
    %110 = vector.load %arg4[%c4_66, %c0_67, %c0_68] : memref<9x10x10xf32, #tpu.memory_space<vmem>>, vector<1x10x10xf32>
    %111 = vector.shape_cast %110 : vector<1x10x10xf32> to vector<10x10xf32>
    %cst_69 = arith.constant dense<0.000000e+00> : vector<8x10xf32>
    %112 = tpu.matmul %109, %111, %cst_69 {dimension_numbers = #tpu.dot_dimension_numbers<[1], [0], [0], [1], [0, 0, 1, 1], [], []>} : vector<8x10xf32>, vector<10x10xf32>, vector<8x10xf32> -> vector<8x10xf32>
    %113 = arith.addf %108, %112 : vector<8x10xf32>
    %114 = vector.extract_strided_slice %32 {offsets = [88, 0], sizes = [8, 10], strides = [1, 1]} : vector<392x10xf32> to vector<8x10xf32>
    %c5_70 = arith.constant 5 : index
    %c0_71 = arith.constant 0 : index
    %c0_72 = arith.constant 0 : index
    %115 = vector.load %arg4[%c5_70, %c0_71, %c0_72] : memref<9x10x10xf32, #tpu.memory_space<vmem>>, vector<1x10x10xf32>
    %116 = vector.shape_cast %115 : vector<1x10x10xf32> to vector<10x10xf32>
    %cst_73 = arith.constant dense<0.000000e+00> : vector<8x10xf32>
    %117 = tpu.matmul %114, %116, %cst_73 {dimension_numbers = #tpu.dot_dimension_numbers<[1], [0], [0], [1], [0, 0, 1, 1], [], []>} : vector<8x10xf32>, vector<10x10xf32>, vector<8x10xf32> -> vector<8x10xf32>
    %118 = arith.addf %113, %117 : vector<8x10xf32>
    %119 = vector.extract_strided_slice %32 {offsets = [128, 0], sizes = [8, 10], strides = [1, 1]} : vector<392x10xf32> to vector<8x10xf32>
    %c6_74 = arith.constant 6 : index
    %c0_75 = arith.constant 0 : index
    %c0_76 = arith.constant 0 : index
    %120 = vector.load %arg4[%c6_74, %c0_75, %c0_76] : memref<9x10x10xf32, #tpu.memory_space<vmem>>, vector<1x10x10xf32>
    %121 = vector.shape_cast %120 : vector<1x10x10xf32> to vector<10x10xf32>
    %cst_77 = arith.constant dense<0.000000e+00> : vector<8x10xf32>
    %122 = tpu.matmul %119, %121, %cst_77 {dimension_numbers = #tpu.dot_dimension_numbers<[1], [0], [0], [1], [0, 0, 1, 1], [], []>} : vector<8x10xf32>, vector<10x10xf32>, vector<8x10xf32> -> vector<8x10xf32>
    %123 = arith.addf %118, %122 : vector<8x10xf32>
    %124 = vector.extract_strided_slice %32 {offsets = [136, 0], sizes = [8, 10], strides = [1, 1]} : vector<392x10xf32> to vector<8x10xf32>
    %c7_78 = arith.constant 7 : index
    %c0_79 = arith.constant 0 : index
    %c0_80 = arith.constant 0 : index
    %125 = vector.load %arg4[%c7_78, %c0_79, %c0_80] : memref<9x10x10xf32, #tpu.memory_space<vmem>>, vector<1x10x10xf32>
    %126 = vector.shape_cast %125 : vector<1x10x10xf32> to vector<10x10xf32>
    %cst_81 = arith.constant dense<0.000000e+00> : vector<8x10xf32>
    %127 = tpu.matmul %124, %126, %cst_81 {dimension_numbers = #tpu.dot_dimension_numbers<[1], [0], [0], [1], [0, 0, 1, 1], [], []>} : vector<8x10xf32>, vector<10x10xf32>, vector<8x10xf32> -> vector<8x10xf32>
    %128 = arith.addf %123, %127 : vector<8x10xf32>
    %129 = vector.extract_strided_slice %32 {offsets = [144, 0], sizes = [8, 10], strides = [1, 1]} : vector<392x10xf32> to vector<8x10xf32>
    %c8_82 = arith.constant 8 : index
    %c0_83 = arith.constant 0 : index
    %c0_84 = arith.constant 0 : index
    %130 = vector.load %arg4[%c8_82, %c0_83, %c0_84] : memref<9x10x10xf32, #tpu.memory_space<vmem>>, vector<1x10x10xf32>
    %131 = vector.shape_cast %130 : vector<1x10x10xf32> to vector<10x10xf32>
    %cst_85 = arith.constant dense<0.000000e+00> : vector<8x10xf32>
    %132 = tpu.matmul %129, %131, %cst_85 {dimension_numbers = #tpu.dot_dimension_numbers<[1], [0], [0], [1], [0, 0, 1, 1], [], []>} : vector<8x10xf32>, vector<10x10xf32>, vector<8x10xf32> -> vector<8x10xf32>
    %133 = arith.addf %128, %132 : vector<8x10xf32>
    %cst_86 = arith.constant dense<0.000000e+00> : vector<10xf32>
    %134 = vector.multi_reduction <add>, %133, %cst_86 [0] : vector<8x10xf32> to vector<10xf32>
    %135 = vector.shape_cast %134 : vector<10xf32> to vector<1x10xf32>
    %136 = arith.addf %83, %135 : vector<1x10xf32>
    %137 = arith.mulf %133, %133 : vector<8x10xf32>
    %cst_87 = arith.constant dense<0.000000e+00> : vector<10xf32>
    %138 = vector.multi_reduction <add>, %137, %cst_87 [0] : vector<8x10xf32> to vector<10xf32>
    %139 = vector.shape_cast %138 : vector<10xf32> to vector<1x10xf32>
    %140 = arith.addf %87, %139 : vector<1x10xf32>
    %cst_88 = arith.constant 0.000000e+00 : f32
    %141 = vector.broadcast %cst_88 : f32 to vector<8x10xf32>
    %142 = vector.extract_strided_slice %32 {offsets = [32, 0], sizes = [8, 10], strides = [1, 1]} : vector<392x10xf32> to vector<8x10xf32>
    %c0_89 = arith.constant 0 : index
    %c0_90 = arith.constant 0 : index
    %c0_91 = arith.constant 0 : index
    %143 = vector.load %arg4[%c0_89, %c0_90, %c0_91] : memref<9x10x10xf32, #tpu.memory_space<vmem>>, vector<1x10x10xf32>
    %144 = vector.shape_cast %143 : vector<1x10x10xf32> to vector<10x10xf32>
    %cst_92 = arith.constant dense<0.000000e+00> : vector<8x10xf32>
    %145 = tpu.matmul %142, %144, %cst_92 {dimension_numbers = #tpu.dot_dimension_numbers<[1], [0], [0], [1], [0, 0, 1, 1], [], []>} : vector<8x10xf32>, vector<10x10xf32>, vector<8x10xf32> -> vector<8x10xf32>
    %146 = arith.addf %141, %145 : vector<8x10xf32>
    %147 = vector.extract_strided_slice %32 {offsets = [40, 0], sizes = [8, 10], strides = [1, 1]} : vector<392x10xf32> to vector<8x10xf32>
    %c1_93 = arith.constant 1 : index
    %c0_94 = arith.constant 0 : index
    %c0_95 = arith.constant 0 : index
    %148 = vector.load %arg4[%c1_93, %c0_94, %c0_95] : memref<9x10x10xf32, #tpu.memory_space<vmem>>, vector<1x10x10xf32>
    %149 = vector.shape_cast %148 : vector<1x10x10xf32> to vector<10x10xf32>
    %cst_96 = arith.constant dense<0.000000e+00> : vector<8x10xf32>
    %150 = tpu.matmul %147, %149, %cst_96 {dimension_numbers = #tpu.dot_dimension_numbers<[1], [0], [0], [1], [0, 0, 1, 1], [], []>} : vector<8x10xf32>, vector<10x10xf32>, vector<8x10xf32> -> vector<8x10xf32>
    %151 = arith.addf %146, %150 : vector<8x10xf32>
    %152 = vector.extract_strided_slice %32 {offsets = [48, 0], sizes = [8, 10], strides = [1, 1]} : vector<392x10xf32> to vector<8x10xf32>
    %c2_97 = arith.constant 2 : index
    %c0_98 = arith.constant 0 : index
    %c0_99 = arith.constant 0 : index
    %153 = vector.load %arg4[%c2_97, %c0_98, %c0_99] : memref<9x10x10xf32, #tpu.memory_space<vmem>>, vector<1x10x10xf32>
    %154 = vector.shape_cast %153 : vector<1x10x10xf32> to vector<10x10xf32>
    %cst_100 = arith.constant dense<0.000000e+00> : vector<8x10xf32>
    %155 = tpu.matmul %152, %154, %cst_100 {dimension_numbers = #tpu.dot_dimension_numbers<[1], [0], [0], [1], [0, 0, 1, 1], [], []>} : vector<8x10xf32>, vector<10x10xf32>, vector<8x10xf32> -> vector<8x10xf32>
    %156 = arith.addf %151, %155 : vector<8x10xf32>
    %157 = vector.extract_strided_slice %32 {offsets = [88, 0], sizes = [8, 10], strides = [1, 1]} : vector<392x10xf32> to vector<8x10xf32>
    %c3_101 = arith.constant 3 : index
    %c0_102 = arith.constant 0 : index
    %c0_103 = arith.constant 0 : index
    %158 = vector.load %arg4[%c3_101, %c0_102, %c0_103] : memref<9x10x10xf32, #tpu.memory_space<vmem>>, vector<1x10x10xf32>
    %159 = vector.shape_cast %158 : vector<1x10x10xf32> to vector<10x10xf32>
    %cst_104 = arith.constant dense<0.000000e+00> : vector<8x10xf32>
    %160 = tpu.matmul %157, %159, %cst_104 {dimension_numbers = #tpu.dot_dimension_numbers<[1], [0], [0], [1], [0, 0, 1, 1], [], []>} : vector<8x10xf32>, vector<10x10xf32>, vector<8x10xf32> -> vector<8x10xf32>
    %161 = arith.addf %156, %160 : vector<8x10xf32>
    %162 = vector.extract_strided_slice %32 {offsets = [96, 0], sizes = [8, 10], strides = [1, 1]} : vector<392x10xf32> to vector<8x10xf32>
    %c4_105 = arith.constant 4 : index
    %c0_106 = arith.constant 0 : index
    %c0_107 = arith.constant 0 : index
    %163 = vector.load %arg4[%c4_105, %c0_106, %c0_107] : memref<9x10x10xf32, #tpu.memory_space<vmem>>, vector<1x10x10xf32>
    %164 = vector.shape_cast %163 : vector<1x10x10xf32> to vector<10x10xf32>
    %cst_108 = arith.constant dense<0.000000e+00> : vector<8x10xf32>
    %165 = tpu.matmul %162, %164, %cst_108 {dimension_numbers = #tpu.dot_dimension_numbers<[1], [0], [0], [1], [0, 0, 1, 1], [], []>} : vector<8x10xf32>, vector<10x10xf32>, vector<8x10xf32> -> vector<8x10xf32>
    %166 = arith.addf %161, %165 : vector<8x10xf32>
    %167 = vector.extract_strided_slice %32 {offsets = [104, 0], sizes = [8, 10], strides = [1, 1]} : vector<392x10xf32> to vector<8x10xf32>
    %c5_109 = arith.constant 5 : index
    %c0_110 = arith.constant 0 : index
    %c0_111 = arith.constant 0 : index
    %168 = vector.load %arg4[%c5_109, %c0_110, %c0_111] : memref<9x10x10xf32, #tpu.memory_space<vmem>>, vector<1x10x10xf32>
    %169 = vector.shape_cast %168 : vector<1x10x10xf32> to vector<10x10xf32>
    %cst_112 = arith.constant dense<0.000000e+00> : vector<8x10xf32>
    %170 = tpu.matmul %167, %169, %cst_112 {dimension_numbers = #tpu.dot_dimension_numbers<[1], [0], [0], [1], [0, 0, 1, 1], [], []>} : vector<8x10xf32>, vector<10x10xf32>, vector<8x10xf32> -> vector<8x10xf32>
    %171 = arith.addf %166, %170 : vector<8x10xf32>
    %172 = vector.extract_strided_slice %32 {offsets = [144, 0], sizes = [8, 10], strides = [1, 1]} : vector<392x10xf32> to vector<8x10xf32>
    %c6_113 = arith.constant 6 : index
    %c0_114 = arith.constant 0 : index
    %c0_115 = arith.constant 0 : index
    %173 = vector.load %arg4[%c6_113, %c0_114, %c0_115] : memref<9x10x10xf32, #tpu.memory_space<vmem>>, vector<1x10x10xf32>
    %174 = vector.shape_cast %173 : vector<1x10x10xf32> to vector<10x10xf32>
    %cst_116 = arith.constant dense<0.000000e+00> : vector<8x10xf32>
    %175 = tpu.matmul %172, %174, %cst_116 {dimension_numbers = #tpu.dot_dimension_numbers<[1], [0], [0], [1], [0, 0, 1, 1], [], []>} : vector<8x10xf32>, vector<10x10xf32>, vector<8x10xf32> -> vector<8x10xf32>
    %176 = arith.addf %171, %175 : vector<8x10xf32>
    %177 = vector.extract_strided_slice %32 {offsets = [152, 0], sizes = [8, 10], strides = [1, 1]} : vector<392x10xf32> to vector<8x10xf32>
    %c7_117 = arith.constant 7 : index
    %c0_118 = arith.constant 0 : index
    %c0_119 = arith.constant 0 : index
    %178 = vector.load %arg4[%c7_117, %c0_118, %c0_119] : memref<9x10x10xf32, #tpu.memory_space<vmem>>, vector<1x10x10xf32>
    %179 = vector.shape_cast %178 : vector<1x10x10xf32> to vector<10x10xf32>
    %cst_120 = arith.constant dense<0.000000e+00> : vector<8x10xf32>
    %180 = tpu.matmul %177, %179, %cst_120 {dimension_numbers = #tpu.dot_dimension_numbers<[1], [0], [0], [1], [0, 0, 1, 1], [], []>} : vector<8x10xf32>, vector<10x10xf32>, vector<8x10xf32> -> vector<8x10xf32>
    %181 = arith.addf %176, %180 : vector<8x10xf32>
    %182 = vector.extract_strided_slice %32 {offsets = [160, 0], sizes = [8, 10], strides = [1, 1]} : vector<392x10xf32> to vector<8x10xf32>
    %c8_121 = arith.constant 8 : index
    %c0_122 = arith.constant 0 : index
    %c0_123 = arith.constant 0 : index
    %183 = vector.load %arg4[%c8_121, %c0_122, %c0_123] : memref<9x10x10xf32, #tpu.memory_space<vmem>>, vector<1x10x10xf32>
    %184 = vector.shape_cast %183 : vector<1x10x10xf32> to vector<10x10xf32>
    %cst_124 = arith.constant dense<0.000000e+00> : vector<8x10xf32>
    %185 = tpu.matmul %182, %184, %cst_124 {dimension_numbers = #tpu.dot_dimension_numbers<[1], [0], [0], [1], [0, 0, 1, 1], [], []>} : vector<8x10xf32>, vector<10x10xf32>, vector<8x10xf32> -> vector<8x10xf32>
    %186 = arith.addf %181, %185 : vector<8x10xf32>
    %cst_125 = arith.constant dense<0.000000e+00> : vector<10xf32>
    %187 = vector.multi_reduction <add>, %186, %cst_125 [0] : vector<8x10xf32> to vector<10xf32>
    %188 = vector.shape_cast %187 : vector<10xf32> to vector<1x10xf32>
    %189 = arith.addf %136, %188 : vector<1x10xf32>
    %190 = arith.mulf %186, %186 : vector<8x10xf32>
    %cst_126 = arith.constant dense<0.000000e+00> : vector<10xf32>
    %191 = vector.multi_reduction <add>, %190, %cst_126 [0] : vector<8x10xf32> to vector<10xf32>
    %192 = vector.shape_cast %191 : vector<10xf32> to vector<1x10xf32>
    %193 = arith.addf %140, %192 : vector<1x10xf32>
    %cst_127 = arith.constant 0.000000e+00 : f32
    %194 = vector.broadcast %cst_127 : f32 to vector<8x10xf32>
    %195 = vector.extract_strided_slice %32 {offsets = [112, 0], sizes = [8, 10], strides = [1, 1]} : vector<392x10xf32> to vector<8x10xf32>
    %c0_128 = arith.constant 0 : index
    %c0_129 = arith.constant 0 : index
    %c0_130 = arith.constant 0 : index
    %196 = vector.load %arg4[%c0_128, %c0_129, %c0_130] : memref<9x10x10xf32, #tpu.memory_space<vmem>>, vector<1x10x10xf32>
    %197 = vector.shape_cast %196 : vector<1x10x10xf32> to vector<10x10xf32>
    %cst_131 = arith.constant dense<0.000000e+00> : vector<8x10xf32>
    %198 = tpu.matmul %195, %197, %cst_131 {dimension_numbers = #tpu.dot_dimension_numbers<[1], [0], [0], [1], [0, 0, 1, 1], [], []>} : vector<8x10xf32>, vector<10x10xf32>, vector<8x10xf32> -> vector<8x10xf32>
    %199 = arith.addf %194, %198 : vector<8x10xf32>
    %200 = vector.extract_strided_slice %32 {offsets = [120, 0], sizes = [8, 10], strides = [1, 1]} : vector<392x10xf32> to vector<8x10xf32>
    %c1_132 = arith.constant 1 : index
    %c0_133 = arith.constant 0 : index
    %c0_134 = arith.constant 0 : index
    %201 = vector.load %arg4[%c1_132, %c0_133, %c0_134] : memref<9x10x10xf32, #tpu.memory_space<vmem>>, vector<1x10x10xf32>
    %202 = vector.shape_cast %201 : vector<1x10x10xf32> to vector<10x10xf32>
    %cst_135 = arith.constant dense<0.000000e+00> : vector<8x10xf32>
    %203 = tpu.matmul %200, %202, %cst_135 {dimension_numbers = #tpu.dot_dimension_numbers<[1], [0], [0], [1], [0, 0, 1, 1], [], []>} : vector<8x10xf32>, vector<10x10xf32>, vector<8x10xf32> -> vector<8x10xf32>
    %204 = arith.addf %199, %203 : vector<8x10xf32>
    %205 = vector.extract_strided_slice %32 {offsets = [128, 0], sizes = [8, 10], strides = [1, 1]} : vector<392x10xf32> to vector<8x10xf32>
    %c2_136 = arith.constant 2 : index
    %c0_137 = arith.constant 0 : index
    %c0_138 = arith.constant 0 : index
    %206 = vector.load %arg4[%c2_136, %c0_137, %c0_138] : memref<9x10x10xf32, #tpu.memory_space<vmem>>, vector<1x10x10xf32>
    %207 = vector.shape_cast %206 : vector<1x10x10xf32> to vector<10x10xf32>
    %cst_139 = arith.constant dense<0.000000e+00> : vector<8x10xf32>
    %208 = tpu.matmul %205, %207, %cst_139 {dimension_numbers = #tpu.dot_dimension_numbers<[1], [0], [0], [1], [0, 0, 1, 1], [], []>} : vector<8x10xf32>, vector<10x10xf32>, vector<8x10xf32> -> vector<8x10xf32>
    %209 = arith.addf %204, %208 : vector<8x10xf32>
    %210 = vector.extract_strided_slice %32 {offsets = [168, 0], sizes = [8, 10], strides = [1, 1]} : vector<392x10xf32> to vector<8x10xf32>
    %c3_140 = arith.constant 3 : index
    %c0_141 = arith.constant 0 : index
    %c0_142 = arith.constant 0 : index
    %211 = vector.load %arg4[%c3_140, %c0_141, %c0_142] : memref<9x10x10xf32, #tpu.memory_space<vmem>>, vector<1x10x10xf32>
    %212 = vector.shape_cast %211 : vector<1x10x10xf32> to vector<10x10xf32>
    %cst_143 = arith.constant dense<0.000000e+00> : vector<8x10xf32>
    %213 = tpu.matmul %210, %212, %cst_143 {dimension_numbers = #tpu.dot_dimension_numbers<[1], [0], [0], [1], [0, 0, 1, 1], [], []>} : vector<8x10xf32>, vector<10x10xf32>, vector<8x10xf32> -> vector<8x10xf32>
    %214 = arith.addf %209, %213 : vector<8x10xf32>
    %215 = vector.extract_strided_slice %32 {offsets = [176, 0], sizes = [8, 10], strides = [1, 1]} : vector<392x10xf32> to vector<8x10xf32>
    %c4_144 = arith.constant 4 : index
    %c0_145 = arith.constant 0 : index
    %c0_146 = arith.constant 0 : index
    %216 = vector.load %arg4[%c4_144, %c0_145, %c0_146] : memref<9x10x10xf32, #tpu.memory_space<vmem>>, vector<1x10x10xf32>
    %217 = vector.shape_cast %216 : vector<1x10x10xf32> to vector<10x10xf32>
    %cst_147 = arith.constant dense<0.000000e+00> : vector<8x10xf32>
    %218 = tpu.matmul %215, %217, %cst_147 {dimension_numbers = #tpu.dot_dimension_numbers<[1], [0], [0], [1], [0, 0, 1, 1], [], []>} : vector<8x10xf32>, vector<10x10xf32>, vector<8x10xf32> -> vector<8x10xf32>
    %219 = arith.addf %214, %218 : vector<8x10xf32>
    %220 = vector.extract_strided_slice %32 {offsets = [184, 0], sizes = [8, 10], strides = [1, 1]} : vector<392x10xf32> to vector<8x10xf32>
    %c5_148 = arith.constant 5 : index
    %c0_149 = arith.constant 0 : index
    %c0_150 = arith.constant 0 : index
    %221 = vector.load %arg4[%c5_148, %c0_149, %c0_150] : memref<9x10x10xf32, #tpu.memory_space<vmem>>, vector<1x10x10xf32>
    %222 = vector.shape_cast %221 : vector<1x10x10xf32> to vector<10x10xf32>
    %cst_151 = arith.constant dense<0.000000e+00> : vector<8x10xf32>
    %223 = tpu.matmul %220, %222, %cst_151 {dimension_numbers = #tpu.dot_dimension_numbers<[1], [0], [0], [1], [0, 0, 1, 1], [], []>} : vector<8x10xf32>, vector<10x10xf32>, vector<8x10xf32> -> vector<8x10xf32>
    %224 = arith.addf %219, %223 : vector<8x10xf32>
    %225 = vector.extract_strided_slice %32 {offsets = [224, 0], sizes = [8, 10], strides = [1, 1]} : vector<392x10xf32> to vector<8x10xf32>
    %c6_152 = arith.constant 6 : index
    %c0_153 = arith.constant 0 : index
    %c0_154 = arith.constant 0 : index
    %226 = vector.load %arg4[%c6_152, %c0_153, %c0_154] : memref<9x10x10xf32, #tpu.memory_space<vmem>>, vector<1x10x10xf32>
    %227 = vector.shape_cast %226 : vector<1x10x10xf32> to vector<10x10xf32>
    %cst_155 = arith.constant dense<0.000000e+00> : vector<8x10xf32>
    %228 = tpu.matmul %225, %227, %cst_155 {dimension_numbers = #tpu.dot_dimension_numbers<[1], [0], [0], [1], [0, 0, 1, 1], [], []>} : vector<8x10xf32>, vector<10x10xf32>, vector<8x10xf32> -> vector<8x10xf32>
    %229 = arith.addf %224, %228 : vector<8x10xf32>
    %230 = vector.extract_strided_slice %32 {offsets = [232, 0], sizes = [8, 10], strides = [1, 1]} : vector<392x10xf32> to vector<8x10xf32>
    %c7_156 = arith.constant 7 : index
    %c0_157 = arith.constant 0 : index
    %c0_158 = arith.constant 0 : index
    %231 = vector.load %arg4[%c7_156, %c0_157, %c0_158] : memref<9x10x10xf32, #tpu.memory_space<vmem>>, vector<1x10x10xf32>
    %232 = vector.shape_cast %231 : vector<1x10x10xf32> to vector<10x10xf32>
    %cst_159 = arith.constant dense<0.000000e+00> : vector<8x10xf32>
    %233 = tpu.matmul %230, %232, %cst_159 {dimension_numbers = #tpu.dot_dimension_numbers<[1], [0], [0], [1], [0, 0, 1, 1], [], []>} : vector<8x10xf32>, vector<10x10xf32>, vector<8x10xf32> -> vector<8x10xf32>
    %234 = arith.addf %229, %233 : vector<8x10xf32>
    %235 = vector.extract_strided_slice %32 {offsets = [240, 0], sizes = [8, 10], strides = [1, 1]} : vector<392x10xf32> to vector<8x10xf32>
    %c8_160 = arith.constant 8 : index
    %c0_161 = arith.constant 0 : index
    %c0_162 = arith.constant 0 : index
    %236 = vector.load %arg4[%c8_160, %c0_161, %c0_162] : memref<9x10x10xf32, #tpu.memory_space<vmem>>, vector<1x10x10xf32>
    %237 = vector.shape_cast %236 : vector<1x10x10xf32> to vector<10x10xf32>
    %cst_163 = arith.constant dense<0.000000e+00> : vector<8x10xf32>
    %238 = tpu.matmul %235, %237, %cst_163 {dimension_numbers = #tpu.dot_dimension_numbers<[1], [0], [0], [1], [0, 0, 1, 1], [], []>} : vector<8x10xf32>, vector<10x10xf32>, vector<8x10xf32> -> vector<8x10xf32>
    %239 = arith.addf %234, %238 : vector<8x10xf32>
    %cst_164 = arith.constant dense<0.000000e+00> : vector<10xf32>
    %240 = vector.multi_reduction <add>, %239, %cst_164 [0] : vector<8x10xf32> to vector<10xf32>
    %241 = vector.shape_cast %240 : vector<10xf32> to vector<1x10xf32>
    %242 = arith.addf %189, %241 : vector<1x10xf32>
    %243 = arith.mulf %239, %239 : vector<8x10xf32>
    %cst_165 = arith.constant dense<0.000000e+00> : vector<10xf32>
    %244 = vector.multi_reduction <add>, %243, %cst_165 [0] : vector<8x10xf32> to vector<10xf32>
    %245 = vector.shape_cast %244 : vector<10xf32> to vector<1x10xf32>
    %246 = arith.addf %193, %245 : vector<1x10xf32>
    %cst_166 = arith.constant 0.000000e+00 : f32
    %247 = vector.broadcast %cst_166 : f32 to vector<8x10xf32>
    %248 = vector.extract_strided_slice %32 {offsets = [128, 0], sizes = [8, 10], strides = [1, 1]} : vector<392x10xf32> to vector<8x10xf32>
    %c0_167 = arith.constant 0 : index
    %c0_168 = arith.constant 0 : index
    %c0_169 = arith.constant 0 : index
    %249 = vector.load %arg4[%c0_167, %c0_168, %c0_169] : memref<9x10x10xf32, #tpu.memory_space<vmem>>, vector<1x10x10xf32>
    %250 = vector.shape_cast %249 : vector<1x10x10xf32> to vector<10x10xf32>
    %cst_170 = arith.constant dense<0.000000e+00> : vector<8x10xf32>
    %251 = tpu.matmul %248, %250, %cst_170 {dimension_numbers = #tpu.dot_dimension_numbers<[1], [0], [0], [1], [0, 0, 1, 1], [], []>} : vector<8x10xf32>, vector<10x10xf32>, vector<8x10xf32> -> vector<8x10xf32>
    %252 = arith.addf %247, %251 : vector<8x10xf32>
    %253 = vector.extract_strided_slice %32 {offsets = [136, 0], sizes = [8, 10], strides = [1, 1]} : vector<392x10xf32> to vector<8x10xf32>
    %c1_171 = arith.constant 1 : index
    %c0_172 = arith.constant 0 : index
    %c0_173 = arith.constant 0 : index
    %254 = vector.load %arg4[%c1_171, %c0_172, %c0_173] : memref<9x10x10xf32, #tpu.memory_space<vmem>>, vector<1x10x10xf32>
    %255 = vector.shape_cast %254 : vector<1x10x10xf32> to vector<10x10xf32>
    %cst_174 = arith.constant dense<0.000000e+00> : vector<8x10xf32>
    %256 = tpu.matmul %253, %255, %cst_174 {dimension_numbers = #tpu.dot_dimension_numbers<[1], [0], [0], [1], [0, 0, 1, 1], [], []>} : vector<8x10xf32>, vector<10x10xf32>, vector<8x10xf32> -> vector<8x10xf32>
    %257 = arith.addf %252, %256 : vector<8x10xf32>
    %258 = vector.extract_strided_slice %32 {offsets = [144, 0], sizes = [8, 10], strides = [1, 1]} : vector<392x10xf32> to vector<8x10xf32>
    %c2_175 = arith.constant 2 : index
    %c0_176 = arith.constant 0 : index
    %c0_177 = arith.constant 0 : index
    %259 = vector.load %arg4[%c2_175, %c0_176, %c0_177] : memref<9x10x10xf32, #tpu.memory_space<vmem>>, vector<1x10x10xf32>
    %260 = vector.shape_cast %259 : vector<1x10x10xf32> to vector<10x10xf32>
    %cst_178 = arith.constant dense<0.000000e+00> : vector<8x10xf32>
    %261 = tpu.matmul %258, %260, %cst_178 {dimension_numbers = #tpu.dot_dimension_numbers<[1], [0], [0], [1], [0, 0, 1, 1], [], []>} : vector<8x10xf32>, vector<10x10xf32>, vector<8x10xf32> -> vector<8x10xf32>
    %262 = arith.addf %257, %261 : vector<8x10xf32>
    %263 = vector.extract_strided_slice %32 {offsets = [184, 0], sizes = [8, 10], strides = [1, 1]} : vector<392x10xf32> to vector<8x10xf32>
    %c3_179 = arith.constant 3 : index
    %c0_180 = arith.constant 0 : index
    %c0_181 = arith.constant 0 : index
    %264 = vector.load %arg4[%c3_179, %c0_180, %c0_181] : memref<9x10x10xf32, #tpu.memory_space<vmem>>, vector<1x10x10xf32>
    %265 = vector.shape_cast %264 : vector<1x10x10xf32> to vector<10x10xf32>
    %cst_182 = arith.constant dense<0.000000e+00> : vector<8x10xf32>
    %266 = tpu.matmul %263, %265, %cst_182 {dimension_numbers = #tpu.dot_dimension_numbers<[1], [0], [0], [1], [0, 0, 1, 1], [], []>} : vector<8x10xf32>, vector<10x10xf32>, vector<8x10xf32> -> vector<8x10xf32>
    %267 = arith.addf %262, %266 : vector<8x10xf32>
    %268 = vector.extract_strided_slice %32 {offsets = [192, 0], sizes = [8, 10], strides = [1, 1]} : vector<392x10xf32> to vector<8x10xf32>
    %c4_183 = arith.constant 4 : index
    %c0_184 = arith.constant 0 : index
    %c0_185 = arith.constant 0 : index
    %269 = vector.load %arg4[%c4_183, %c0_184, %c0_185] : memref<9x10x10xf32, #tpu.memory_space<vmem>>, vector<1x10x10xf32>
    %270 = vector.shape_cast %269 : vector<1x10x10xf32> to vector<10x10xf32>
    %cst_186 = arith.constant dense<0.000000e+00> : vector<8x10xf32>
    %271 = tpu.matmul %268, %270, %cst_186 {dimension_numbers = #tpu.dot_dimension_numbers<[1], [0], [0], [1], [0, 0, 1, 1], [], []>} : vector<8x10xf32>, vector<10x10xf32>, vector<8x10xf32> -> vector<8x10xf32>
    %272 = arith.addf %267, %271 : vector<8x10xf32>
    %273 = vector.extract_strided_slice %32 {offsets = [200, 0], sizes = [8, 10], strides = [1, 1]} : vector<392x10xf32> to vector<8x10xf32>
    %c5_187 = arith.constant 5 : index
    %c0_188 = arith.constant 0 : index
    %c0_189 = arith.constant 0 : index
    %274 = vector.load %arg4[%c5_187, %c0_188, %c0_189] : memref<9x10x10xf32, #tpu.memory_space<vmem>>, vector<1x10x10xf32>
    %275 = vector.shape_cast %274 : vector<1x10x10xf32> to vector<10x10xf32>
    %cst_190 = arith.constant dense<0.000000e+00> : vector<8x10xf32>
    %276 = tpu.matmul %273, %275, %cst_190 {dimension_numbers = #tpu.dot_dimension_numbers<[1], [0], [0], [1], [0, 0, 1, 1], [], []>} : vector<8x10xf32>, vector<10x10xf32>, vector<8x10xf32> -> vector<8x10xf32>
    %277 = arith.addf %272, %276 : vector<8x10xf32>
    %278 = vector.extract_strided_slice %32 {offsets = [240, 0], sizes = [8, 10], strides = [1, 1]} : vector<392x10xf32> to vector<8x10xf32>
    %c6_191 = arith.constant 6 : index
    %c0_192 = arith.constant 0 : index
    %c0_193 = arith.constant 0 : index
    %279 = vector.load %arg4[%c6_191, %c0_192, %c0_193] : memref<9x10x10xf32, #tpu.memory_space<vmem>>, vector<1x10x10xf32>
    %280 = vector.shape_cast %279 : vector<1x10x10xf32> to vector<10x10xf32>
    %cst_194 = arith.constant dense<0.000000e+00> : vector<8x10xf32>
    %281 = tpu.matmul %278, %280, %cst_194 {dimension_numbers = #tpu.dot_dimension_numbers<[1], [0], [0], [1], [0, 0, 1, 1], [], []>} : vector<8x10xf32>, vector<10x10xf32>, vector<8x10xf32> -> vector<8x10xf32>
    %282 = arith.addf %277, %281 : vector<8x10xf32>
    %283 = vector.extract_strided_slice %32 {offsets = [248, 0], sizes = [8, 10], strides = [1, 1]} : vector<392x10xf32> to vector<8x10xf32>
    %c7_195 = arith.constant 7 : index
    %c0_196 = arith.constant 0 : index
    %c0_197 = arith.constant 0 : index
    %284 = vector.load %arg4[%c7_195, %c0_196, %c0_197] : memref<9x10x10xf32, #tpu.memory_space<vmem>>, vector<1x10x10xf32>
    %285 = vector.shape_cast %284 : vector<1x10x10xf32> to vector<10x10xf32>
    %cst_198 = arith.constant dense<0.000000e+00> : vector<8x10xf32>
    %286 = tpu.matmul %283, %285, %cst_198 {dimension_numbers = #tpu.dot_dimension_numbers<[1], [0], [0], [1], [0, 0, 1, 1], [], []>} : vector<8x10xf32>, vector<10x10xf32>, vector<8x10xf32> -> vector<8x10xf32>
    %287 = arith.addf %282, %286 : vector<8x10xf32>
    %288 = vector.extract_strided_slice %32 {offsets = [256, 0], sizes = [8, 10], strides = [1, 1]} : vector<392x10xf32> to vector<8x10xf32>
    %c8_199 = arith.constant 8 : index
    %c0_200 = arith.constant 0 : index
    %c0_201 = arith.constant 0 : index
    %289 = vector.load %arg4[%c8_199, %c0_200, %c0_201] : memref<9x10x10xf32, #tpu.memory_space<vmem>>, vector<1x10x10xf32>
    %290 = vector.shape_cast %289 : vector<1x10x10xf32> to vector<10x10xf32>
    %cst_202 = arith.constant dense<0.000000e+00> : vector<8x10xf32>
    %291 = tpu.matmul %288, %290, %cst_202 {dimension_numbers = #tpu.dot_dimension_numbers<[1], [0], [0], [1], [0, 0, 1, 1], [], []>} : vector<8x10xf32>, vector<10x10xf32>, vector<8x10xf32> -> vector<8x10xf32>
    %292 = arith.addf %287, %291 : vector<8x10xf32>
    %cst_203 = arith.constant dense<0.000000e+00> : vector<10xf32>
    %293 = vector.multi_reduction <add>, %292, %cst_203 [0] : vector<8x10xf32> to vector<10xf32>
    %294 = vector.shape_cast %293 : vector<10xf32> to vector<1x10xf32>
    %295 = arith.addf %242, %294 : vector<1x10xf32>
    %296 = arith.mulf %292, %292 : vector<8x10xf32>
    %cst_204 = arith.constant dense<0.000000e+00> : vector<10xf32>
    %297 = vector.multi_reduction <add>, %296, %cst_204 [0] : vector<8x10xf32> to vector<10xf32>
    %298 = vector.shape_cast %297 : vector<10xf32> to vector<1x10xf32>
    %299 = arith.addf %246, %298 : vector<1x10xf32>
    %cst_205 = arith.constant 0.000000e+00 : f32
    %300 = vector.broadcast %cst_205 : f32 to vector<8x10xf32>
    %301 = vector.extract_strided_slice %32 {offsets = [144, 0], sizes = [8, 10], strides = [1, 1]} : vector<392x10xf32> to vector<8x10xf32>
    %c0_206 = arith.constant 0 : index
    %c0_207 = arith.constant 0 : index
    %c0_208 = arith.constant 0 : index
    %302 = vector.load %arg4[%c0_206, %c0_207, %c0_208] : memref<9x10x10xf32, #tpu.memory_space<vmem>>, vector<1x10x10xf32>
    %303 = vector.shape_cast %302 : vector<1x10x10xf32> to vector<10x10xf32>
    %cst_209 = arith.constant dense<0.000000e+00> : vector<8x10xf32>
    %304 = tpu.matmul %301, %303, %cst_209 {dimension_numbers = #tpu.dot_dimension_numbers<[1], [0], [0], [1], [0, 0, 1, 1], [], []>} : vector<8x10xf32>, vector<10x10xf32>, vector<8x10xf32> -> vector<8x10xf32>
    %305 = arith.addf %300, %304 : vector<8x10xf32>
    %306 = vector.extract_strided_slice %32 {offsets = [152, 0], sizes = [8, 10], strides = [1, 1]} : vector<392x10xf32> to vector<8x10xf32>
    %c1_210 = arith.constant 1 : index
    %c0_211 = arith.constant 0 : index
    %c0_212 = arith.constant 0 : index
    %307 = vector.load %arg4[%c1_210, %c0_211, %c0_212] : memref<9x10x10xf32, #tpu.memory_space<vmem>>, vector<1x10x10xf32>
    %308 = vector.shape_cast %307 : vector<1x10x10xf32> to vector<10x10xf32>
    %cst_213 = arith.constant dense<0.000000e+00> : vector<8x10xf32>
    %309 = tpu.matmul %306, %308, %cst_213 {dimension_numbers = #tpu.dot_dimension_numbers<[1], [0], [0], [1], [0, 0, 1, 1], [], []>} : vector<8x10xf32>, vector<10x10xf32>, vector<8x10xf32> -> vector<8x10xf32>
    %310 = arith.addf %305, %309 : vector<8x10xf32>
    %311 = vector.extract_strided_slice %32 {offsets = [160, 0], sizes = [8, 10], strides = [1, 1]} : vector<392x10xf32> to vector<8x10xf32>
    %c2_214 = arith.constant 2 : index
    %c0_215 = arith.constant 0 : index
    %c0_216 = arith.constant 0 : index
    %312 = vector.load %arg4[%c2_214, %c0_215, %c0_216] : memref<9x10x10xf32, #tpu.memory_space<vmem>>, vector<1x10x10xf32>
    %313 = vector.shape_cast %312 : vector<1x10x10xf32> to vector<10x10xf32>
    %cst_217 = arith.constant dense<0.000000e+00> : vector<8x10xf32>
    %314 = tpu.matmul %311, %313, %cst_217 {dimension_numbers = #tpu.dot_dimension_numbers<[1], [0], [0], [1], [0, 0, 1, 1], [], []>} : vector<8x10xf32>, vector<10x10xf32>, vector<8x10xf32> -> vector<8x10xf32>
    %315 = arith.addf %310, %314 : vector<8x10xf32>
    %316 = vector.extract_strided_slice %32 {offsets = [200, 0], sizes = [8, 10], strides = [1, 1]} : vector<392x10xf32> to vector<8x10xf32>
    %c3_218 = arith.constant 3 : index
    %c0_219 = arith.constant 0 : index
    %c0_220 = arith.constant 0 : index
    %317 = vector.load %arg4[%c3_218, %c0_219, %c0_220] : memref<9x10x10xf32, #tpu.memory_space<vmem>>, vector<1x10x10xf32>
    %318 = vector.shape_cast %317 : vector<1x10x10xf32> to vector<10x10xf32>
    %cst_221 = arith.constant dense<0.000000e+00> : vector<8x10xf32>
    %319 = tpu.matmul %316, %318, %cst_221 {dimension_numbers = #tpu.dot_dimension_numbers<[1], [0], [0], [1], [0, 0, 1, 1], [], []>} : vector<8x10xf32>, vector<10x10xf32>, vector<8x10xf32> -> vector<8x10xf32>
    %320 = arith.addf %315, %319 : vector<8x10xf32>
    %321 = vector.extract_strided_slice %32 {offsets = [208, 0], sizes = [8, 10], strides = [1, 1]} : vector<392x10xf32> to vector<8x10xf32>
    %c4_222 = arith.constant 4 : index
    %c0_223 = arith.constant 0 : index
    %c0_224 = arith.constant 0 : index
    %322 = vector.load %arg4[%c4_222, %c0_223, %c0_224] : memref<9x10x10xf32, #tpu.memory_space<vmem>>, vector<1x10x10xf32>
    %323 = vector.shape_cast %322 : vector<1x10x10xf32> to vector<10x10xf32>
    %cst_225 = arith.constant dense<0.000000e+00> : vector<8x10xf32>
    %324 = tpu.matmul %321, %323, %cst_225 {dimension_numbers = #tpu.dot_dimension_numbers<[1], [0], [0], [1], [0, 0, 1, 1], [], []>} : vector<8x10xf32>, vector<10x10xf32>, vector<8x10xf32> -> vector<8x10xf32>
    %325 = arith.addf %320, %324 : vector<8x10xf32>
    %326 = vector.extract_strided_slice %32 {offsets = [216, 0], sizes = [8, 10], strides = [1, 1]} : vector<392x10xf32> to vector<8x10xf32>
    %c5_226 = arith.constant 5 : index
    %c0_227 = arith.constant 0 : index
    %c0_228 = arith.constant 0 : index
    %327 = vector.load %arg4[%c5_226, %c0_227, %c0_228] : memref<9x10x10xf32, #tpu.memory_space<vmem>>, vector<1x10x10xf32>
    %328 = vector.shape_cast %327 : vector<1x10x10xf32> to vector<10x10xf32>
    %cst_229 = arith.constant dense<0.000000e+00> : vector<8x10xf32>
    %329 = tpu.matmul %326, %328, %cst_229 {dimension_numbers = #tpu.dot_dimension_numbers<[1], [0], [0], [1], [0, 0, 1, 1], [], []>} : vector<8x10xf32>, vector<10x10xf32>, vector<8x10xf32> -> vector<8x10xf32>
    %330 = arith.addf %325, %329 : vector<8x10xf32>
    %331 = vector.extract_strided_slice %32 {offsets = [256, 0], sizes = [8, 10], strides = [1, 1]} : vector<392x10xf32> to vector<8x10xf32>
    %c6_230 = arith.constant 6 : index
    %c0_231 = arith.constant 0 : index
    %c0_232 = arith.constant 0 : index
    %332 = vector.load %arg4[%c6_230, %c0_231, %c0_232] : memref<9x10x10xf32, #tpu.memory_space<vmem>>, vector<1x10x10xf32>
    %333 = vector.shape_cast %332 : vector<1x10x10xf32> to vector<10x10xf32>
    %cst_233 = arith.constant dense<0.000000e+00> : vector<8x10xf32>
    %334 = tpu.matmul %331, %333, %cst_233 {dimension_numbers = #tpu.dot_dimension_numbers<[1], [0], [0], [1], [0, 0, 1, 1], [], []>} : vector<8x10xf32>, vector<10x10xf32>, vector<8x10xf32> -> vector<8x10xf32>
    %335 = arith.addf %330, %334 : vector<8x10xf32>
    %336 = vector.extract_strided_slice %32 {offsets = [264, 0], sizes = [8, 10], strides = [1, 1]} : vector<392x10xf32> to vector<8x10xf32>
    %c7_234 = arith.constant 7 : index
    %c0_235 = arith.constant 0 : index
    %c0_236 = arith.constant 0 : index
    %337 = vector.load %arg4[%c7_234, %c0_235, %c0_236] : memref<9x10x10xf32, #tpu.memory_space<vmem>>, vector<1x10x10xf32>
    %338 = vector.shape_cast %337 : vector<1x10x10xf32> to vector<10x10xf32>
    %cst_237 = arith.constant dense<0.000000e+00> : vector<8x10xf32>
    %339 = tpu.matmul %336, %338, %cst_237 {dimension_numbers = #tpu.dot_dimension_numbers<[1], [0], [0], [1], [0, 0, 1, 1], [], []>} : vector<8x10xf32>, vector<10x10xf32>, vector<8x10xf32> -> vector<8x10xf32>
    %340 = arith.addf %335, %339 : vector<8x10xf32>
    %341 = vector.extract_strided_slice %32 {offsets = [272, 0], sizes = [8, 10], strides = [1, 1]} : vector<392x10xf32> to vector<8x10xf32>
    %c8_238 = arith.constant 8 : index
    %c0_239 = arith.constant 0 : index
    %c0_240 = arith.constant 0 : index
    %342 = vector.load %arg4[%c8_238, %c0_239, %c0_240] : memref<9x10x10xf32, #tpu.memory_space<vmem>>, vector<1x10x10xf32>
    %343 = vector.shape_cast %342 : vector<1x10x10xf32> to vector<10x10xf32>
    %cst_241 = arith.constant dense<0.000000e+00> : vector<8x10xf32>
    %344 = tpu.matmul %341, %343, %cst_241 {dimension_numbers = #tpu.dot_dimension_numbers<[1], [0], [0], [1], [0, 0, 1, 1], [], []>} : vector<8x10xf32>, vector<10x10xf32>, vector<8x10xf32> -> vector<8x10xf32>
    %345 = arith.addf %340, %344 : vector<8x10xf32>
    %cst_242 = arith.constant dense<0.000000e+00> : vector<10xf32>
    %346 = vector.multi_reduction <add>, %345, %cst_242 [0] : vector<8x10xf32> to vector<10xf32>
    %347 = vector.shape_cast %346 : vector<10xf32> to vector<1x10xf32>
    %348 = arith.addf %295, %347 : vector<1x10xf32>
    %349 = arith.mulf %345, %345 : vector<8x10xf32>
    %cst_243 = arith.constant dense<0.000000e+00> : vector<10xf32>
    %350 = vector.multi_reduction <add>, %349, %cst_243 [0] : vector<8x10xf32> to vector<10xf32>
    %351 = vector.shape_cast %350 : vector<10xf32> to vector<1x10xf32>
    %352 = arith.addf %299, %351 : vector<1x10xf32>
    %cst_244 = arith.constant 0.000000e+00 : f32
    %353 = vector.broadcast %cst_244 : f32 to vector<8x10xf32>
    %354 = vector.extract_strided_slice %32 {offsets = [224, 0], sizes = [8, 10], strides = [1, 1]} : vector<392x10xf32> to vector<8x10xf32>
    %c0_245 = arith.constant 0 : index
    %c0_246 = arith.constant 0 : index
    %c0_247 = arith.constant 0 : index
    %355 = vector.load %arg4[%c0_245, %c0_246, %c0_247] : memref<9x10x10xf32, #tpu.memory_space<vmem>>, vector<1x10x10xf32>
    %356 = vector.shape_cast %355 : vector<1x10x10xf32> to vector<10x10xf32>
    %cst_248 = arith.constant dense<0.000000e+00> : vector<8x10xf32>
    %357 = tpu.matmul %354, %356, %cst_248 {dimension_numbers = #tpu.dot_dimension_numbers<[1], [0], [0], [1], [0, 0, 1, 1], [], []>} : vector<8x10xf32>, vector<10x10xf32>, vector<8x10xf32> -> vector<8x10xf32>
    %358 = arith.addf %353, %357 : vector<8x10xf32>
    %359 = vector.extract_strided_slice %32 {offsets = [232, 0], sizes = [8, 10], strides = [1, 1]} : vector<392x10xf32> to vector<8x10xf32>
    %c1_249 = arith.constant 1 : index
    %c0_250 = arith.constant 0 : index
    %c0_251 = arith.constant 0 : index
    %360 = vector.load %arg4[%c1_249, %c0_250, %c0_251] : memref<9x10x10xf32, #tpu.memory_space<vmem>>, vector<1x10x10xf32>
    %361 = vector.shape_cast %360 : vector<1x10x10xf32> to vector<10x10xf32>
    %cst_252 = arith.constant dense<0.000000e+00> : vector<8x10xf32>
    %362 = tpu.matmul %359, %361, %cst_252 {dimension_numbers = #tpu.dot_dimension_numbers<[1], [0], [0], [1], [0, 0, 1, 1], [], []>} : vector<8x10xf32>, vector<10x10xf32>, vector<8x10xf32> -> vector<8x10xf32>
    %363 = arith.addf %358, %362 : vector<8x10xf32>
    %364 = vector.extract_strided_slice %32 {offsets = [240, 0], sizes = [8, 10], strides = [1, 1]} : vector<392x10xf32> to vector<8x10xf32>
    %c2_253 = arith.constant 2 : index
    %c0_254 = arith.constant 0 : index
    %c0_255 = arith.constant 0 : index
    %365 = vector.load %arg4[%c2_253, %c0_254, %c0_255] : memref<9x10x10xf32, #tpu.memory_space<vmem>>, vector<1x10x10xf32>
    %366 = vector.shape_cast %365 : vector<1x10x10xf32> to vector<10x10xf32>
    %cst_256 = arith.constant dense<0.000000e+00> : vector<8x10xf32>
    %367 = tpu.matmul %364, %366, %cst_256 {dimension_numbers = #tpu.dot_dimension_numbers<[1], [0], [0], [1], [0, 0, 1, 1], [], []>} : vector<8x10xf32>, vector<10x10xf32>, vector<8x10xf32> -> vector<8x10xf32>
    %368 = arith.addf %363, %367 : vector<8x10xf32>
    %369 = vector.extract_strided_slice %32 {offsets = [280, 0], sizes = [8, 10], strides = [1, 1]} : vector<392x10xf32> to vector<8x10xf32>
    %c3_257 = arith.constant 3 : index
    %c0_258 = arith.constant 0 : index
    %c0_259 = arith.constant 0 : index
    %370 = vector.load %arg4[%c3_257, %c0_258, %c0_259] : memref<9x10x10xf32, #tpu.memory_space<vmem>>, vector<1x10x10xf32>
    %371 = vector.shape_cast %370 : vector<1x10x10xf32> to vector<10x10xf32>
    %cst_260 = arith.constant dense<0.000000e+00> : vector<8x10xf32>
    %372 = tpu.matmul %369, %371, %cst_260 {dimension_numbers = #tpu.dot_dimension_numbers<[1], [0], [0], [1], [0, 0, 1, 1], [], []>} : vector<8x10xf32>, vector<10x10xf32>, vector<8x10xf32> -> vector<8x10xf32>
    %373 = arith.addf %368, %372 : vector<8x10xf32>
    %374 = vector.extract_strided_slice %32 {offsets = [288, 0], sizes = [8, 10], strides = [1, 1]} : vector<392x10xf32> to vector<8x10xf32>
    %c4_261 = arith.constant 4 : index
    %c0_262 = arith.constant 0 : index
    %c0_263 = arith.constant 0 : index
    %375 = vector.load %arg4[%c4_261, %c0_262, %c0_263] : memref<9x10x10xf32, #tpu.memory_space<vmem>>, vector<1x10x10xf32>
    %376 = vector.shape_cast %375 : vector<1x10x10xf32> to vector<10x10xf32>
    %cst_264 = arith.constant dense<0.000000e+00> : vector<8x10xf32>
    %377 = tpu.matmul %374, %376, %cst_264 {dimension_numbers = #tpu.dot_dimension_numbers<[1], [0], [0], [1], [0, 0, 1, 1], [], []>} : vector<8x10xf32>, vector<10x10xf32>, vector<8x10xf32> -> vector<8x10xf32>
    %378 = arith.addf %373, %377 : vector<8x10xf32>
    %379 = vector.extract_strided_slice %32 {offsets = [296, 0], sizes = [8, 10], strides = [1, 1]} : vector<392x10xf32> to vector<8x10xf32>
    %c5_265 = arith.constant 5 : index
    %c0_266 = arith.constant 0 : index
    %c0_267 = arith.constant 0 : index
    %380 = vector.load %arg4[%c5_265, %c0_266, %c0_267] : memref<9x10x10xf32, #tpu.memory_space<vmem>>, vector<1x10x10xf32>
    %381 = vector.shape_cast %380 : vector<1x10x10xf32> to vector<10x10xf32>
    %cst_268 = arith.constant dense<0.000000e+00> : vector<8x10xf32>
    %382 = tpu.matmul %379, %381, %cst_268 {dimension_numbers = #tpu.dot_dimension_numbers<[1], [0], [0], [1], [0, 0, 1, 1], [], []>} : vector<8x10xf32>, vector<10x10xf32>, vector<8x10xf32> -> vector<8x10xf32>
    %383 = arith.addf %378, %382 : vector<8x10xf32>
    %384 = vector.extract_strided_slice %32 {offsets = [336, 0], sizes = [8, 10], strides = [1, 1]} : vector<392x10xf32> to vector<8x10xf32>
    %c6_269 = arith.constant 6 : index
    %c0_270 = arith.constant 0 : index
    %c0_271 = arith.constant 0 : index
    %385 = vector.load %arg4[%c6_269, %c0_270, %c0_271] : memref<9x10x10xf32, #tpu.memory_space<vmem>>, vector<1x10x10xf32>
    %386 = vector.shape_cast %385 : vector<1x10x10xf32> to vector<10x10xf32>
    %cst_272 = arith.constant dense<0.000000e+00> : vector<8x10xf32>
    %387 = tpu.matmul %384, %386, %cst_272 {dimension_numbers = #tpu.dot_dimension_numbers<[1], [0], [0], [1], [0, 0, 1, 1], [], []>} : vector<8x10xf32>, vector<10x10xf32>, vector<8x10xf32> -> vector<8x10xf32>
    %388 = arith.addf %383, %387 : vector<8x10xf32>
    %389 = vector.extract_strided_slice %32 {offsets = [344, 0], sizes = [8, 10], strides = [1, 1]} : vector<392x10xf32> to vector<8x10xf32>
    %c7_273 = arith.constant 7 : index
    %c0_274 = arith.constant 0 : index
    %c0_275 = arith.constant 0 : index
    %390 = vector.load %arg4[%c7_273, %c0_274, %c0_275] : memref<9x10x10xf32, #tpu.memory_space<vmem>>, vector<1x10x10xf32>
    %391 = vector.shape_cast %390 : vector<1x10x10xf32> to vector<10x10xf32>
    %cst_276 = arith.constant dense<0.000000e+00> : vector<8x10xf32>
    %392 = tpu.matmul %389, %391, %cst_276 {dimension_numbers = #tpu.dot_dimension_numbers<[1], [0], [0], [1], [0, 0, 1, 1], [], []>} : vector<8x10xf32>, vector<10x10xf32>, vector<8x10xf32> -> vector<8x10xf32>
    %393 = arith.addf %388, %392 : vector<8x10xf32>
    %394 = vector.extract_strided_slice %32 {offsets = [352, 0], sizes = [8, 10], strides = [1, 1]} : vector<392x10xf32> to vector<8x10xf32>
    %c8_277 = arith.constant 8 : index
    %c0_278 = arith.constant 0 : index
    %c0_279 = arith.constant 0 : index
    %395 = vector.load %arg4[%c8_277, %c0_278, %c0_279] : memref<9x10x10xf32, #tpu.memory_space<vmem>>, vector<1x10x10xf32>
    %396 = vector.shape_cast %395 : vector<1x10x10xf32> to vector<10x10xf32>
    %cst_280 = arith.constant dense<0.000000e+00> : vector<8x10xf32>
    %397 = tpu.matmul %394, %396, %cst_280 {dimension_numbers = #tpu.dot_dimension_numbers<[1], [0], [0], [1], [0, 0, 1, 1], [], []>} : vector<8x10xf32>, vector<10x10xf32>, vector<8x10xf32> -> vector<8x10xf32>
    %398 = arith.addf %393, %397 : vector<8x10xf32>
    %cst_281 = arith.constant dense<0.000000e+00> : vector<10xf32>
    %399 = vector.multi_reduction <add>, %398, %cst_281 [0] : vector<8x10xf32> to vector<10xf32>
    %400 = vector.shape_cast %399 : vector<10xf32> to vector<1x10xf32>
    %401 = arith.addf %348, %400 : vector<1x10xf32>
    %402 = arith.mulf %398, %398 : vector<8x10xf32>
    %cst_282 = arith.constant dense<0.000000e+00> : vector<10xf32>
    %403 = vector.multi_reduction <add>, %402, %cst_282 [0] : vector<8x10xf32> to vector<10xf32>
    %404 = vector.shape_cast %403 : vector<10xf32> to vector<1x10xf32>
    %405 = arith.addf %352, %404 : vector<1x10xf32>
    %cst_283 = arith.constant 0.000000e+00 : f32
    %406 = vector.broadcast %cst_283 : f32 to vector<8x10xf32>
    %407 = vector.extract_strided_slice %32 {offsets = [240, 0], sizes = [8, 10], strides = [1, 1]} : vector<392x10xf32> to vector<8x10xf32>
    %c0_284 = arith.constant 0 : index
    %c0_285 = arith.constant 0 : index
    %c0_286 = arith.constant 0 : index
    %408 = vector.load %arg4[%c0_284, %c0_285, %c0_286] : memref<9x10x10xf32, #tpu.memory_space<vmem>>, vector<1x10x10xf32>
    %409 = vector.shape_cast %408 : vector<1x10x10xf32> to vector<10x10xf32>
    %cst_287 = arith.constant dense<0.000000e+00> : vector<8x10xf32>
    %410 = tpu.matmul %407, %409, %cst_287 {dimension_numbers = #tpu.dot_dimension_numbers<[1], [0], [0], [1], [0, 0, 1, 1], [], []>} : vector<8x10xf32>, vector<10x10xf32>, vector<8x10xf32> -> vector<8x10xf32>
    %411 = arith.addf %406, %410 : vector<8x10xf32>
    %412 = vector.extract_strided_slice %32 {offsets = [248, 0], sizes = [8, 10], strides = [1, 1]} : vector<392x10xf32> to vector<8x10xf32>
    %c1_288 = arith.constant 1 : index
    %c0_289 = arith.constant 0 : index
    %c0_290 = arith.constant 0 : index
    %413 = vector.load %arg4[%c1_288, %c0_289, %c0_290] : memref<9x10x10xf32, #tpu.memory_space<vmem>>, vector<1x10x10xf32>
    %414 = vector.shape_cast %413 : vector<1x10x10xf32> to vector<10x10xf32>
    %cst_291 = arith.constant dense<0.000000e+00> : vector<8x10xf32>
    %415 = tpu.matmul %412, %414, %cst_291 {dimension_numbers = #tpu.dot_dimension_numbers<[1], [0], [0], [1], [0, 0, 1, 1], [], []>} : vector<8x10xf32>, vector<10x10xf32>, vector<8x10xf32> -> vector<8x10xf32>
    %416 = arith.addf %411, %415 : vector<8x10xf32>
    %417 = vector.extract_strided_slice %32 {offsets = [256, 0], sizes = [8, 10], strides = [1, 1]} : vector<392x10xf32> to vector<8x10xf32>
    %c2_292 = arith.constant 2 : index
    %c0_293 = arith.constant 0 : index
    %c0_294 = arith.constant 0 : index
    %418 = vector.load %arg4[%c2_292, %c0_293, %c0_294] : memref<9x10x10xf32, #tpu.memory_space<vmem>>, vector<1x10x10xf32>
    %419 = vector.shape_cast %418 : vector<1x10x10xf32> to vector<10x10xf32>
    %cst_295 = arith.constant dense<0.000000e+00> : vector<8x10xf32>
    %420 = tpu.matmul %417, %419, %cst_295 {dimension_numbers = #tpu.dot_dimension_numbers<[1], [0], [0], [1], [0, 0, 1, 1], [], []>} : vector<8x10xf32>, vector<10x10xf32>, vector<8x10xf32> -> vector<8x10xf32>
    %421 = arith.addf %416, %420 : vector<8x10xf32>
    %422 = vector.extract_strided_slice %32 {offsets = [296, 0], sizes = [8, 10], strides = [1, 1]} : vector<392x10xf32> to vector<8x10xf32>
    %c3_296 = arith.constant 3 : index
    %c0_297 = arith.constant 0 : index
    %c0_298 = arith.constant 0 : index
    %423 = vector.load %arg4[%c3_296, %c0_297, %c0_298] : memref<9x10x10xf32, #tpu.memory_space<vmem>>, vector<1x10x10xf32>
    %424 = vector.shape_cast %423 : vector<1x10x10xf32> to vector<10x10xf32>
    %cst_299 = arith.constant dense<0.000000e+00> : vector<8x10xf32>
    %425 = tpu.matmul %422, %424, %cst_299 {dimension_numbers = #tpu.dot_dimension_numbers<[1], [0], [0], [1], [0, 0, 1, 1], [], []>} : vector<8x10xf32>, vector<10x10xf32>, vector<8x10xf32> -> vector<8x10xf32>
    %426 = arith.addf %421, %425 : vector<8x10xf32>
    %427 = vector.extract_strided_slice %32 {offsets = [304, 0], sizes = [8, 10], strides = [1, 1]} : vector<392x10xf32> to vector<8x10xf32>
    %c4_300 = arith.constant 4 : index
    %c0_301 = arith.constant 0 : index
    %c0_302 = arith.constant 0 : index
    %428 = vector.load %arg4[%c4_300, %c0_301, %c0_302] : memref<9x10x10xf32, #tpu.memory_space<vmem>>, vector<1x10x10xf32>
    %429 = vector.shape_cast %428 : vector<1x10x10xf32> to vector<10x10xf32>
    %cst_303 = arith.constant dense<0.000000e+00> : vector<8x10xf32>
    %430 = tpu.matmul %427, %429, %cst_303 {dimension_numbers = #tpu.dot_dimension_numbers<[1], [0], [0], [1], [0, 0, 1, 1], [], []>} : vector<8x10xf32>, vector<10x10xf32>, vector<8x10xf32> -> vector<8x10xf32>
    %431 = arith.addf %426, %430 : vector<8x10xf32>
    %432 = vector.extract_strided_slice %32 {offsets = [312, 0], sizes = [8, 10], strides = [1, 1]} : vector<392x10xf32> to vector<8x10xf32>
    %c5_304 = arith.constant 5 : index
    %c0_305 = arith.constant 0 : index
    %c0_306 = arith.constant 0 : index
    %433 = vector.load %arg4[%c5_304, %c0_305, %c0_306] : memref<9x10x10xf32, #tpu.memory_space<vmem>>, vector<1x10x10xf32>
    %434 = vector.shape_cast %433 : vector<1x10x10xf32> to vector<10x10xf32>
    %cst_307 = arith.constant dense<0.000000e+00> : vector<8x10xf32>
    %435 = tpu.matmul %432, %434, %cst_307 {dimension_numbers = #tpu.dot_dimension_numbers<[1], [0], [0], [1], [0, 0, 1, 1], [], []>} : vector<8x10xf32>, vector<10x10xf32>, vector<8x10xf32> -> vector<8x10xf32>
    %436 = arith.addf %431, %435 : vector<8x10xf32>
    %437 = vector.extract_strided_slice %32 {offsets = [352, 0], sizes = [8, 10], strides = [1, 1]} : vector<392x10xf32> to vector<8x10xf32>
    %c6_308 = arith.constant 6 : index
    %c0_309 = arith.constant 0 : index
    %c0_310 = arith.constant 0 : index
    %438 = vector.load %arg4[%c6_308, %c0_309, %c0_310] : memref<9x10x10xf32, #tpu.memory_space<vmem>>, vector<1x10x10xf32>
    %439 = vector.shape_cast %438 : vector<1x10x10xf32> to vector<10x10xf32>
    %cst_311 = arith.constant dense<0.000000e+00> : vector<8x10xf32>
    %440 = tpu.matmul %437, %439, %cst_311 {dimension_numbers = #tpu.dot_dimension_numbers<[1], [0], [0], [1], [0, 0, 1, 1], [], []>} : vector<8x10xf32>, vector<10x10xf32>, vector<8x10xf32> -> vector<8x10xf32>
    %441 = arith.addf %436, %440 : vector<8x10xf32>
    %442 = vector.extract_strided_slice %32 {offsets = [360, 0], sizes = [8, 10], strides = [1, 1]} : vector<392x10xf32> to vector<8x10xf32>
    %c7_312 = arith.constant 7 : index
    %c0_313 = arith.constant 0 : index
    %c0_314 = arith.constant 0 : index
    %443 = vector.load %arg4[%c7_312, %c0_313, %c0_314] : memref<9x10x10xf32, #tpu.memory_space<vmem>>, vector<1x10x10xf32>
    %444 = vector.shape_cast %443 : vector<1x10x10xf32> to vector<10x10xf32>
    %cst_315 = arith.constant dense<0.000000e+00> : vector<8x10xf32>
    %445 = tpu.matmul %442, %444, %cst_315 {dimension_numbers = #tpu.dot_dimension_numbers<[1], [0], [0], [1], [0, 0, 1, 1], [], []>} : vector<8x10xf32>, vector<10x10xf32>, vector<8x10xf32> -> vector<8x10xf32>
    %446 = arith.addf %441, %445 : vector<8x10xf32>
    %447 = vector.extract_strided_slice %32 {offsets = [368, 0], sizes = [8, 10], strides = [1, 1]} : vector<392x10xf32> to vector<8x10xf32>
    %c8_316 = arith.constant 8 : index
    %c0_317 = arith.constant 0 : index
    %c0_318 = arith.constant 0 : index
    %448 = vector.load %arg4[%c8_316, %c0_317, %c0_318] : memref<9x10x10xf32, #tpu.memory_space<vmem>>, vector<1x10x10xf32>
    %449 = vector.shape_cast %448 : vector<1x10x10xf32> to vector<10x10xf32>
    %cst_319 = arith.constant dense<0.000000e+00> : vector<8x10xf32>
    %450 = tpu.matmul %447, %449, %cst_319 {dimension_numbers = #tpu.dot_dimension_numbers<[1], [0], [0], [1], [0, 0, 1, 1], [], []>} : vector<8x10xf32>, vector<10x10xf32>, vector<8x10xf32> -> vector<8x10xf32>
    %451 = arith.addf %446, %450 : vector<8x10xf32>
    %cst_320 = arith.constant dense<0.000000e+00> : vector<10xf32>
    %452 = vector.multi_reduction <add>, %451, %cst_320 [0] : vector<8x10xf32> to vector<10xf32>
    %453 = vector.shape_cast %452 : vector<10xf32> to vector<1x10xf32>
    %454 = arith.addf %401, %453 : vector<1x10xf32>
    %455 = arith.mulf %451, %451 : vector<8x10xf32>
    %cst_321 = arith.constant dense<0.000000e+00> : vector<10xf32>
    %456 = vector.multi_reduction <add>, %455, %cst_321 [0] : vector<8x10xf32> to vector<10xf32>
    %457 = vector.shape_cast %456 : vector<10xf32> to vector<1x10xf32>
    %458 = arith.addf %405, %457 : vector<1x10xf32>
    %cst_322 = arith.constant 0.000000e+00 : f32
    %459 = vector.broadcast %cst_322 : f32 to vector<8x10xf32>
    %460 = vector.extract_strided_slice %32 {offsets = [256, 0], sizes = [8, 10], strides = [1, 1]} : vector<392x10xf32> to vector<8x10xf32>
    %c0_323 = arith.constant 0 : index
    %c0_324 = arith.constant 0 : index
    %c0_325 = arith.constant 0 : index
    %461 = vector.load %arg4[%c0_323, %c0_324, %c0_325] : memref<9x10x10xf32, #tpu.memory_space<vmem>>, vector<1x10x10xf32>
    %462 = vector.shape_cast %461 : vector<1x10x10xf32> to vector<10x10xf32>
    %cst_326 = arith.constant dense<0.000000e+00> : vector<8x10xf32>
    %463 = tpu.matmul %460, %462, %cst_326 {dimension_numbers = #tpu.dot_dimension_numbers<[1], [0], [0], [1], [0, 0, 1, 1], [], []>} : vector<8x10xf32>, vector<10x10xf32>, vector<8x10xf32> -> vector<8x10xf32>
    %464 = arith.addf %459, %463 : vector<8x10xf32>
    %465 = vector.extract_strided_slice %32 {offsets = [264, 0], sizes = [8, 10], strides = [1, 1]} : vector<392x10xf32> to vector<8x10xf32>
    %c1_327 = arith.constant 1 : index
    %c0_328 = arith.constant 0 : index
    %c0_329 = arith.constant 0 : index
    %466 = vector.load %arg4[%c1_327, %c0_328, %c0_329] : memref<9x10x10xf32, #tpu.memory_space<vmem>>, vector<1x10x10xf32>
    %467 = vector.shape_cast %466 : vector<1x10x10xf32> to vector<10x10xf32>
    %cst_330 = arith.constant dense<0.000000e+00> : vector<8x10xf32>
    %468 = tpu.matmul %465, %467, %cst_330 {dimension_numbers = #tpu.dot_dimension_numbers<[1], [0], [0], [1], [0, 0, 1, 1], [], []>} : vector<8x10xf32>, vector<10x10xf32>, vector<8x10xf32> -> vector<8x10xf32>
    %469 = arith.addf %464, %468 : vector<8x10xf32>
    %470 = vector.extract_strided_slice %32 {offsets = [272, 0], sizes = [8, 10], strides = [1, 1]} : vector<392x10xf32> to vector<8x10xf32>
    %c2_331 = arith.constant 2 : index
    %c0_332 = arith.constant 0 : index
    %c0_333 = arith.constant 0 : index
    %471 = vector.load %arg4[%c2_331, %c0_332, %c0_333] : memref<9x10x10xf32, #tpu.memory_space<vmem>>, vector<1x10x10xf32>
    %472 = vector.shape_cast %471 : vector<1x10x10xf32> to vector<10x10xf32>
    %cst_334 = arith.constant dense<0.000000e+00> : vector<8x10xf32>
    %473 = tpu.matmul %470, %472, %cst_334 {dimension_numbers = #tpu.dot_dimension_numbers<[1], [0], [0], [1], [0, 0, 1, 1], [], []>} : vector<8x10xf32>, vector<10x10xf32>, vector<8x10xf32> -> vector<8x10xf32>
    %474 = arith.addf %469, %473 : vector<8x10xf32>
    %475 = vector.extract_strided_slice %32 {offsets = [312, 0], sizes = [8, 10], strides = [1, 1]} : vector<392x10xf32> to vector<8x10xf32>
    %c3_335 = arith.constant 3 : index
    %c0_336 = arith.constant 0 : index
    %c0_337 = arith.constant 0 : index
    %476 = vector.load %arg4[%c3_335, %c0_336, %c0_337] : memref<9x10x10xf32, #tpu.memory_space<vmem>>, vector<1x10x10xf32>
    %477 = vector.shape_cast %476 : vector<1x10x10xf32> to vector<10x10xf32>
    %cst_338 = arith.constant dense<0.000000e+00> : vector<8x10xf32>
    %478 = tpu.matmul %475, %477, %cst_338 {dimension_numbers = #tpu.dot_dimension_numbers<[1], [0], [0], [1], [0, 0, 1, 1], [], []>} : vector<8x10xf32>, vector<10x10xf32>, vector<8x10xf32> -> vector<8x10xf32>
    %479 = arith.addf %474, %478 : vector<8x10xf32>
    %480 = vector.extract_strided_slice %32 {offsets = [320, 0], sizes = [8, 10], strides = [1, 1]} : vector<392x10xf32> to vector<8x10xf32>
    %c4_339 = arith.constant 4 : index
    %c0_340 = arith.constant 0 : index
    %c0_341 = arith.constant 0 : index
    %481 = vector.load %arg4[%c4_339, %c0_340, %c0_341] : memref<9x10x10xf32, #tpu.memory_space<vmem>>, vector<1x10x10xf32>
    %482 = vector.shape_cast %481 : vector<1x10x10xf32> to vector<10x10xf32>
    %cst_342 = arith.constant dense<0.000000e+00> : vector<8x10xf32>
    %483 = tpu.matmul %480, %482, %cst_342 {dimension_numbers = #tpu.dot_dimension_numbers<[1], [0], [0], [1], [0, 0, 1, 1], [], []>} : vector<8x10xf32>, vector<10x10xf32>, vector<8x10xf32> -> vector<8x10xf32>
    %484 = arith.addf %479, %483 : vector<8x10xf32>
    %485 = vector.extract_strided_slice %32 {offsets = [328, 0], sizes = [8, 10], strides = [1, 1]} : vector<392x10xf32> to vector<8x10xf32>
    %c5_343 = arith.constant 5 : index
    %c0_344 = arith.constant 0 : index
    %c0_345 = arith.constant 0 : index
    %486 = vector.load %arg4[%c5_343, %c0_344, %c0_345] : memref<9x10x10xf32, #tpu.memory_space<vmem>>, vector<1x10x10xf32>
    %487 = vector.shape_cast %486 : vector<1x10x10xf32> to vector<10x10xf32>
    %cst_346 = arith.constant dense<0.000000e+00> : vector<8x10xf32>
    %488 = tpu.matmul %485, %487, %cst_346 {dimension_numbers = #tpu.dot_dimension_numbers<[1], [0], [0], [1], [0, 0, 1, 1], [], []>} : vector<8x10xf32>, vector<10x10xf32>, vector<8x10xf32> -> vector<8x10xf32>
    %489 = arith.addf %484, %488 : vector<8x10xf32>
    %490 = vector.extract_strided_slice %32 {offsets = [368, 0], sizes = [8, 10], strides = [1, 1]} : vector<392x10xf32> to vector<8x10xf32>
    %c6_347 = arith.constant 6 : index
    %c0_348 = arith.constant 0 : index
    %c0_349 = arith.constant 0 : index
    %491 = vector.load %arg4[%c6_347, %c0_348, %c0_349] : memref<9x10x10xf32, #tpu.memory_space<vmem>>, vector<1x10x10xf32>
    %492 = vector.shape_cast %491 : vector<1x10x10xf32> to vector<10x10xf32>
    %cst_350 = arith.constant dense<0.000000e+00> : vector<8x10xf32>
    %493 = tpu.matmul %490, %492, %cst_350 {dimension_numbers = #tpu.dot_dimension_numbers<[1], [0], [0], [1], [0, 0, 1, 1], [], []>} : vector<8x10xf32>, vector<10x10xf32>, vector<8x10xf32> -> vector<8x10xf32>
    %494 = arith.addf %489, %493 : vector<8x10xf32>
    %495 = vector.extract_strided_slice %32 {offsets = [376, 0], sizes = [8, 10], strides = [1, 1]} : vector<392x10xf32> to vector<8x10xf32>
    %c7_351 = arith.constant 7 : index
    %c0_352 = arith.constant 0 : index
    %c0_353 = arith.constant 0 : index
    %496 = vector.load %arg4[%c7_351, %c0_352, %c0_353] : memref<9x10x10xf32, #tpu.memory_space<vmem>>, vector<1x10x10xf32>
    %497 = vector.shape_cast %496 : vector<1x10x10xf32> to vector<10x10xf32>
    %cst_354 = arith.constant dense<0.000000e+00> : vector<8x10xf32>
    %498 = tpu.matmul %495, %497, %cst_354 {dimension_numbers = #tpu.dot_dimension_numbers<[1], [0], [0], [1], [0, 0, 1, 1], [], []>} : vector<8x10xf32>, vector<10x10xf32>, vector<8x10xf32> -> vector<8x10xf32>
    %499 = arith.addf %494, %498 : vector<8x10xf32>
    %500 = vector.extract_strided_slice %32 {offsets = [384, 0], sizes = [8, 10], strides = [1, 1]} : vector<392x10xf32> to vector<8x10xf32>
    %c8_355 = arith.constant 8 : index
    %c0_356 = arith.constant 0 : index
    %c0_357 = arith.constant 0 : index
    %501 = vector.load %arg4[%c8_355, %c0_356, %c0_357] : memref<9x10x10xf32, #tpu.memory_space<vmem>>, vector<1x10x10xf32>
    %502 = vector.shape_cast %501 : vector<1x10x10xf32> to vector<10x10xf32>
    %cst_358 = arith.constant dense<0.000000e+00> : vector<8x10xf32>
    %503 = tpu.matmul %500, %502, %cst_358 {dimension_numbers = #tpu.dot_dimension_numbers<[1], [0], [0], [1], [0, 0, 1, 1], [], []>} : vector<8x10xf32>, vector<10x10xf32>, vector<8x10xf32> -> vector<8x10xf32>
    %504 = arith.addf %499, %503 : vector<8x10xf32>
    %cst_359 = arith.constant dense<0.000000e+00> : vector<10xf32>
    %505 = vector.multi_reduction <add>, %504, %cst_359 [0] : vector<8x10xf32> to vector<10xf32>
    %506 = vector.shape_cast %505 : vector<10xf32> to vector<1x10xf32>
    %507 = arith.addf %454, %506 : vector<1x10xf32>
    %508 = arith.mulf %504, %504 : vector<8x10xf32>
    %cst_360 = arith.constant dense<0.000000e+00> : vector<10xf32>
    %509 = vector.multi_reduction <add>, %508, %cst_360 [0] : vector<8x10xf32> to vector<10xf32>
    %510 = vector.shape_cast %509 : vector<10xf32> to vector<1x10xf32>
    %511 = arith.addf %458, %510 : vector<1x10xf32>
    %cst_361 = arith.constant 0.055555556 : f32
    %512 = vector.broadcast %cst_361 : f32 to vector<1x10xf32>
    %513 = arith.mulf %507, %512 : vector<1x10xf32>
    %cst_362 = arith.constant 0.055555556 : f32
    %514 = vector.broadcast %cst_362 : f32 to vector<1x10xf32>
    %515 = arith.mulf %511, %514 : vector<1x10xf32>
    %516 = arith.mulf %513, %513 : vector<1x10xf32>
    %517 = arith.subf %515, %516 : vector<1x10xf32>
    %cst_363 = arith.constant 0.000000e+00 : f32
    %518 = vector.broadcast %cst_363 : f32 to vector<1x10xf32>
    %519 = arith.maximumf %517, %518 : vector<1x10xf32>
    %cst_364 = arith.constant 9.99999974E-6 : f32
    %520 = vector.broadcast %cst_364 : f32 to vector<1x10xf32>
    %521 = arith.addf %519, %520 : vector<1x10xf32>
    %522 = math.rsqrt %521 : vector<1x10xf32>
    %c0_365 = arith.constant 0 : index
    %c0_366 = arith.constant 0 : index
    %523 = vector.load %arg5[%c0_365, %c0_366] : memref<2x10xf32, #tpu.memory_space<vmem>>, vector<1x10xf32>
    %524 = arith.mulf %522, %523 : vector<1x10xf32>
    %c1_367 = arith.constant 1 : index
    %c0_368 = arith.constant 0 : index
    %525 = vector.load %arg5[%c1_367, %c0_368] : memref<2x10xf32, #tpu.memory_space<vmem>>, vector<1x10xf32>
    %cst_369 = arith.constant 0.000000e+00 : f32
    %526 = vector.broadcast %cst_369 : f32 to vector<8x10xf32>
    %527 = vector.broadcast %513 : vector<1x10xf32> to vector<8x10xf32>
    %528 = arith.subf %80, %527 : vector<8x10xf32>
    %529 = vector.broadcast %524 : vector<1x10xf32> to vector<8x10xf32>
    %530 = arith.mulf %528, %529 : vector<8x10xf32>
    %531 = vector.broadcast %525 : vector<1x10xf32> to vector<8x10xf32>
    %532 = arith.addf %530, %531 : vector<8x10xf32>
    %cst_370 = arith.constant 0.000000e+00 : f32
    %533 = vector.broadcast %cst_370 : f32 to vector<8x10xf32>
    %534 = arith.maximumf %532, %533 : vector<8x10xf32>
    %c0_371 = arith.constant 0 : index
    %c0_372 = arith.constant 0 : index
    %c0_373 = arith.constant 0 : index
    %535 = vector.load %arg6[%c0_371, %c0_372, %c0_373] : memref<9x10x10xf32, #tpu.memory_space<vmem>>, vector<1x10x10xf32>
    %536 = vector.shape_cast %535 : vector<1x10x10xf32> to vector<10x10xf32>
    %cst_374 = arith.constant dense<0.000000e+00> : vector<8x10xf32>
    %537 = tpu.matmul %534, %536, %cst_374 {dimension_numbers = #tpu.dot_dimension_numbers<[1], [0], [0], [1], [0, 0, 1, 1], [], []>} : vector<8x10xf32>, vector<10x10xf32>, vector<8x10xf32> -> vector<8x10xf32>
    %538 = arith.addf %526, %537 : vector<8x10xf32>
    %539 = vector.broadcast %513 : vector<1x10xf32> to vector<8x10xf32>
    %540 = arith.subf %133, %539 : vector<8x10xf32>
    %541 = vector.broadcast %524 : vector<1x10xf32> to vector<8x10xf32>
    %542 = arith.mulf %540, %541 : vector<8x10xf32>
    %543 = vector.broadcast %525 : vector<1x10xf32> to vector<8x10xf32>
    %544 = arith.addf %542, %543 : vector<8x10xf32>
    %cst_375 = arith.constant 0.000000e+00 : f32
    %545 = vector.broadcast %cst_375 : f32 to vector<8x10xf32>
    %546 = arith.maximumf %544, %545 : vector<8x10xf32>
    %c1_376 = arith.constant 1 : index
    %c0_377 = arith.constant 0 : index
    %c0_378 = arith.constant 0 : index
    %547 = vector.load %arg6[%c1_376, %c0_377, %c0_378] : memref<9x10x10xf32, #tpu.memory_space<vmem>>, vector<1x10x10xf32>
    %548 = vector.shape_cast %547 : vector<1x10x10xf32> to vector<10x10xf32>
    %cst_379 = arith.constant dense<0.000000e+00> : vector<8x10xf32>
    %549 = tpu.matmul %546, %548, %cst_379 {dimension_numbers = #tpu.dot_dimension_numbers<[1], [0], [0], [1], [0, 0, 1, 1], [], []>} : vector<8x10xf32>, vector<10x10xf32>, vector<8x10xf32> -> vector<8x10xf32>
    %550 = arith.addf %538, %549 : vector<8x10xf32>
    %551 = vector.broadcast %513 : vector<1x10xf32> to vector<8x10xf32>
    %552 = arith.subf %186, %551 : vector<8x10xf32>
    %553 = vector.broadcast %524 : vector<1x10xf32> to vector<8x10xf32>
    %554 = arith.mulf %552, %553 : vector<8x10xf32>
    %555 = vector.broadcast %525 : vector<1x10xf32> to vector<8x10xf32>
    %556 = arith.addf %554, %555 : vector<8x10xf32>
    %cst_380 = arith.constant 0.000000e+00 : f32
    %557 = vector.broadcast %cst_380 : f32 to vector<8x10xf32>
    %558 = arith.maximumf %556, %557 : vector<8x10xf32>
    %c2_381 = arith.constant 2 : index
    %c0_382 = arith.constant 0 : index
    %c0_383 = arith.constant 0 : index
    %559 = vector.load %arg6[%c2_381, %c0_382, %c0_383] : memref<9x10x10xf32, #tpu.memory_space<vmem>>, vector<1x10x10xf32>
    %560 = vector.shape_cast %559 : vector<1x10x10xf32> to vector<10x10xf32>
    %cst_384 = arith.constant dense<0.000000e+00> : vector<8x10xf32>
    %561 = tpu.matmul %558, %560, %cst_384 {dimension_numbers = #tpu.dot_dimension_numbers<[1], [0], [0], [1], [0, 0, 1, 1], [], []>} : vector<8x10xf32>, vector<10x10xf32>, vector<8x10xf32> -> vector<8x10xf32>
    %562 = arith.addf %550, %561 : vector<8x10xf32>
    %563 = vector.broadcast %513 : vector<1x10xf32> to vector<8x10xf32>
    %564 = arith.subf %239, %563 : vector<8x10xf32>
    %565 = vector.broadcast %524 : vector<1x10xf32> to vector<8x10xf32>
    %566 = arith.mulf %564, %565 : vector<8x10xf32>
    %567 = vector.broadcast %525 : vector<1x10xf32> to vector<8x10xf32>
    %568 = arith.addf %566, %567 : vector<8x10xf32>
    %cst_385 = arith.constant 0.000000e+00 : f32
    %569 = vector.broadcast %cst_385 : f32 to vector<8x10xf32>
    %570 = arith.maximumf %568, %569 : vector<8x10xf32>
    %c3_386 = arith.constant 3 : index
    %c0_387 = arith.constant 0 : index
    %c0_388 = arith.constant 0 : index
    %571 = vector.load %arg6[%c3_386, %c0_387, %c0_388] : memref<9x10x10xf32, #tpu.memory_space<vmem>>, vector<1x10x10xf32>
    %572 = vector.shape_cast %571 : vector<1x10x10xf32> to vector<10x10xf32>
    %cst_389 = arith.constant dense<0.000000e+00> : vector<8x10xf32>
    %573 = tpu.matmul %570, %572, %cst_389 {dimension_numbers = #tpu.dot_dimension_numbers<[1], [0], [0], [1], [0, 0, 1, 1], [], []>} : vector<8x10xf32>, vector<10x10xf32>, vector<8x10xf32> -> vector<8x10xf32>
    %574 = arith.addf %562, %573 : vector<8x10xf32>
    %575 = vector.broadcast %513 : vector<1x10xf32> to vector<8x10xf32>
    %576 = arith.subf %292, %575 : vector<8x10xf32>
    %577 = vector.broadcast %524 : vector<1x10xf32> to vector<8x10xf32>
    %578 = arith.mulf %576, %577 : vector<8x10xf32>
    %579 = vector.broadcast %525 : vector<1x10xf32> to vector<8x10xf32>
    %580 = arith.addf %578, %579 : vector<8x10xf32>
    %cst_390 = arith.constant 0.000000e+00 : f32
    %581 = vector.broadcast %cst_390 : f32 to vector<8x10xf32>
    %582 = arith.maximumf %580, %581 : vector<8x10xf32>
    %c4_391 = arith.constant 4 : index
    %c0_392 = arith.constant 0 : index
    %c0_393 = arith.constant 0 : index
    %583 = vector.load %arg6[%c4_391, %c0_392, %c0_393] : memref<9x10x10xf32, #tpu.memory_space<vmem>>, vector<1x10x10xf32>
    %584 = vector.shape_cast %583 : vector<1x10x10xf32> to vector<10x10xf32>
    %cst_394 = arith.constant dense<0.000000e+00> : vector<8x10xf32>
    %585 = tpu.matmul %582, %584, %cst_394 {dimension_numbers = #tpu.dot_dimension_numbers<[1], [0], [0], [1], [0, 0, 1, 1], [], []>} : vector<8x10xf32>, vector<10x10xf32>, vector<8x10xf32> -> vector<8x10xf32>
    %586 = arith.addf %574, %585 : vector<8x10xf32>
    %587 = vector.broadcast %513 : vector<1x10xf32> to vector<8x10xf32>
    %588 = arith.subf %345, %587 : vector<8x10xf32>
    %589 = vector.broadcast %524 : vector<1x10xf32> to vector<8x10xf32>
    %590 = arith.mulf %588, %589 : vector<8x10xf32>
    %591 = vector.broadcast %525 : vector<1x10xf32> to vector<8x10xf32>
    %592 = arith.addf %590, %591 : vector<8x10xf32>
    %cst_395 = arith.constant 0.000000e+00 : f32
    %593 = vector.broadcast %cst_395 : f32 to vector<8x10xf32>
    %594 = arith.maximumf %592, %593 : vector<8x10xf32>
    %c5_396 = arith.constant 5 : index
    %c0_397 = arith.constant 0 : index
    %c0_398 = arith.constant 0 : index
    %595 = vector.load %arg6[%c5_396, %c0_397, %c0_398] : memref<9x10x10xf32, #tpu.memory_space<vmem>>, vector<1x10x10xf32>
    %596 = vector.shape_cast %595 : vector<1x10x10xf32> to vector<10x10xf32>
    %cst_399 = arith.constant dense<0.000000e+00> : vector<8x10xf32>
    %597 = tpu.matmul %594, %596, %cst_399 {dimension_numbers = #tpu.dot_dimension_numbers<[1], [0], [0], [1], [0, 0, 1, 1], [], []>} : vector<8x10xf32>, vector<10x10xf32>, vector<8x10xf32> -> vector<8x10xf32>
    %598 = arith.addf %586, %597 : vector<8x10xf32>
    %599 = vector.broadcast %513 : vector<1x10xf32> to vector<8x10xf32>
    %600 = arith.subf %398, %599 : vector<8x10xf32>
    %601 = vector.broadcast %524 : vector<1x10xf32> to vector<8x10xf32>
    %602 = arith.mulf %600, %601 : vector<8x10xf32>
    %603 = vector.broadcast %525 : vector<1x10xf32> to vector<8x10xf32>
    %604 = arith.addf %602, %603 : vector<8x10xf32>
    %cst_400 = arith.constant 0.000000e+00 : f32
    %605 = vector.broadcast %cst_400 : f32 to vector<8x10xf32>
    %606 = arith.maximumf %604, %605 : vector<8x10xf32>
    %c6_401 = arith.constant 6 : index
    %c0_402 = arith.constant 0 : index
    %c0_403 = arith.constant 0 : index
    %607 = vector.load %arg6[%c6_401, %c0_402, %c0_403] : memref<9x10x10xf32, #tpu.memory_space<vmem>>, vector<1x10x10xf32>
    %608 = vector.shape_cast %607 : vector<1x10x10xf32> to vector<10x10xf32>
    %cst_404 = arith.constant dense<0.000000e+00> : vector<8x10xf32>
    %609 = tpu.matmul %606, %608, %cst_404 {dimension_numbers = #tpu.dot_dimension_numbers<[1], [0], [0], [1], [0, 0, 1, 1], [], []>} : vector<8x10xf32>, vector<10x10xf32>, vector<8x10xf32> -> vector<8x10xf32>
    %610 = arith.addf %598, %609 : vector<8x10xf32>
    %611 = vector.broadcast %513 : vector<1x10xf32> to vector<8x10xf32>
    %612 = arith.subf %451, %611 : vector<8x10xf32>
    %613 = vector.broadcast %524 : vector<1x10xf32> to vector<8x10xf32>
    %614 = arith.mulf %612, %613 : vector<8x10xf32>
    %615 = vector.broadcast %525 : vector<1x10xf32> to vector<8x10xf32>
    %616 = arith.addf %614, %615 : vector<8x10xf32>
    %cst_405 = arith.constant 0.000000e+00 : f32
    %617 = vector.broadcast %cst_405 : f32 to vector<8x10xf32>
    %618 = arith.maximumf %616, %617 : vector<8x10xf32>
    %c7_406 = arith.constant 7 : index
    %c0_407 = arith.constant 0 : index
    %c0_408 = arith.constant 0 : index
    %619 = vector.load %arg6[%c7_406, %c0_407, %c0_408] : memref<9x10x10xf32, #tpu.memory_space<vmem>>, vector<1x10x10xf32>
    %620 = vector.shape_cast %619 : vector<1x10x10xf32> to vector<10x10xf32>
    %cst_409 = arith.constant dense<0.000000e+00> : vector<8x10xf32>
    %621 = tpu.matmul %618, %620, %cst_409 {dimension_numbers = #tpu.dot_dimension_numbers<[1], [0], [0], [1], [0, 0, 1, 1], [], []>} : vector<8x10xf32>, vector<10x10xf32>, vector<8x10xf32> -> vector<8x10xf32>
    %622 = arith.addf %610, %621 : vector<8x10xf32>
    %623 = vector.broadcast %513 : vector<1x10xf32> to vector<8x10xf32>
    %624 = arith.subf %504, %623 : vector<8x10xf32>
    %625 = vector.broadcast %524 : vector<1x10xf32> to vector<8x10xf32>
    %626 = arith.mulf %624, %625 : vector<8x10xf32>
    %627 = vector.broadcast %525 : vector<1x10xf32> to vector<8x10xf32>
    %628 = arith.addf %626, %627 : vector<8x10xf32>
    %cst_410 = arith.constant 0.000000e+00 : f32
    %629 = vector.broadcast %cst_410 : f32 to vector<8x10xf32>
    %630 = arith.maximumf %628, %629 : vector<8x10xf32>
    %c8_411 = arith.constant 8 : index
    %c0_412 = arith.constant 0 : index
    %c0_413 = arith.constant 0 : index
    %631 = vector.load %arg6[%c8_411, %c0_412, %c0_413] : memref<9x10x10xf32, #tpu.memory_space<vmem>>, vector<1x10x10xf32>
    %632 = vector.shape_cast %631 : vector<1x10x10xf32> to vector<10x10xf32>
    %cst_414 = arith.constant dense<0.000000e+00> : vector<8x10xf32>
    %633 = tpu.matmul %630, %632, %cst_414 {dimension_numbers = #tpu.dot_dimension_numbers<[1], [0], [0], [1], [0, 0, 1, 1], [], []>} : vector<8x10xf32>, vector<10x10xf32>, vector<8x10xf32> -> vector<8x10xf32>
    %634 = arith.addf %622, %633 : vector<8x10xf32>
    %c0_415 = arith.constant 0 : index
    %c0_416 = arith.constant 0 : index
    %635 = vector.load %arg7[%c0_415, %c0_416] : memref<1x10xf32, #tpu.memory_space<vmem>>, vector<1x10xf32>
    %636 = vector.broadcast %635 : vector<1x10xf32> to vector<8x10xf32>
    %637 = arith.addf %634, %636 : vector<8x10xf32>
    %c0_417 = arith.constant 0 : index
    %c0_418 = arith.constant 0 : index
    %638 = vector.load %arg8[%c0_417, %c0_418] : memref<8x10xf32, #tpu.memory_space<vmem>>, vector<8x10xf32>
    tpu.vector_store %arg8[%c0_417, %c0_418], %637 {strides = array<i32>} : memref<8x10xf32, #tpu.memory_space<vmem>>, vector<8x10xf32>,
    return
  }
}

</mosaic_0001>

<bundles_post_ra>
// kernel: small_cnn_forward.2
= control target key start
LH: loop header
LB: loop body
LE: loop exit
PB: predicated region body
PF: predicated region fallthrough
CT: control target
= control target key end

     0   :  { %s891_s12 = smov 0   ;;  %s893_s13 = smov 0   ;;  %s1106_s0 = inlined_call_operand.vmem [shape: bf16[27,2048], index: 0, kind: input, shape index: {}]   ;;  %s1107_s1 = inlined_call_operand.vmem [shape: bf16[10,27], index: 1, kind: input, shape index: {}]   ;;  %s1108_s2 = inlined_call_operand.vmem [shape: f32[10,2], index: 2, kind: input, shape index: {}]   ;;  %s1109_s3 = inlined_call_operand.vmem [shape: bf16[10,2048], index: 3, kind: output, shape index: {}]  }
   0x1   :  { %s895_s14 = smov 0   ;;  %s897_s15 = smov 0  }
   0x2   :  { %s899_s16 = smov 0   ;;  %s901_s17 = smov 0  }
   0x3   :  { %s903_s18 = smov 0   ;;  %s905_s19 = smov 0  }
   0x4   :  { %s907_s20 = smov 0  }
   0x5 LB: > { %s658_s21 = sadd.s32 4294967295, %s864_s20   ;;  %s22_s22 = sadd.s32 1, %s856_s18  ;;  %s864_s20 = sphi %s907_s20, %s13_s20   ;;  %s860_s19 = sphi %s905_s19, %s1119_s19   ;;  %s856_s18 = sphi %s903_s18, %s1118_s18   ;;  %s852_s17 = sphi %s901_s17, %s1117_s17   ;;  %s848_s16 = sphi %s899_s16, %s1116_s16   ;;  %s844_s15 = sphi %s897_s15, %s1115_s15   ;;  %s840_s14 = sphi %s895_s14, %s1114_s14   ;;  %s836_s13 = sphi %s893_s13, %s1113_s13   ;;  %s832_s12 = sphi %s891_s12, %s1112_s12  }
   0x6   : > { %p23_p0 = scmp.ge.s32.totalorder %s22_s22, 4  ;;  %s25_s23 = sadd.s32 1, %s860_s19 }
   0x7   : > { %s32_s24 = sadd.s32 1, %s844_s15  ;;  %p39_p1 = scmp.ne.s32.totalorder %s844_s15, %s840_s14 }
   0x8   : > { %s1121_s22 = smov (%p23_p0, %s22_s22), 0  ;;  %s1123_s23 = smov (!%p23_p0, %s25_s23), %s860_s19 }
   0x9   : > { %s29_s25 = ssub.s32 %s856_s18, %s1121_s22  ;;  %p40_p2 = scmp.eq.s32.totalorder %s864_s20, 0 }
   0xa   : > { %p27_p3 = scmp.ge.s32.totalorder %s1123_s23, 2  ;;  %p30_p4 = scmp.eq.s32.totalorder %s29_s25, 0 }
   0xb   : > { %p948_p5 = por %p40_p2, %p39_p1  ;;  %s97_s27 = smul.u32 %s856_s18, %s860_s19 }
   0xc   : > { %s1125_s23 = smov (%p27_p3, %s1123_s23), 0  ;;  %p112_p6 = scmp.ne.s32.totalorder %s836_s13, %s832_s12 }
   0xd   : > { %s957_s28 = scalar_select %p30_p4, %s844_s15, %s32_s24  }
   0xe   : > { %s98_s29 = smul.u32 %s1125_s23, %s1121_s22  ;;  %p113_p7 = scmp.eq.s32.totalorder %s658_s21, 7 }
   0xf   : > { %s102_s4 = sadd.s32 1, %s836_s13  ;;  %p661_p10 = scmp.ge.s32.totalorder %s864_s20, 8 }
  0x10   : > { %s99_s30 = ssub.s32 %s97_s27, %s98_s29  ;;  %p964_p9 = por %p113_p7, %p112_p6 }
  0x11   : > { %p100_p8 = scmp.eq.s32.totalorder %s99_s30, 0  ;;  %141 = sbr.rel (%p661_p10) target bundleno = 32 (0x20), region = 24 }
  0x13   : > { %s969_s6 = scalar_select %p100_p8, %s836_s13, %s102_s4  }
  0x18   : > { %144 = sbr.rel (!%p948_p5) target bundleno = 32 (0x20), region = 28  ;;  %s146_s7 = sand.u32 (%p948_p5), 1, %s844_s15  }
  0x19   : > { %s690_s8 = sshll.u32 (%p948_p5), %s856_s18, 4  ;;  %s662_s9 = sshll.u32 (%p948_p5), %s146_s7, 6 }
  0x1a   : > { %s151_s21 = scalar_lea.vmem (%p948_p5), %s1106_s0, %s690_s8  ;;  %s148_s24 = scalar_lea.vmem (%p948_p5), [#allocation4], %s662_s9 }
  0x1b   : > { %v164_v0 = vld [vmem:[%s151_s21] sm:$0xff] (%p948_p5)  ;;  %v166_v1 = vld [vmem:[%s151_s21 + $0x8] sm:$0xff] (%p948_p5) }
  0x1c   : > { %v168_v2 = vld [vmem:[%s151_s21 + $0x40] sm:$0xff] (%p948_p5)  ;;  %165 = vst [vmem:[%s148_s24] sm:$0xff] (%p948_p5), %v164_v0  ;;  %167 = vst [vmem:[%s148_s24 + $0x8] sm:$0xff] (%p948_p5), %v166_v1  ;;  %v170_v3 = vld [vmem:[%s151_s21 + $0x48] sm:$0xff] (%p948_p5) }
  0x1d   : > { %169 = vst [vmem:[%s148_s24 + $0x10] sm:$0xff] (%p948_p5), %v168_v2  ;;  %v172_v4 = vld [vmem:[%s151_s21 + $0x80] sm:$0xff] (%p948_p5)  ;;  %v174_v5 = vld [vmem:[%s151_s21 + $0x88] sm:$0xff] (%p948_p5)  ;;  %171 = vst [vmem:[%s148_s24 + $0x18] sm:$0xff] (%p948_p5), %v170_v3 }
  0x1e   : > { %173 = vst [vmem:[%s148_s24 + $0x20] sm:$0xff] (%p948_p5), %v172_v4  ;;  %175 = vst [vmem:[%s148_s24 + $0x28] sm:$0xff] (%p948_p5), %v174_v5  ;;  %v176_v6 = vld [vmem:[%s151_s21 + $0xc0] sm:$0xff] (%p948_p5)  ;;  %v178_v7 = vld [vmem:[%s151_s21 + $0xc8] sm:$0xff] (%p948_p5) }
  0x1f   : > { %177 = vst [vmem:[%s148_s24 + $0x30] sm:$0xff] %v176_v6  ;;  %179 = vst [vmem:[%s148_s24 + $0x38] sm:$0xff] %v178_v7 }
  0x20 PF: > { %p665_p11 = scmp.ge.s32.totalorder %s864_s20, 1  ;;  %p184_p12 = scmp.lt.s32.totalorder %s864_s20, 9 }
  0x22   : > { %p185_p13 = pnand %p665_p11, %p184_p12 }
  0x23   : > { %s191_s25 = sand.u32 (!%p185_p13), 1, %s840_s14   ;;  %s210_s26 = sand.u32 (!%p185_p13), 1, %s832_s12  }
  0x24   : > { %188 = sbr.rel (%p185_p13) target bundleno = 607 (0x25f), region = 51  ;;  %s666_s27 = sshll.u32 (!%p185_p13), %s191_s25, 6 }
  0x25   : > { %s667_s29 = sshll.u32 (!%p185_p13), %s210_s26, 5  ;;  %p217_p0 = scmp.eq.s32.totalorder (!%p185_p13), %s852_s17, 0 }
  0x26   : > { %p218_p1 = scmp.eq.s32.totalorder (!%p185_p13), %s848_s16, 0  ;;  %s985_s30 = scalar_lea.vmem (!%p185_p13), [#allocation4], %s666_s27 }
  0x27   : > { %s987_s4 = scalar_lea.vmem (!%p185_p13), [#allocation5], %s667_s29 }
  0x28   : > { %p219_p2 = pnand (!%p185_p13), %p218_p1, %p217_p0 }
  0x2b   : > { %222 = sbr.rel (%p219_p2) target bundleno = 50 (0x32), region = 59  ;;  %vm223_vm0 = vcmask (!%p219_p2), 7168   ;;  %vm225_vm1 = vcmask (!%p219_p2), 1024   ;;  %v866_v8 = vmov (!%p219_p2), 0.0  }
  0x2c   : > { %224 = vst.msk [vmem:[#allocation2] sm:$0xff] (!%p219_p2), %vm223_vm0, %v866_v8  ;;  %227 = vst.msk [vmem:[#allocation3] sm:$0xff] (!%p219_p2), %vm223_vm0, %v866_v8 }
  0x2d   : > { %226 = vst.msk [vmem:[#allocation2 + $0x8] sm:$0x3] (!%p219_p2), %vm225_vm1, %v866_v8  ;;  %228 = vst.msk [vmem:[#allocation3 + $0x8] sm:$0x3] (!%p219_p2), %vm225_vm1, %v866_v8 }
  0x32 PF: > { %v773_v9 = vld [vmem:[%s985_s30 + $0x4] ss:$16 sps:$4 sm:$0xff]   ;;  %vm284_vm2 = vcmask 1044480   ;;  %vm285_vm3 = vcmask 1045504   ;;  %v775_v10 = vld [vmem:[%s985_s30 + $0xc] ss:$16 sps:$4 sm:$0xff]  }
  0x33   : > { %300 = vmatprep.subr.bf16.mxu0 %v773_v9  ;;  %v777_v11 = vld [vmem:[%s985_s30] ss:$16 sps:$4 sm:$0xff]   ;;  %v778_v12 = vld [vmem:[%s985_s30 + $0x8] ss:$16 sps:$4 sm:$0xff]   ;;  %v867_v13 = vmov 65535   ;;  %v868_v15 = vmov 0   ;;  %343 = vmatprep.subr.bf16.mxu1 %v775_v10 }
  0x34   : > { %v286_v14 = vsel %vm284_vm2, 4294967295, %v867_v13  ;;  %332 = vmatprep.mubr.bf16.mxu0 %v868_v15  ;;  %v779_v16 = vld [vmem:[%s985_s30 + $0x24] ss:$16 sps:$4 sm:$0x3f]   ;;  %375 = vmatprep.mubr.bf16.mxu1 %v868_v15  ;;  %vm280_vm4 = vcmask 220160   ;;  %p679_p3 = scmp.ne.s32.totalorder %s852_s17, 0 }
  0x35   : > { %v287_v17 = vsel %vm285_vm3, %v286_v14, 0  ;;  %301 = vmatpush1.bf16.msra.mxu0 %v777_v11  ;;  %344 = vmatpush1.bf16.msra.mxu1 %v778_v12  ;;  %v781_v18 = vld [vmem:[%s985_s30 + $0x2c] ss:$16 sps:$4 sm:$0x3f]   ;;  %v785_v25 = vld [vmem:[%s1107_s1] sm:$0x1f]  }
  0x36   : > { %v292_v19 = vand.u32 %v779_v16, %v287_v17  ;;  %v783_v20 = vld [vmem:[%s985_s30 + $0x20] ss:$16 sps:$4 sm:$0x3f]   ;;  %v784_v21 = vld [vmem:[%s985_s30 + $0x28] ss:$16 sps:$4 sm:$0x3f]   ;;  %v298_v22 = vand.u32 %v781_v18, %v287_v17 }
  0x37   : > { %v289_v23 = vand.u32 %v783_v20, %v287_v17  ;;  %v295_v24 = vand.u32 %v784_v21, %v287_v17  ;;  %vm396_vm5 = vcmask (!%p679_p3), 1041408   ;;  %v389_v62 = vld [vmem:[#allocation2] sm:$0xff] (!%p679_p3)  ;;  %v412_v63 = vld [vmem:[#allocation3] sm:$0xff] (!%p679_p3)  ;;  %vm408_vm6 = vcmask (!%p679_p3), 7168   ;;  %v390_v4 = vld [vmem:[#allocation2 + $0x8] sm:$0x3] (!%p679_p3) }
  0x38   : > { %302 = vmatprep.subr.bf16.mxu0 %v292_v19  ;;  %345 = vmatprep.subr.bf16.mxu1 %v298_v22  ;;  %v413_v5 = vld [vmem:[#allocation3 + $0x8] sm:$0x3] (!%p679_p3)  ;;  %vm410_vm7 = vcmask (!%p679_p3), 1024  }
  0x39   : > { %303 = vmatpush1.bf16.msra.mxu0 %v289_v23  ;;  %346 = vmatpush1.bf16.msra.mxu1 %v295_v24 }
  0x3c   : > { %677 = vmatmul.mubr.msk.bf16.vlgmr.msra.gmra.mrb[0].mxu0 %vm280_vm4, %v785_v25  ;;  %678 = vmatmul.mubr.msk.bf16.vlgmr.msra.gmra.mrb[0].mxu1 %vm280_vm4, %v785_v25 }
 0x10c   : > { %388 = sbr.rel (%p679_p3) target bundleno = 430 (0x1ae), region = 63 }
 0x10f   : > { %v1000_v26 = vpop.f32.mrb[0].mxu0  ;;  %v1002_v27 = vpop.f32.mrb[0].mxu1 }
 0x110   : > { %v1004_v28 = vpop.f32.mrb[1].mxu0  ;;  %v1006_v29 = vpop.f32.mrb[1].mxu1  ;;  %v414_v34 = vmul.f32 (!%p679_p3), %v1000_v26, %v1000_v26  ;;  %v416_v36 = vmul.f32 (!%p679_p3), %v1002_v27, %v1002_v27 }
 0x111   : > { %v1008_v30 = vpop.f32.mrb[2].mxu0  ;;  %v1010_v31 = vpop.f32.mrb[2].mxu1  ;;  %v415_v35 = vmul.f32 (!%p679_p3), %v1004_v28, %v1004_v28  ;;  %v417_v37 = vmul.f32 (!%p679_p3), %v1006_v29, %v1006_v29  ;;  %v391_v38 = vadd.f32 (!%p679_p3), %v1004_v28, %v1000_v26 }
 0x112   : > { %v1012_v32 = vpop.f32.mrb[3].mxu0  ;;  %v1014_v33 = vpop.f32.mrb[3].mxu1  ;;  %v418_v39 = vmul.f32 (!%p679_p3), %v1008_v30, %v1008_v30  ;;  %v420_v42 = vmul.f32 (!%p679_p3), %v1010_v31, %v1010_v31  ;;  %v397_v44 = vsel (!%p679_p3), %vm396_vm5, %v1008_v30, 0.0  ;;  %v400_v55 = vsel (!%p679_p3), %vm396_vm5, %v1010_v31, 0.0 }
 0x113   : > { %v419_v40 = vmul.f32 %v1012_v32, %v1012_v32  ;;  %v422_v41 = vadd.f32 %v415_v35, %v414_v34  ;;  %v421_v43 = vmul.f32 %v1014_v33, %v1014_v33  ;;  %v392_v45 = vadd.f32 %v391_v38, %v1002_v27 }
 0x114   : > { %v427_v46 = vsel %vm396_vm5, %v418_v39, 0.0  ;;  %v398_v48 = vsel %vm396_vm5, %v1012_v32, 0.0  ;;  %v430_v51 = vsel %vm396_vm5, %v420_v42, 0.0  ;;  %v402_v58 = vsel %vm396_vm5, %v1014_v33, 0.0 }
 0x115   : > { %v428_v47 = vsel %vm396_vm5, %v419_v40, 0.0  ;;  %v423_v49 = vadd.f32 %v422_v41, %v416_v36  ;;  %v393_v52 = vadd.f32 %v392_v45, %v1006_v29  ;;  %v432_v53 = vsel %vm396_vm5, %v421_v43, 0.0 }
 0x116   : > { %v429_v50 = vadd.f32 %v428_v47, %v427_v46  ;;  %v399_v54 = vadd.f32 %v398_v48, %v397_v44 }
 0x117   : > { %v424_v56 = vadd.f32 %v423_v49, %v417_v37  ;;  %394 = vadd.xlane.f32.xlu0 %v393_v52 }
 0x118   : > { %v431_v57 = vadd.f32 %v430_v51, %v429_v50  ;;  %v401_v59 = vadd.f32 %v400_v55, %v399_v54 }
 0x119   : > { %425 = vadd.xlane.f32.xlu1 %v424_v56 }
 0x11a   : > { %v433_v60 = vadd.f32 %v432_v53, %v431_v57  ;;  %v403_v61 = vadd.f32 %v402_v58, %v401_v59 }
 0x11c   : > { %404 = vadd.xlane.f32.xlu0 %v403_v61 }
 0x11d   : > { %434 = vadd.xlane.f32.xlu1 %v433_v60 }
 0x1a4   : > { %v395_v0 = vpop.xlane.xlu0 %394 }
 0x1a5   : > { %v406_v2 = vadd.f32 %v395_v0, %v389_v62 }
 0x1a6   : > { %v426_v1 = vpop.xlane.xlu1 %425 }
 0x1a7   : > { %v436_v3 = vadd.f32 %v426_v1, %v412_v63  ;;  %409 = vst.msk [vmem:[#allocation2] sm:$0xff] %vm408_vm6, %v406_v2 }
 0x1a9   : > { %438 = vst.msk [vmem:[#allocation3] sm:$0xff] %vm408_vm6, %v436_v3  ;;  %v405_v6 = vpop.xlane.xlu0 %404 }
 0x1aa   : > { %v435_v7 = vpop.xlane.xlu1 %434  ;;  %v407_v8 = vadd.f32 %v405_v6, %v390_v4 }
 0x1ab   : > { %v437_v9 = vadd.f32 %v435_v7, %v413_v5 }
 0x1ac   : > { %411 = vst.msk [vmem:[#allocation2 + $0x8] sm:$0x3] %vm410_vm7, %v407_v8 }
 0x1ad   : > { %439 = vst.msk [vmem:[#allocation3 + $0x8] sm:$0x3] %vm410_vm7, %v437_v9 }
 0x1ae PF: > { %p680_p4 = scmp.ne.s32.totalorder %s852_s17, 1 }
 0x1af   : > { %v444_v10 = vld [vmem:[#allocation2] sm:$0xff] (!%p680_p4)  ;;  %v869_v13 = vmov (!%p680_p4), 0   ;;  %v870_v36 = vmov (!%p680_p4), 1   ;;  %v481_v38 = vld [vmem:[%s1108_s2 + $0x8] sm:$0x3] (!%p680_p4) }
 0x1b0   : > { %443 = sbr.rel (%p680_p4) target bundleno = 599 (0x257), region = 67  ;;  %v448_v11 = vld [vmem:[#allocation3] sm:$0xff] (!%p680_p4)  ;;  %786 = vset.pattern.permute.xlu0 (!%p680_p4), %v869_v13  ;;  %v446_v14 = vmul.f32 (!%p680_p4), 0.00055555557, %v444_v10  ;;  %787 = vset.pattern.permute.xlu1 (!%p680_p4), %v869_v13  ;;  %v480_v35 = vld [vmem:[%s1108_s2] sm:$0xff] (!%p680_p4) }
 0x1b1   : > { %v450_v15 = vmul.f32 (!%p680_p4), 0.00055555557, %v448_v11 }
 0x1b2   : > { %464 = vperm.xlu0 (!%p680_p4), %786, %v446_v14   ;;  %v452_v18 = vmul.f32 (!%p680_p4), %v446_v14, %v446_v14 }
 0x1b3   : > { %v445_v12 = vld [vmem:[#allocation2 + $0x8] sm:$0x3] (!%p680_p4) }
 0x1b4   : > { %v447_v16 = vmul.f32 (!%p680_p4), 0.00055555557, %v445_v12  ;;  %v449_v17 = vld [vmem:[#allocation3 + $0x8] sm:$0x3] (!%p680_p4)  ;;  %v454_v21 = vsub.f32 (!%p680_p4), %v450_v15, %v452_v18 }
 0x1b5   : > { %v451_v19 = vmul.f32 (!%p680_p4), 0.00055555557, %v449_v17 }
 0x1b6   : > { %v453_v20 = vmul.f32 (!%p680_p4), %v447_v16, %v447_v16  ;;  %v456_v23 = vmax.f32 (!%p680_p4), %v454_v21, 0.0  ;;  %469 = vperm.xlu0 (!%p680_p4), %786, %v447_v16  }
 0x1b8   : > { %v455_v22 = vsub.f32 %v451_v19, %v453_v20  ;;  %v458_v25 = vadd.f32 1e-05, %v456_v23 }
 0x1ba   : > { %v457_v24 = vmax.f32 %v455_v22, 0.0  ;;  %790 = vrsqrt.f32 %v458_v25  ;;  %788 = vset.pattern.permute.xlu0 %v870_v36 }
 0x1bb   : > { %504 = vperm.xlu0 %788, %v480_v35  }
 0x1bc   : > { %v459_v34 = vadd.f32 1e-05, %v457_v24 }
 0x1be   : > { %792 = vrsqrt.f32 %v459_v34 }
 0x1c4   : > { %v791_v37 = vpop.eup %790 }
 0x1c5   : > { %v482_v40 = vmul.f32 %v791_v37, %v480_v35 }
 0x1c7   : > { %486 = vperm.xlu1 %787, %v482_v40  }
 0x1c8   : > { %v793_v39 = vpop.eup %792 }
 0x1c9   : > { %v483_v41 = vmul.f32 %v793_v39, %v481_v38 }
 0x1cb   : > { %491 = vperm.xlu1 %787, %v483_v41  }
 0x1cf   : > { %789 = vset.pattern.permute.xlu1 %v870_v36 }
 0x1d0   : > { %509 = vperm.xlu1 %789, %v481_v38  }
 0x231   : > { %v465_v42 = vpop.permute.xlu0 %464 }
 0x232   : > { %v472_v44 = vsub.f32 %v1000_v26, %v465_v42  ;;  %v473_v45 = vsub.f32 %v1004_v28, %v465_v42  ;;  %v474_v46 = vsub.f32 %v1002_v27, %v465_v42  ;;  %v475_v47 = vsub.f32 %v1006_v29, %v465_v42 }
 0x235   : > { %v470_v43 = vpop.permute.xlu0 %469 }
 0x236   : > { %v476_v27 = vsub.f32 %v1008_v30, %v470_v43  ;;  %v477_v29 = vsub.f32 %v1012_v32, %v470_v43  ;;  %v478_v61 = vsub.f32 %v1010_v31, %v470_v43  ;;  %v479_v62 = vsub.f32 %v1014_v33, %v470_v43 }
 0x23a   : > { %v505_v49 = vpop.permute.xlu0 %504 }
 0x246   : > { %v487_v48 = vpop.permute.xlu1 %486 }
 0x247   : > { %v494_v50 = vmul.f32 %v487_v48, %v472_v44  ;;  %v495_v51 = vmul.f32 %v487_v48, %v473_v45  ;;  %v496_v52 = vmul.f32 %v487_v48, %v474_v46  ;;  %v497_v53 = vmul.f32 %v487_v48, %v475_v47 }
 0x249   : > { %v512_v54 = vadd.f32 %v505_v49, %v494_v50  ;;  %v513_v55 = vadd.f32 %v505_v49, %v495_v51  ;;  %v514_v56 = vadd.f32 %v505_v49, %v496_v52  ;;  %v515_v57 = vadd.f32 %v505_v49, %v497_v53 }
 0x24a   : > { %v492_v58 = vpop.permute.xlu1 %491 }
 0x24b   : > { %v520_v26 = vmax.f32 %v512_v54, 0.0  ;;  %v521_v59 = vmax.f32 %v513_v55, 0.0  ;;  %v522_v28 = vmax.f32 %v514_v56, 0.0  ;;  %v523_v60 = vmax.f32 %v515_v57, 0.0 }
 0x24c   : > { %v498_v1 = vmul.f32 %v492_v58, %v476_v27  ;;  %v499_v2 = vmul.f32 %v492_v58, %v477_v29  ;;  %v500_v3 = vmul.f32 %v492_v58, %v478_v61  ;;  %v501_v4 = vmul.f32 %v492_v58, %v479_v62 }
 0x24d   : > { %v691_v63 = vpack.c.bf16 %v521_v59, %v520_v26  ;;  %v692_v0 = vpack.c.bf16 %v523_v60, %v522_v28 }
 0x24f   : > { %552 = vst [vmem:[%s987_s4] sm:$0xff] %v691_v63  ;;  %553 = vst [vmem:[%s987_s4 + $0x8] sm:$0xff] %v692_v0  ;;  %v510_v5 = vpop.permute.xlu1 %509 }
 0x250   : > { %v516_v6 = vadd.f32 %v510_v5, %v498_v1  ;;  %v517_v7 = vadd.f32 %v510_v5, %v499_v2  ;;  %v518_v30 = vadd.f32 %v510_v5, %v500_v3  ;;  %v519_v8 = vadd.f32 %v510_v5, %v501_v4 }
 0x252   : > { %v524_v32 = vmax.f32 %v516_v6, 0.0  ;;  %v525_v9 = vmax.f32 %v517_v7, 0.0  ;;  %v526_v31 = vmax.f32 %v518_v30, 0.0  ;;  %v527_v10 = vmax.f32 %v519_v8, 0.0 }
 0x254   : > { %v693_v33 = vpack.c.bf16 %v525_v9, %v524_v32  ;;  %v694_v11 = vpack.c.bf16 %v527_v10, %v526_v31 }
 0x256   : > { %554 = vst [vmem:[%s987_s4 + $0x10] sm:$0x11] %v693_v33  ;;  %555 = vst [vmem:[%s987_s4 + $0x18] sm:$0x11] %v694_v11 }
 0x257 PF: > { %562 = sbr.rel (!%p964_p9) target bundleno = 607 (0x25f), region = 71  ;;  %v579_v12 = vld [vmem:[%s987_s4] sm:$0xff] (%p964_p9)  ;;  %v581_v13 = vld [vmem:[%s987_s4 + $0x8] sm:$0xff] (%p964_p9) }
 0x258   : > { %s563_s11 = smul.u32 (%p964_p9), %s848_s16, %s852_s17 }
 0x25a   : > { %s695_s21 = sshll.u32 (%p964_p9), %s563_s11, 4 }
 0x25b   : > { %s566_s26 = scalar_lea.vmem (%p964_p9), %s1109_s3, %s695_s21 }
 0x25c   : > { %580 = vst [vmem:[%s566_s26] sm:$0xff] (%p964_p9), %v579_v12  ;;  %582 = vst [vmem:[%s566_s26 + $0x8] sm:$0xff] (%p964_p9), %v581_v13 }
 0x25d   : > { %v583_v14 = vld [vmem:[%s987_s4 + $0x10] sm:$0xff] (%p964_p9)  ;;  %v585_v15 = vld [vmem:[%s987_s4 + $0x18] sm:$0xff] (%p964_p9) }
 0x25e   : > { %584 = vst [vmem:[%s566_s26 + $0x40] sm:$0xff] %v583_v14  ;;  %586 = vst [vmem:[%s566_s26 + $0x48] sm:$0xff] %v585_v15 }
 0x25f PF: > { %s13_s20 = sadd.s32 1, %s864_s20   ;;  %s1112_s12 = smov %s836_s13 }
 0x260   : > { %p10_p5 = scmp.ge.s32.totalorder %s13_s20, 10   ;;  %s1113_s13 = smov %s969_s6 }
 0x261   : > { %s1114_s14 = smov %s844_s15  ;;  %s1115_s15 = smov %s957_s28 }
 0x262   : > { %s1116_s16 = smov %s856_s18  ;;  %s1117_s17 = smov %s860_s19 }
 0x263   : > { %s1118_s18 = smov %s1121_s22  ;;  %s1119_s19 = smov %s1125_s23 }
 0x264   :  { %12 = sbr.rel (!%p10_p5) target bundleno = 5 (0x5), region = 125 }

// kernel: tile.8
= control target key start
LH: loop header
LB: loop body
LE: loop exit
PB: predicated region body
PF: predicated region fallthrough
CT: control target
= control target key end

     0   :  { %s58_s0 = inlined_call_operand.vmem [shape: f32[8], index: 0, kind: input, shape index: {}]   ;;  %s59_s1 = inlined_call_operand.vmem [shape: f32[49,8], index: 1, kind: output, shape index: {}]  }
   0x1   :  { %v4_v0 = vld [vmem:[%s58_s0] ss:$0 sm:$0xff] }
   0x2   :  { %5 = vst [vmem:[%s59_s1] sm:$0xff] %v4_v0  ;;  %18 = vst [vmem:[%s59_s1 + $0x8] sm:$0xff] %v4_v0 }
   0x3   :  { %19 = vst [vmem:[%s59_s1 + $0x10] sm:$0xff] %v4_v0  ;;  %20 = vst [vmem:[%s59_s1 + $0x18] sm:$0xff] %v4_v0 }
   0x4   :  { %21 = vst [vmem:[%s59_s1 + $0x20] sm:$0xff] %v4_v0  ;;  %22 = vst [vmem:[%s59_s1 + $0x28] sm:$0xff] %v4_v0 }
   0x5   :  { %23 = vst [vmem:[%s59_s1 + $0x30] sm:$0xff] %v4_v0 }

// kernel: tile.0
= control target key start
LH: loop header
LB: loop body
LE: loop exit
PB: predicated region body
PF: predicated region fallthrough
CT: control target
= control target key end

     0   :  { %vm3_vm0 = vcmask 7168   ;;  %s623_s12 = smov 127   ;;  %s625_s19 = smov 125   ;;  %s1164_s0 = inlined_call_operand.vmem [shape: f32[49,8], index: 0, kind: input, shape index: {}]   ;;  %s1165_s1 = inlined_call_operand.vmem [shape: f32[392,1], index: 1, kind: output, shape index: {}]  }
   0x1   :  { %v643_v0 = vld [vmem:[%s1164_s0] sm:$0xff]   ;;  %v648_v1 = vld [vmem:[%s1164_s0 + $0x10] sm:$0xff]   ;;  %v653_v2 = vld [vmem:[%s1164_s0 + $0x8] sm:$0xff]   ;;  %s626_s22 = smov 124   ;;  %s627_s25 = smov 123  }
   0x2   :  { %47 = vrot.lane.b32.xlu0 %v643_v0, %s623_s12  ;;  %65 = vrot.lane.b32.xlu1 %v648_v1, %s623_s12  ;;  %v660_v3 = vld [vmem:[%s1164_s0 + $0x18] sm:$0xff]   ;;  %v665_v4 = vld [vmem:[%s1164_s0 + $0x20] sm:$0xff]   ;;  %s628_s28 = smov 122   ;;  %s629_s6 = smov 121  }
   0x3   :  { %4 = vst.msk [vmem:[%s1165_s1] ss:$8 sm:$0xf] %vm3_vm0, %v643_v0   ;;  %5 = vst.msk [vmem:[%s1165_s1] ss:$8 sm:$0xf0] %vm3_vm0, %v643_v0  }
   0x4   :  { %467 = vst.msk [vmem:[%s1165_s1 + $0x40] ss:$8 sm:$0xf] %vm3_vm0, %v653_v2   ;;  %468 = vst.msk [vmem:[%s1165_s1 + $0x40] ss:$8 sm:$0xf0] %vm3_vm0, %v653_v2  }
   0x5   :  { %470 = vst.msk [vmem:[%s1165_s1 + $0x80] ss:$8 sm:$0xf] %vm3_vm0, %v648_v1   ;;  %471 = vst.msk [vmem:[%s1165_s1 + $0x80] ss:$8 sm:$0xf0] %vm3_vm0, %v648_v1  }
   0x6   :  { %v700_v5 = vld [vmem:[%s1164_s0 + $0x28] sm:$0xff]   ;;  %473 = vst.msk [vmem:[%s1165_s1 + $0xc0] ss:$8 sm:$0xf] %vm3_vm0, %v660_v3   ;;  %56 = vrot.lane.b32.xlu0 %v653_v2, %s623_s12  ;;  %74 = vrot.lane.b32.xlu1 %v660_v3, %s623_s12 }
   0x7   :  { %474 = vst.msk [vmem:[%s1165_s1 + $0xc0] ss:$8 sm:$0xf0] %vm3_vm0, %v660_v3   ;;  %476 = vst.msk [vmem:[%s1165_s1 + $0x100] ss:$8 sm:$0xf] %vm3_vm0, %v665_v4  }
   0x8   :  { %477 = vst.msk [vmem:[%s1165_s1 + $0x100] ss:$8 sm:$0xf0] %vm3_vm0, %v665_v4   ;;  %479 = vst.msk [vmem:[%s1165_s1 + $0x140] ss:$8 sm:$0xf] %vm3_vm0, %v700_v5  }
   0x9   :  { %480 = vst.msk [vmem:[%s1165_s1 + $0x140] ss:$8 sm:$0xf0] %vm3_vm0, %v700_v5   ;;  %v500_v6 = vld [vmem:[%s1164_s0 + $0x30] sm:$0x1]  }
   0xa   :  { %83 = vrot.lane.b32.xlu0 %v665_v4, %s623_s12  ;;  %92 = vrot.lane.b32.xlu1 %v700_v5, %s623_s12  ;;  %v519_v7 = vld [vmem:[%s1164_s0 + $0x30] sm:$0x1]  }
   0xb   :  { %v538_v8 = vld [vmem:[%s1164_s0 + $0x30] sm:$0x1]  }
   0xc   :  { %v557_v9 = vld [vmem:[%s1164_s0 + $0x30] sm:$0x1]  }
   0xd   :  { %v576_v10 = vld [vmem:[%s1164_s0 + $0x30] sm:$0x1]  }
   0xe   :  { %101 = vrot.lane.b32.xlu0 %v500_v6, %s623_s12  ;;  %s624_s12 = smov 126   ;;  %v595_v11 = vld [vmem:[%s1164_s0 + $0x30] sm:$0x1]  }
   0xf   :  { %107 = vrot.lane.b32.xlu1 %v643_v0, %s624_s12  ;;  %v481_v12 = vld [vmem:[%s1164_s0 + $0x30] sm:$0x1]  }
  0x10   :  { %482 = vst.msk [vmem:[%s1165_s1 + $0x180] sm:$0x1] %vm3_vm0, %v481_v12   ;;  %v614_v13 = vld [vmem:[%s1164_s0 + $0x30] sm:$0x1]  }
  0x12   :  { %116 = vrot.lane.b32.xlu0 %v653_v2, %s624_s12 }
  0x13   :  { %125 = vrot.lane.b32.xlu1 %v648_v1, %s624_s12 }
  0x16   :  { %134 = vrot.lane.b32.xlu0 %v660_v3, %s624_s12 }
  0x17   :  { %143 = vrot.lane.b32.xlu1 %v665_v4, %s624_s12 }
  0x1a   :  { %152 = vrot.lane.b32.xlu0 %v700_v5, %s624_s12 }
  0x1b   :  { %161 = vrot.lane.b32.xlu1 %v519_v7, %s624_s12 }
  0x1e   :  { %167 = vrot.lane.b32.xlu0 %v643_v0, %s625_s19 }
  0x1f   :  { %176 = vrot.lane.b32.xlu1 %v653_v2, %s625_s19 }
  0x22   :  { %185 = vrot.lane.b32.xlu0 %v648_v1, %s625_s19 }
  0x23   :  { %194 = vrot.lane.b32.xlu1 %v660_v3, %s625_s19 }
  0x26   :  { %203 = vrot.lane.b32.xlu0 %v665_v4, %s625_s19 }
  0x27   :  { %212 = vrot.lane.b32.xlu1 %v700_v5, %s625_s19 }
  0x2a   :  { %221 = vrot.lane.b32.xlu0 %v538_v8, %s625_s19 }
  0x2b   :  { %227 = vrot.lane.b32.xlu1 %v643_v0, %s626_s22 }
  0x2e   :  { %236 = vrot.lane.b32.xlu0 %v653_v2, %s626_s22 }
  0x2f   :  { %245 = vrot.lane.b32.xlu1 %v648_v1, %s626_s22 }
  0x32   :  { %254 = vrot.lane.b32.xlu0 %v660_v3, %s626_s22 }
  0x33   :  { %263 = vrot.lane.b32.xlu1 %v665_v4, %s626_s22 }
  0x36   :  { %272 = vrot.lane.b32.xlu0 %v700_v5, %s626_s22 }
  0x37   :  { %281 = vrot.lane.b32.xlu1 %v557_v9, %s626_s22 }
  0x3a   :  { %287 = vrot.lane.b32.xlu0 %v643_v0, %s627_s25 }
  0x3b   :  { %296 = vrot.lane.b32.xlu1 %v653_v2, %s627_s25 }
  0x3e   :  { %305 = vrot.lane.b32.xlu0 %v648_v1, %s627_s25 }
  0x3f   :  { %314 = vrot.lane.b32.xlu1 %v660_v3, %s627_s25 }
  0x42   :  { %323 = vrot.lane.b32.xlu0 %v665_v4, %s627_s25 }
  0x43   :  { %332 = vrot.lane.b32.xlu1 %v700_v5, %s627_s25 }
  0x46   :  { %341 = vrot.lane.b32.xlu0 %v576_v10, %s627_s25 }
  0x47   :  { %347 = vrot.lane.b32.xlu1 %v643_v0, %s628_s28 }
  0x4a   :  { %356 = vrot.lane.b32.xlu0 %v653_v2, %s628_s28 }
  0x4b   :  { %365 = vrot.lane.b32.xlu1 %v648_v1, %s628_s28 }
  0x4e   :  { %374 = vrot.lane.b32.xlu0 %v660_v3, %s628_s28 }
  0x4f   :  { %383 = vrot.lane.b32.xlu1 %v665_v4, %s628_s28 }
  0x52   :  { %392 = vrot.lane.b32.xlu0 %v700_v5, %s628_s28 }
  0x53   :  { %401 = vrot.lane.b32.xlu1 %v595_v11, %s628_s28 }
  0x56   :  { %407 = vrot.lane.b32.xlu0 %v643_v0, %s629_s6 }
  0x57   :  { %416 = vrot.lane.b32.xlu1 %v653_v2, %s629_s6 }
  0x5a   :  { %425 = vrot.lane.b32.xlu0 %v648_v1, %s629_s6 }
  0x5b   :  { %434 = vrot.lane.b32.xlu1 %v660_v3, %s629_s6 }
  0x5e   :  { %443 = vrot.lane.b32.xlu0 %v665_v4, %s629_s6 }
  0x5f   :  { %452 = vrot.lane.b32.xlu1 %v700_v5, %s629_s6 }
  0x62   :  { %461 = vrot.lane.b32.xlu0 %v614_v13, %s629_s6 }
  0x74   :  { %v48_v14 = vpop.permute.xlu0 %47   ;;  %v66_v15 = vpop.permute.xlu1 %65  }
  0x75   :  { %483 = vst.msk [vmem:[%s1165_s1 + $0x1] ss:$8 sm:$0xf] %vm3_vm0, %v48_v14   ;;  %484 = vst.msk [vmem:[%s1165_s1 + $0x1] ss:$8 sm:$0xf0] %vm3_vm0, %v48_v14  }
  0x76   :  { %489 = vst.msk [vmem:[%s1165_s1 + $0x81] ss:$8 sm:$0xf] %vm3_vm0, %v66_v15   ;;  %490 = vst.msk [vmem:[%s1165_s1 + $0x81] ss:$8 sm:$0xf0] %vm3_vm0, %v66_v15  }
  0x78   :  { %v57_v16 = vpop.permute.xlu0 %56   ;;  %v75_v17 = vpop.permute.xlu1 %74  }
  0x79   :  { %486 = vst.msk [vmem:[%s1165_s1 + $0x41] ss:$8 sm:$0xf] %vm3_vm0, %v57_v16   ;;  %487 = vst.msk [vmem:[%s1165_s1 + $0x41] ss:$8 sm:$0xf0] %vm3_vm0, %v57_v16  }
  0x7a   :  { %492 = vst.msk [vmem:[%s1165_s1 + $0xc1] ss:$8 sm:$0xf] %vm3_vm0, %v75_v17   ;;  %493 = vst.msk [vmem:[%s1165_s1 + $0xc1] ss:$8 sm:$0xf0] %vm3_vm0, %v75_v17  }
  0x7c   :  { %v84_v18 = vpop.permute.xlu0 %83   ;;  %v93_v19 = vpop.permute.xlu1 %92  }
  0x7d   :  { %495 = vst.msk [vmem:[%s1165_s1 + $0x101] ss:$8 sm:$0xf] %vm3_vm0, %v84_v18   ;;  %496 = vst.msk [vmem:[%s1165_s1 + $0x101] ss:$8 sm:$0xf0] %vm3_vm0, %v84_v18  }
  0x7e   :  { %498 = vst.msk [vmem:[%s1165_s1 + $0x141] ss:$8 sm:$0xf] %vm3_vm0, %v93_v19   ;;  %499 = vst.msk [vmem:[%s1165_s1 + $0x141] ss:$8 sm:$0xf0] %vm3_vm0, %v93_v19  }
  0x80   :  { %v102_v20 = vpop.permute.xlu0 %101  }
  0x81   :  { %v108_v21 = vpop.permute.xlu1 %107   ;;  %501 = vst.msk [vmem:[%s1165_s1 + $0x181] sm:$0x1] %vm3_vm0, %v102_v20  }
  0x82   :  { %502 = vst.msk [vmem:[%s1165_s1 + $0x2] ss:$8 sm:$0xf] %vm3_vm0, %v108_v21   ;;  %503 = vst.msk [vmem:[%s1165_s1 + $0x2] ss:$8 sm:$0xf0] %vm3_vm0, %v108_v21  }
  0x84   :  { %v117_v22 = vpop.permute.xlu0 %116  }
  0x85   :  { %v126_v23 = vpop.permute.xlu1 %125   ;;  %505 = vst.msk [vmem:[%s1165_s1 + $0x42] ss:$8 sm:$0xf] %vm3_vm0, %v117_v22   ;;  %506 = vst.msk [vmem:[%s1165_s1 + $0x42] ss:$8 sm:$0xf0] %vm3_vm0, %v117_v22  }
  0x86   :  { %508 = vst.msk [vmem:[%s1165_s1 + $0x82] ss:$8 sm:$0xf] %vm3_vm0, %v126_v23   ;;  %509 = vst.msk [vmem:[%s1165_s1 + $0x82] ss:$8 sm:$0xf0] %vm3_vm0, %v126_v23  }
  0x88   :  { %v135_v24 = vpop.permute.xlu0 %134  }
  0x89   :  { %v144_v25 = vpop.permute.xlu1 %143   ;;  %511 = vst.msk [vmem:[%s1165_s1 + $0xc2] ss:$8 sm:$0xf] %vm3_vm0, %v135_v24   ;;  %512 = vst.msk [vmem:[%s1165_s1 + $0xc2] ss:$8 sm:$0xf0] %vm3_vm0, %v135_v24  }
  0x8a   :  { %514 = vst.msk [vmem:[%s1165_s1 + $0x102] ss:$8 sm:$0xf] %vm3_vm0, %v144_v25   ;;  %515 = vst.msk [vmem:[%s1165_s1 + $0x102] ss:$8 sm:$0xf0] %vm3_vm0, %v144_v25  }
  0x8c   :  { %v153_v26 = vpop.permute.xlu0 %152  }
  0x8d   :  { %v162_v27 = vpop.permute.xlu1 %161   ;;  %517 = vst.msk [vmem:[%s1165_s1 + $0x142] ss:$8 sm:$0xf] %vm3_vm0, %v153_v26   ;;  %518 = vst.msk [vmem:[%s1165_s1 + $0x142] ss:$8 sm:$0xf0] %vm3_vm0, %v153_v26  }
  0x8e   :  { %520 = vst.msk [vmem:[%s1165_s1 + $0x182] sm:$0x1] %vm3_vm0, %v162_v27  }
  0x90   :  { %v168_v28 = vpop.permute.xlu0 %167  }
  0x91   :  { %v177_v29 = vpop.permute.xlu1 %176   ;;  %521 = vst.msk [vmem:[%s1165_s1 + $0x3] ss:$8 sm:$0xf] %vm3_vm0, %v168_v28   ;;  %522 = vst.msk [vmem:[%s1165_s1 + $0x3] ss:$8 sm:$0xf0] %vm3_vm0, %v168_v28  }
  0x92   :  { %524 = vst.msk [vmem:[%s1165_s1 + $0x43] ss:$8 sm:$0xf] %vm3_vm0, %v177_v29   ;;  %525 = vst.msk [vmem:[%s1165_s1 + $0x43] ss:$8 sm:$0xf0] %vm3_vm0, %v177_v29  }
  0x94   :  { %v186_v30 = vpop.permute.xlu0 %185  }
  0x95   :  { %v195_v31 = vpop.permute.xlu1 %194   ;;  %527 = vst.msk [vmem:[%s1165_s1 + $0x83] ss:$8 sm:$0xf] %vm3_vm0, %v186_v30   ;;  %528 = vst.msk [vmem:[%s1165_s1 + $0x83] ss:$8 sm:$0xf0] %vm3_vm0, %v186_v30  }
  0x96   :  { %530 = vst.msk [vmem:[%s1165_s1 + $0xc3] ss:$8 sm:$0xf] %vm3_vm0, %v195_v31   ;;  %531 = vst.msk [vmem:[%s1165_s1 + $0xc3] ss:$8 sm:$0xf0] %vm3_vm0, %v195_v31  }
  0x98   :  { %v204_v32 = vpop.permute.xlu0 %203  }
  0x99   :  { %v213_v33 = vpop.permute.xlu1 %212   ;;  %533 = vst.msk [vmem:[%s1165_s1 + $0x103] ss:$8 sm:$0xf] %vm3_vm0, %v204_v32   ;;  %534 = vst.msk [vmem:[%s1165_s1 + $0x103] ss:$8 sm:$0xf0] %vm3_vm0, %v204_v32  }
  0x9a   :  { %536 = vst.msk [vmem:[%s1165_s1 + $0x143] ss:$8 sm:$0xf] %vm3_vm0, %v213_v33   ;;  %537 = vst.msk [vmem:[%s1165_s1 + $0x143] ss:$8 sm:$0xf0] %vm3_vm0, %v213_v33  }
  0x9c   :  { %v222_v34 = vpop.permute.xlu0 %221  }
  0x9d   :  { %v228_v35 = vpop.permute.xlu1 %227   ;;  %539 = vst.msk [vmem:[%s1165_s1 + $0x183] sm:$0x1] %vm3_vm0, %v222_v34  }
  0x9e   :  { %540 = vst.msk [vmem:[%s1165_s1 + $0x4] ss:$8 sm:$0xf] %vm3_vm0, %v228_v35   ;;  %541 = vst.msk [vmem:[%s1165_s1 + $0x4] ss:$8 sm:$0xf0] %vm3_vm0, %v228_v35  }
  0xa0   :  { %v237_v36 = vpop.permute.xlu0 %236  }
  0xa1   :  { %v246_v37 = vpop.permute.xlu1 %245   ;;  %543 = vst.msk [vmem:[%s1165_s1 + $0x44] ss:$8 sm:$0xf] %vm3_vm0, %v237_v36   ;;  %544 = vst.msk [vmem:[%s1165_s1 + $0x44] ss:$8 sm:$0xf0] %vm3_vm0, %v237_v36  }
  0xa2   :  { %546 = vst.msk [vmem:[%s1165_s1 + $0x84] ss:$8 sm:$0xf] %vm3_vm0, %v246_v37   ;;  %547 = vst.msk [vmem:[%s1165_s1 + $0x84] ss:$8 sm:$0xf0] %vm3_vm0, %v246_v37  }
  0xa4   :  { %v255_v38 = vpop.permute.xlu0 %254  }
  0xa5   :  { %v264_v39 = vpop.permute.xlu1 %263   ;;  %549 = vst.msk [vmem:[%s1165_s1 + $0xc4] ss:$8 sm:$0xf] %vm3_vm0, %v255_v38   ;;  %550 = vst.msk [vmem:[%s1165_s1 + $0xc4] ss:$8 sm:$0xf0] %vm3_vm0, %v255_v38  }
  0xa6   :  { %552 = vst.msk [vmem:[%s1165_s1 + $0x104] ss:$8 sm:$0xf] %vm3_vm0, %v264_v39   ;;  %553 = vst.msk [vmem:[%s1165_s1 + $0x104] ss:$8 sm:$0xf0] %vm3_vm0, %v264_v39  }
  0xa8   :  { %v273_v40 = vpop.permute.xlu0 %272  }
  0xa9   :  { %v282_v41 = vpop.permute.xlu1 %281   ;;  %555 = vst.msk [vmem:[%s1165_s1 + $0x144] ss:$8 sm:$0xf] %vm3_vm0, %v273_v40   ;;  %556 = vst.msk [vmem:[%s1165_s1 + $0x144] ss:$8 sm:$0xf0] %vm3_vm0, %v273_v40  }
  0xaa   :  { %558 = vst.msk [vmem:[%s1165_s1 + $0x184] sm:$0x1] %vm3_vm0, %v282_v41  }
  0xac   :  { %v288_v42 = vpop.permute.xlu0 %287  }
  0xad   :  { %v297_v43 = vpop.permute.xlu1 %296   ;;  %559 = vst.msk [vmem:[%s1165_s1 + $0x5] ss:$8 sm:$0xf] %vm3_vm0, %v288_v42   ;;  %560 = vst.msk [vmem:[%s1165_s1 + $0x5] ss:$8 sm:$0xf0] %vm3_vm0, %v288_v42  }
  0xae   :  { %562 = vst.msk [vmem:[%s1165_s1 + $0x45] ss:$8 sm:$0xf] %vm3_vm0, %v297_v43   ;;  %563 = vst.msk [vmem:[%s1165_s1 + $0x45] ss:$8 sm:$0xf0] %vm3_vm0, %v297_v43  }
  0xb0   :  { %v306_v44 = vpop.permute.xlu0 %305  }
  0xb1   :  { %v315_v45 = vpop.permute.xlu1 %314   ;;  %565 = vst.msk [vmem:[%s1165_s1 + $0x85] ss:$8 sm:$0xf] %vm3_vm0, %v306_v44   ;;  %566 = vst.msk [vmem:[%s1165_s1 + $0x85] ss:$8 sm:$0xf0] %vm3_vm0, %v306_v44  }
  0xb2   :  { %568 = vst.msk [vmem:[%s1165_s1 + $0xc5] ss:$8 sm:$0xf] %vm3_vm0, %v315_v45   ;;  %569 = vst.msk [vmem:[%s1165_s1 + $0xc5] ss:$8 sm:$0xf0] %vm3_vm0, %v315_v45  }
  0xb4   :  { %v324_v46 = vpop.permute.xlu0 %323  }
  0xb5   :  { %v333_v47 = vpop.permute.xlu1 %332   ;;  %571 = vst.msk [vmem:[%s1165_s1 + $0x105] ss:$8 sm:$0xf] %vm3_vm0, %v324_v46   ;;  %572 = vst.msk [vmem:[%s1165_s1 + $0x105] ss:$8 sm:$0xf0] %vm3_vm0, %v324_v46  }
  0xb6   :  { %574 = vst.msk [vmem:[%s1165_s1 + $0x145] ss:$8 sm:$0xf] %vm3_vm0, %v333_v47   ;;  %575 = vst.msk [vmem:[%s1165_s1 + $0x145] ss:$8 sm:$0xf0] %vm3_vm0, %v333_v47  }
  0xb8   :  { %v342_v48 = vpop.permute.xlu0 %341  }
  0xb9   :  { %v348_v49 = vpop.permute.xlu1 %347   ;;  %577 = vst.msk [vmem:[%s1165_s1 + $0x185] sm:$0x1] %vm3_vm0, %v342_v48  }
  0xba   :  { %578 = vst.msk [vmem:[%s1165_s1 + $0x6] ss:$8 sm:$0xf] %vm3_vm0, %v348_v49   ;;  %579 = vst.msk [vmem:[%s1165_s1 + $0x6] ss:$8 sm:$0xf0] %vm3_vm0, %v348_v49  }
  0xbc   :  { %v357_v50 = vpop.permute.xlu0 %356  }
  0xbd   :  { %v366_v51 = vpop.permute.xlu1 %365   ;;  %581 = vst.msk [vmem:[%s1165_s1 + $0x46] ss:$8 sm:$0xf] %vm3_vm0, %v357_v50   ;;  %582 = vst.msk [vmem:[%s1165_s1 + $0x46] ss:$8 sm:$0xf0] %vm3_vm0, %v357_v50  }
  0xbe   :  { %584 = vst.msk [vmem:[%s1165_s1 + $0x86] ss:$8 sm:$0xf] %vm3_vm0, %v366_v51   ;;  %585 = vst.msk [vmem:[%s1165_s1 + $0x86] ss:$8 sm:$0xf0] %vm3_vm0, %v366_v51  }
  0xc0   :  { %v375_v52 = vpop.permute.xlu0 %374  }
  0xc1   :  { %v384_v53 = vpop.permute.xlu1 %383   ;;  %587 = vst.msk [vmem:[%s1165_s1 + $0xc6] ss:$8 sm:$0xf] %vm3_vm0, %v375_v52   ;;  %588 = vst.msk [vmem:[%s1165_s1 + $0xc6] ss:$8 sm:$0xf0] %vm3_vm0, %v375_v52  }
  0xc2   :  { %590 = vst.msk [vmem:[%s1165_s1 + $0x106] ss:$8 sm:$0xf] %vm3_vm0, %v384_v53   ;;  %591 = vst.msk [vmem:[%s1165_s1 + $0x106] ss:$8 sm:$0xf0] %vm3_vm0, %v384_v53  }
  0xc4   :  { %v393_v54 = vpop.permute.xlu0 %392  }
  0xc5   :  { %v402_v55 = vpop.permute.xlu1 %401   ;;  %593 = vst.msk [vmem:[%s1165_s1 + $0x146] ss:$8 sm:$0xf] %vm3_vm0, %v393_v54   ;;  %594 = vst.msk [vmem:[%s1165_s1 + $0x146] ss:$8 sm:$0xf0] %vm3_vm0, %v393_v54  }
  0xc6   :  { %596 = vst.msk [vmem:[%s1165_s1 + $0x186] sm:$0x1] %vm3_vm0, %v402_v55  }
  0xc8   :  { %v408_v56 = vpop.permute.xlu0 %407  }
  0xc9   :  { %v417_v57 = vpop.permute.xlu1 %416   ;;  %597 = vst.msk [vmem:[%s1165_s1 + $0x7] ss:$8 sm:$0xf] %vm3_vm0, %v408_v56   ;;  %598 = vst.msk [vmem:[%s1165_s1 + $0x7] ss:$8 sm:$0xf0] %vm3_vm0, %v408_v56  }
  0xca   :  { %600 = vst.msk [vmem:[%s1165_s1 + $0x47] ss:$8 sm:$0xf] %vm3_vm0, %v417_v57   ;;  %601 = vst.msk [vmem:[%s1165_s1 + $0x47] ss:$8 sm:$0xf0] %vm3_vm0, %v417_v57  }
  0xcc   :  { %v426_v58 = vpop.permute.xlu0 %425  }
  0xcd   :  { %v435_v59 = vpop.permute.xlu1 %434   ;;  %603 = vst.msk [vmem:[%s1165_s1 + $0x87] ss:$8 sm:$0xf] %vm3_vm0, %v426_v58   ;;  %604 = vst.msk [vmem:[%s1165_s1 + $0x87] ss:$8 sm:$0xf0] %vm3_vm0, %v426_v58  }
  0xce   :  { %606 = vst.msk [vmem:[%s1165_s1 + $0xc7] ss:$8 sm:$0xf] %vm3_vm0, %v435_v59   ;;  %607 = vst.msk [vmem:[%s1165_s1 + $0xc7] ss:$8 sm:$0xf0] %vm3_vm0, %v435_v59  }
  0xd0   :  { %v444_v60 = vpop.permute.xlu0 %443  }
  0xd1   :  { %v453_v61 = vpop.permute.xlu1 %452   ;;  %609 = vst.msk [vmem:[%s1165_s1 + $0x107] ss:$8 sm:$0xf] %vm3_vm0, %v444_v60   ;;  %610 = vst.msk [vmem:[%s1165_s1 + $0x107] ss:$8 sm:$0xf0] %vm3_vm0, %v444_v60  }
  0xd2   :  { %612 = vst.msk [vmem:[%s1165_s1 + $0x147] ss:$8 sm:$0xf] %vm3_vm0, %v453_v61   ;;  %613 = vst.msk [vmem:[%s1165_s1 + $0x147] ss:$8 sm:$0xf0] %vm3_vm0, %v453_v61  }
  0xd4   :  { %v462_v62 = vpop.permute.xlu0 %461  }
  0xd5   :  { %615 = vst.msk [vmem:[%s1165_s1 + $0x187] sm:$0x1] %vm3_vm0, %v462_v62  }

// kernel: small_cnn_forward.3
= control target key start
LH: loop header
LB: loop body
LE: loop exit
PB: predicated region body
PF: predicated region fallthrough
CT: control target
= control target key end

     0   :  { %v12379_v0 = vmov 0.0   ;;  %vm10106_vm0 = vmmov 0   ;;  %vm325_vm1 = vcmask 1044480   ;;  %vm249_vm2 = vcmask 736256   ;;  %s12368_s2 = inlined_call_operand.vmem [shape: bf16[90,10], index: 2, kind: input, shape index: {}]   ;;  %s12369_s0 = inlined_call_operand.vmem [shape: bf16[392,90], index: 0, kind: input, shape index: {}]   ;;  %s12370_s1 = inlined_call_operand.vmem [shape: f32[392,1], index: 1, kind: input, shape index: {}]   ;;  %s12371_s4 = inlined_call_operand.vmem [shape: f32[9,10,10], index: 4, kind: input, shape index: {}]   ;;  %s12372_s3 = inlined_call_operand.vmem [shape: f32[2,10], index: 3, kind: input, shape index: {}]   ;;  %s12373_s6 = inlined_call_operand.vmem [shape: f32[9,10,10], index: 6, kind: input, shape index: {}]   ;;  %s12374_s5 = inlined_call_operand.vmem [shape: f32[2,10], index: 5, kind: input, shape index: {}]   ;;  %s12375_s7 = inlined_call_operand.vmem [shape: f32[1,10], index: 7, kind: input, shape index: {}]   ;;  %s12376_s8 = inlined_call_operand.vmem [shape: f32[8,10], index: 8, kind: output, shape index: {}]  }
   0x1   :  { %8817 = vmatprep.subr.bf16.mxu0 %v12379_v0  ;;  %v10070_v1 = vld [vmem:[%s12368_s2] sm:$0xff]   ;;  %8829 = vmatprep.mubr.msk.bf16.mxu0 %vm10106_vm0, %v12379_v0  ;;  %v10071_v2 = vld [vmem:[%s12368_s2 + $0x8] sm:$0xff]   ;;  %v10072_v3 = vld [vmem:[%s12368_s2 + $0x10] sm:$0xff]   ;;  %v10107_v21 = vmov 0   ;;  %vm561_vm3 = vcmask 80896   ;;  %vm1382_vm4 = vcmask 1041408  }
   0x2   :  { %8933 = vmatprep.mubr.msk.f32.mxu1 %vm10106_vm0, %v12379_v0  ;;  %8818 = vmatpush3.bf16.msra.mxu0 %v10070_v1  ;;  %v10073_v4 = vld [vmem:[%s12368_s2 + $0x18] sm:$0xff]   ;;  %v10074_v5 = vld [vmem:[%s12368_s2 + $0x20] sm:$0xff]   ;;  %v10075_v6 = vld [vmem:[%s12368_s2 + $0x28] sm:$0x1f]   ;;  %vm10109_vm5 = vmmov 1  }
   0x3   :  { %8819 = vmatprep.subr.bf16.mxu0 %v12379_v0  ;;  %v327_v7 = vsel %vm325_vm1, %v10075_v6, 0  ;;  %v10076_v8 = vld [vmem:[%s12369_s0] sm:$0xff]   ;;  %v10077_v9 = vld [vmem:[%s12369_s0 + $0x8] sm:$0xff]   ;;  %v10078_v10 = vld [vmem:[%s12369_s0 + $0x10] sm:$0xff]   ;;  %10068 = vset.pattern.permute.xlu0 %v10107_v21 }
   0x4   :  { %v10079_v11 = vld [vmem:[%s12369_s0 + $0x18] sm:$0xff]   ;;  %v10080_v12 = vld [vmem:[%s12369_s0 + $0x20] sm:$0xff]   ;;  %v10081_v13 = vld [vmem:[%s12369_s0 + $0x28] sm:$0xff]   ;;  %10069 = vset.pattern.permute.xlu1 %v10107_v21 }
   0x5   :  { %v10082_v14 = vld [vmem:[%s12369_s0 + $0x30] sm:$0xff]   ;;  %v10083_v15 = vld [vmem:[%s12369_s0 + $0x38] sm:$0xff]   ;;  %v10084_v16 = vld [vmem:[%s12369_s0 + $0x40] sm:$0xff]  }
   0x6   :  { %8820 = vmatpush3.bf16.msra.mxu0 %v10071_v2  ;;  %v10085_v17 = vld [vmem:[%s12369_s0 + $0x48] sm:$0xff]   ;;  %v10086_v18 = vld [vmem:[%s12369_s0 + $0x50] sm:$0xff]   ;;  %v10087_v19 = vld [vmem:[%s12369_s0 + $0x58] sm:$0xff]  }
   0x7   :  { %8821 = vmatprep.subr.bf16.mxu0 %v12379_v0  ;;  %v10088_v20 = vld [vmem:[%s12369_s0 + $0x60] sm:$0xff]   ;;  %v1032_v22 = vld [vmem:[%s12370_s1 + $0x8] sm:$0xff]  ;;  %v1033_v24 = vld [vmem:[%s12370_s1 + $0x10] sm:$0xff] }
   0x8   :  { %1087 = vperm.xlu0 %10068, %v1032_v22   ;;  %v10089_v23 = vld [vmem:[%s12369_s0 + $0x68] sm:$0xff]   ;;  %v1031_v25 = vld [vmem:[%s12370_s1] sm:$0xff]  ;;  %1092 = vperm.xlu1 %10069, %v1033_v24   ;;  %v1038_v26 = vld [vmem:[%s12370_s1 + $0x38] sm:$0xff] }
   0x9   :  { %v1039_v27 = vld [vmem:[%s12370_s1 + $0x40] sm:$0xff]  ;;  %v10090_v28 = vld [vmem:[%s12369_s0 + $0x70] sm:$0xff]   ;;  %v1040_v29 = vld [vmem:[%s12370_s1 + $0x48] sm:$0xff] }
   0xa   :  { %8822 = vmatpush3.bf16.msra.mxu0 %v10072_v3  ;;  %v1045_v30 = vld [vmem:[%s12370_s1 + $0x70] sm:$0xff]  ;;  %v1046_v31 = vld [vmem:[%s12370_s1 + $0x78] sm:$0xff]  ;;  %v1047_v32 = vld [vmem:[%s12370_s1 + $0x80] sm:$0xff] }
   0xb   :  { %8823 = vmatprep.subr.bf16.mxu0 %v12379_v0  ;;  %v10091_v33 = vld [vmem:[%s12369_s0 + $0x78] sm:$0xff]   ;;  %v1035_v35 = vld [vmem:[%s12370_s1 + $0x20] sm:$0xff]  ;;  %v1041_v36 = vld [vmem:[%s12370_s1 + $0x50] sm:$0xff] }
   0xc   :  { %1082 = vperm.xlu0 %10068, %v1031_v25   ;;  %1117 = vperm.xlu1 %10069, %v1038_v26   ;;  %v1034_v34 = vld [vmem:[%s12370_s1 + $0x18] sm:$0xff]  ;;  %v10092_v38 = vld [vmem:[%s12369_s0 + $0x80] sm:$0xff]   ;;  %v1048_v39 = vld [vmem:[%s12370_s1 + $0x88] sm:$0xff] }
   0xd   :  { %v1042_v37 = vld [vmem:[%s12370_s1 + $0x58] sm:$0xff]  ;;  %v1049_v40 = vld [vmem:[%s12370_s1 + $0x90] sm:$0xff]  ;;  %v1036_v41 = vld [vmem:[%s12370_s1 + $0x28] sm:$0xff] }
   0xe   :  { %8824 = vmatpush3.bf16.msra.mxu0 %v10073_v4  ;;  %v1037_v42 = vld [vmem:[%s12370_s1 + $0x30] sm:$0xff]  ;;  %v10093_v43 = vld [vmem:[%s12369_s0 + $0x88] sm:$0xff]   ;;  %v1043_v44 = vld [vmem:[%s12370_s1 + $0x60] sm:$0xff] }
   0xf   :  { %8825 = vmatprep.subr.bf16.mxu0 %v12379_v0  ;;  %v1044_v45 = vld [vmem:[%s12370_s1 + $0x68] sm:$0xff]  ;;  %v1050_v46 = vld [vmem:[%s12370_s1 + $0x98] sm:$0xff]  ;;  %v1051_v47 = vld [vmem:[%s12370_s1 + $0xa0] sm:$0xff] }
  0x10   :  { %1122 = vperm.xlu0 %10068, %v1039_v27   ;;  %1127 = vperm.xlu1 %10069, %v1040_v29   ;;  %v10094_v48 = vld [vmem:[%s12369_s0 + $0x90] sm:$0xff]   ;;  %v1052_v49 = vld [vmem:[%s12370_s1 + $0xa8] sm:$0xff]  ;;  %v1054_v51 = vld [vmem:[%s12370_s1 + $0xb8] sm:$0xff] }
  0x11   :  { %v1053_v50 = vld [vmem:[%s12370_s1 + $0xb0] sm:$0xff]  ;;  %v1059_v52 = vld [vmem:[%s12370_s1 + $0xe0] sm:$0xff]  ;;  %v10095_v53 = vld [vmem:[%s12369_s0 + $0x98] sm:$0xff]  }
  0x12   :  { %8826 = vmatpush3.bf16.msra.mxu0 %v10074_v5  ;;  %v1060_v54 = vld [vmem:[%s12370_s1 + $0xe8] sm:$0xff]  ;;  %v1061_v55 = vld [vmem:[%s12370_s1 + $0xf0] sm:$0xff]  ;;  %v1055_v56 = vld [vmem:[%s12370_s1 + $0xc0] sm:$0xff] }
  0x13   :  { %8827 = vmatprep.subr.bf16.mxu0 %v12379_v0  ;;  %v1056_v57 = vld [vmem:[%s12370_s1 + $0xc8] sm:$0xff]  ;;  %v10096_v58 = vld [vmem:[%s12369_s0 + $0xa0] sm:$0xff]   ;;  %v1062_v59 = vld [vmem:[%s12370_s1 + $0xf8] sm:$0xff] }
  0x14   :  { %1152 = vperm.xlu0 %10068, %v1045_v30   ;;  %1157 = vperm.xlu1 %10069, %v1046_v31   ;;  %v1063_v60 = vld [vmem:[%s12370_s1 + $0x100] sm:$0xff]  ;;  %v1057_v61 = vld [vmem:[%s12370_s1 + $0xd0] sm:$0xff]  ;;  %v1058_v62 = vld [vmem:[%s12370_s1 + $0xd8] sm:$0xff] }
  0x15   :  { %v10097_v63 = vld [vmem:[%s12369_s0 + $0xa8] sm:$0xff]   ;;  %v1065_v2 = vld [vmem:[%s12370_s1 + $0x110] sm:$0xff]  ;;  %v1066_v3 = vld [vmem:[%s12370_s1 + $0x118] sm:$0xff] }
  0x16   :  { %8828 = vmatpush3.bf16.msra.mxu0 %v327_v7  ;;  %v1064_v1 = vld [vmem:[%s12370_s1 + $0x108] sm:$0xff]  ;;  %v1067_v4 = vld [vmem:[%s12370_s1 + $0x120] sm:$0xff]  ;;  %v10098_v5 = vld [vmem:[%s12369_s0 + $0xb0] sm:$0xff]  }
  0x17   :  { %v1068_v6 = vld [vmem:[%s12370_s1 + $0x128] sm:$0xff]  ;;  %v1073_v7 = vld [vmem:[%s12370_s1 + $0x150] sm:$0xff]  ;;  %vm10757_vm6 = vmpackc.low %vm1382_vm4, %vm10109_vm5 }
  0x18   :  { %1162 = vperm.xlu0 %10068, %v1047_v32   ;;  %1097 = vperm.xlu1 %10069, %v1034_v34  }
  0x19   :  { %8830 = vmatmul.mubr.msk.bf16.vlgmr.msra.gmra.mrb[0].mxu0 %vm249_vm2, %v10076_v8  ;;  %v1074_v8 = vld [vmem:[%s12370_s1 + $0x158] sm:$0xff] }
  0x1a   :  { %8833 = vmatprep.mubr.msk.bf16.mxu0 %vm10106_vm0, %v12379_v0 }
  0x1c   :  { %1102 = vperm.xlu0 %10068, %v1035_v35   ;;  %1132 = vperm.xlu1 %10069, %v1041_v36  }
  0x20   :  { %1137 = vperm.xlu0 %10068, %v1042_v37   ;;  %1167 = vperm.xlu1 %10069, %v1048_v39  }
  0x21   :  { %8834 = vmatmul.mubr.msk.bf16.gmra.mrb[4].mxu0 %vm249_vm2, %v10077_v9  ;;  %v1075_v9 = vld [vmem:[%s12370_s1 + $0x160] sm:$0xff] }
  0x22   :  { %8837 = vmatprep.mubr.msk.bf16.mxu0 %vm10106_vm0, %v12379_v0 }
  0x24   :  { %1172 = vperm.xlu0 %10068, %v1049_v40   ;;  %1107 = vperm.xlu1 %10069, %v1036_v41  }
  0x28   :  { %1112 = vperm.xlu0 %10068, %v1037_v42   ;;  %1142 = vperm.xlu1 %10069, %v1043_v44  }
  0x29   :  { %8838 = vmatmul.mubr.msk.bf16.gmra.mrb[8].mxu0 %vm249_vm2, %v10078_v10  ;;  %v10099_v10 = vld [vmem:[%s12369_s0 + $0xb8] sm:$0xff]  }
  0x2a   :  { %8841 = vmatprep.mubr.msk.bf16.mxu0 %vm10106_vm0, %v12379_v0 }
  0x2c   :  { %1147 = vperm.xlu0 %10068, %v1044_v45   ;;  %1177 = vperm.xlu1 %10069, %v1050_v46  }
  0x30   :  { %1182 = vperm.xlu0 %10068, %v1051_v47   ;;  %1187 = vperm.xlu1 %10069, %v1052_v49  }
  0x31   :  { %8842 = vmatmul.mubr.msk.bf16.gmra.mrb[12].mxu0 %vm249_vm2, %v10079_v11  ;;  %v1070_v11 = vld [vmem:[%s12370_s1 + $0x138] sm:$0xff] }
  0x32   :  { %8845 = vmatprep.mubr.msk.bf16.mxu0 %vm10106_vm0, %v12379_v0 }
  0x34   :  { %1192 = vperm.xlu0 %10068, %v1053_v50   ;;  %1197 = vperm.xlu1 %10069, %v1054_v51  }
  0x38   :  { %1222 = vperm.xlu0 %10068, %v1059_v52   ;;  %1227 = vperm.xlu1 %10069, %v1060_v54  }
  0x39   :  { %8846 = vmatmul.mubr.msk.bf16.gmra.mrb[16].mxu0 %vm249_vm2, %v10080_v12  ;;  %v1069_v12 = vld [vmem:[%s12370_s1 + $0x130] sm:$0xff] }
  0x3a   :  { %8849 = vmatprep.mubr.msk.bf16.mxu0 %vm10106_vm0, %v12379_v0 }
  0x3c   :  { %1232 = vperm.xlu0 %10068, %v1061_v55   ;;  %1202 = vperm.xlu1 %10069, %v1055_v56  }
  0x40   :  { %1207 = vperm.xlu0 %10068, %v1056_v57   ;;  %1237 = vperm.xlu1 %10069, %v1062_v59  }
  0x41   :  { %8850 = vmatmul.mubr.msk.bf16.gmra.mrb[20].mxu0 %vm249_vm2, %v10081_v13  ;;  %v1071_v13 = vld [vmem:[%s12370_s1 + $0x140] sm:$0xff] }
  0x42   :  { %8853 = vmatprep.mubr.msk.bf16.mxu0 %vm10106_vm0, %v12379_v0 }
  0x44   :  { %1242 = vperm.xlu0 %10068, %v1063_v60   ;;  %1212 = vperm.xlu1 %10069, %v1057_v61  }
  0x48   :  { %1217 = vperm.xlu0 %10068, %v1058_v62   ;;  %1247 = vperm.xlu1 %10069, %v1064_v1  }
  0x49   :  { %8854 = vmatmul.mubr.msk.bf16.gmra.mrb[24].mxu0 %vm249_vm2, %v10082_v14  ;;  %v1072_v14 = vld [vmem:[%s12370_s1 + $0x148] sm:$0xff] }
  0x4a   :  { %8857 = vmatprep.mubr.msk.bf16.mxu0 %vm10106_vm0, %v12379_v0 }
  0x4c   :  { %1252 = vperm.xlu0 %10068, %v1065_v2   ;;  %1257 = vperm.xlu1 %10069, %v1066_v3  }
  0x50   :  { %1262 = vperm.xlu0 %10068, %v1067_v4   ;;  %1267 = vperm.xlu1 %10069, %v1068_v6  }
  0x51   :  { %8858 = vmatmul.mubr.msk.bf16.gmra.mrb[28].mxu0 %vm249_vm2, %v10083_v15  ;;  %v10100_v15 = vld [vmem:[%s12369_s0 + $0xc0] ss:$0 sps:$4 sm:$0xff]  }
  0x52   :  { %8861 = vmatprep.mubr.msk.bf16.mxu0 %vm10106_vm0, %v12379_v0 }
  0x54   :  { %1292 = vperm.xlu0 %10068, %v1073_v7   ;;  %1297 = vperm.xlu1 %10069, %v1074_v8  }
  0x58   :  { %1302 = vperm.xlu0 %10068, %v1075_v9   ;;  %1277 = vperm.xlu1 %10069, %v1070_v11  }
  0x59   :  { %8862 = vmatmul.mubr.msk.bf16.gmra.mrb[32].mxu0 %vm249_vm2, %v10084_v16  ;;  %v1077_v16 = vld [vmem:[%s12370_s1 + $0x170] sm:$0xff] }
  0x5a   :  { %8865 = vmatprep.mubr.msk.bf16.mxu0 %vm10106_vm0, %v12379_v0 }
  0x5c   :  { %1272 = vperm.xlu0 %10068, %v1069_v12   ;;  %1282 = vperm.xlu1 %10069, %v1071_v13  }
  0x60   :  { %1287 = vperm.xlu0 %10068, %v1072_v14   ;;  %1312 = vperm.xlu1 %10069, %v1077_v16  }
  0x61   :  { %8866 = vmatmul.mubr.msk.bf16.gmra.mrb[36].mxu0 %vm249_vm2, %v10085_v17  ;;  %v1076_v17 = vld [vmem:[%s12370_s1 + $0x168] sm:$0xff] }
  0x62   :  { %8869 = vmatprep.mubr.msk.bf16.mxu0 %vm10106_vm0, %v12379_v0 }
  0x64   :  { %1307 = vperm.xlu0 %10068, %v1076_v17  }
  0x69   :  { %8870 = vmatmul.mubr.msk.bf16.gmra.mrb[40].mxu0 %vm249_vm2, %v10086_v18  ;;  %v1078_v18 = vld [vmem:[%s12370_s1 + $0x178] sm:$0xff] }
  0x6a   :  { %8873 = vmatprep.mubr.msk.bf16.mxu0 %vm10106_vm0, %v12379_v0  ;;  %1317 = vperm.xlu1 %10069, %v1078_v18  }
  0x71   :  { %8874 = vmatmul.mubr.msk.bf16.gmra.mrb[44].mxu0 %vm249_vm2, %v10087_v19  ;;  %v1079_v19 = vld [vmem:[%s12370_s1 + $0x180] sm:$0xff] }
  0x72   :  { %8877 = vmatprep.mubr.msk.bf16.mxu0 %vm10106_vm0, %v12379_v0  ;;  %1322 = vperm.xlu0 %10068, %v1079_v19  }
  0x79   :  { %8878 = vmatmul.mubr.msk.bf16.gmra.mrb[48].mxu0 %vm249_vm2, %v10088_v20 }
  0x7a   :  { %8881 = vmatprep.mubr.msk.bf16.mxu0 %vm10106_vm0, %v12379_v0 }
  0x81   :  { %8882 = vmatmul.mubr.msk.bf16.gmra.mrb[52].mxu0 %vm249_vm2, %v10089_v23 }
  0x82   :  { %8885 = vmatprep.mubr.msk.bf16.mxu0 %vm10106_vm0, %v12379_v0 }
  0x89   :  { %8886 = vmatmul.mubr.msk.bf16.gmra.mrb[56].mxu0 %vm249_vm2, %v10090_v28 }
  0x8a   :  { %8889 = vmatprep.mubr.msk.bf16.mxu0 %vm10106_vm0, %v12379_v0 }
  0x91   :  { %8890 = vmatmul.mubr.msk.bf16.gmra.mrb[60].mxu0 %vm249_vm2, %v10091_v33 }
  0x92   :  { %8893 = vmatprep.mubr.msk.bf16.mxu0 %vm10106_vm0, %v12379_v0 }
  0x99   :  { %8894 = vmatmul.mubr.msk.bf16.gmra.mrb[64].mxu0 %vm249_vm2, %v10092_v38 }
  0x9a   :  { %8897 = vmatprep.mubr.msk.bf16.mxu0 %vm10106_vm0, %v12379_v0 }
  0xa1   :  { %8898 = vmatmul.mubr.msk.bf16.gmra.mrb[68].mxu0 %vm249_vm2, %v10093_v43 }
  0xa2   :  { %8901 = vmatprep.mubr.msk.bf16.mxu0 %vm10106_vm0, %v12379_v0 }
  0xa9   :  { %8902 = vmatmul.mubr.msk.bf16.gmra.mrb[72].mxu0 %vm249_vm2, %v10094_v48 }
  0xaa   :  { %8905 = vmatprep.mubr.msk.bf16.mxu0 %vm10106_vm0, %v12379_v0 }
  0xb1   :  { %8906 = vmatmul.mubr.msk.bf16.gmra.mrb[76].mxu0 %vm249_vm2, %v10095_v53 }
  0xb2   :  { %8909 = vmatprep.mubr.msk.bf16.mxu0 %vm10106_vm0, %v12379_v0 }
  0xb9   :  { %8910 = vmatmul.mubr.msk.bf16.gmra.mrb[80].mxu0 %vm249_vm2, %v10096_v58 }
  0xba   :  { %8913 = vmatprep.mubr.msk.bf16.mxu0 %vm10106_vm0, %v12379_v0 }
  0xc1   :  { %8914 = vmatmul.mubr.msk.bf16.gmra.mrb[84].mxu0 %vm249_vm2, %v10097_v63 }
  0xc2   :  { %8917 = vmatprep.mubr.msk.bf16.mxu0 %vm10106_vm0, %v12379_v0 }
  0xc9   :  { %8918 = vmatmul.mubr.msk.bf16.gmra.mrb[88].mxu0 %vm249_vm2, %v10098_v5 }
  0xca   :  { %8921 = vmatprep.mubr.msk.bf16.mxu0 %vm10106_vm0, %v12379_v0 }
  0xd1   :  { %8922 = vmatmul.mubr.msk.bf16.gmra.mrb[92].mxu0 %vm249_vm2, %v10099_v10 }
  0xd2   :  { %8925 = vmatprep.mubr.msk.bf16.mxu0 %vm10106_vm0, %v12379_v0 }
  0xd9   :  { %8926 = vmatmul.mubr.msk.bf16.gmra.mrb[96].mxu0 %vm249_vm2, %v10100_v15 }
  0xda   :  { %9374 = vmatprep.mubr.msk.f32.mxu0 %vm10106_vm0, %v12379_v0 }
  0xec   :  { %v10480_v20 = vpop.f32.mrb[0].mxu0 }
  0xed   :  { %v666_v21 = vmul.f32 %v10480_v20, %v10480_v20  ;;  %v8831_v22 = vpop.f32.mrb[1].mxu0  ;;  %v562_v24 = vsel %vm561_vm3, %v10480_v20, 0.0 }
  0xee   :  { %v10484_v23 = vpop.f32.mrb[2].mxu0 }
  0xef   :  { %v563_v25 = vsel %vm561_vm3, %v10484_v23, 0.0  ;;  %v667_v26 = vmul.f32 %v10484_v23, %v10484_v23  ;;  %v8832_v27 = vpop.f32.mrb[3].mxu0  ;;  %v715_v29 = vsel %vm561_vm3, %v666_v21, 0.0 }
  0xf0   :  { %v564_v28 = vadd.f32 %v563_v25, %v562_v24 }
  0xf1   :  { %v716_v30 = vsel %vm561_vm3, %v667_v26, 0.0 }
  0xf2   :  { %v717_v31 = vadd.f32 %v716_v30, %v715_v29 }
  0xf4   :  { %v10494_v32 = vpop.f32.mrb[4].mxu0 }
  0xf5   :  { %v565_v33 = vsel %vm561_vm3, %v10494_v32, 0.0  ;;  %v668_v34 = vmul.f32 %v10494_v32, %v10494_v32  ;;  %v8835_v35 = vpop.f32.mrb[5].mxu0 }
  0xf6   :  { %v566_v36 = vadd.f32 %v565_v33, %v564_v28  ;;  %v10500_v37 = vpop.f32.mrb[6].mxu0 }
  0xf7   :  { %v718_v38 = vsel %vm561_vm3, %v668_v34, 0.0  ;;  %v567_v39 = vsel %vm561_vm3, %v10500_v37, 0.0  ;;  %v669_v40 = vmul.f32 %v10500_v37, %v10500_v37  ;;  %v8836_v41 = vpop.f32.mrb[7].mxu0 }
  0xf8   :  { %v719_v42 = vadd.f32 %v718_v38, %v717_v31  ;;  %v568_v43 = vadd.f32 %v567_v39, %v566_v36 }
  0xf9   :  { %v720_v44 = vsel %vm561_vm3, %v669_v40, 0.0 }
  0xfa   :  { %v721_v45 = vadd.f32 %v720_v44, %v719_v42 }
  0xfc   :  { %v10508_v46 = vpop.f32.mrb[8].mxu0 }
  0xfd   :  { %v569_v47 = vsel %vm561_vm3, %v10508_v46, 0.0  ;;  %v670_v48 = vmul.f32 %v10508_v46, %v10508_v46  ;;  %v8839_v49 = vpop.f32.mrb[9].mxu0 }
  0xfe   :  { %v570_v50 = vadd.f32 %v569_v47, %v568_v43  ;;  %v10514_v51 = vpop.f32.mrb[10].mxu0 }
  0xff   :  { %v722_v52 = vsel %vm561_vm3, %v670_v48, 0.0  ;;  %v571_v53 = vsel %vm561_vm3, %v10514_v51, 0.0  ;;  %v671_v54 = vmul.f32 %v10514_v51, %v10514_v51  ;;  %v8840_v55 = vpop.f32.mrb[11].mxu0 }
 0x100   :  { %v723_v56 = vadd.f32 %v722_v52, %v721_v45  ;;  %v572_v57 = vadd.f32 %v571_v53, %v570_v50 }
 0x101   :  { %v724_v58 = vsel %vm561_vm3, %v671_v54, 0.0 }
 0x102   :  { %v725_v59 = vadd.f32 %v724_v58, %v723_v56 }
 0x104   :  { %v10522_v60 = vpop.f32.mrb[12].mxu0 }
 0x105   :  { %v573_v61 = vsel %vm561_vm3, %v10522_v60, 0.0  ;;  %v672_v62 = vmul.f32 %v10522_v60, %v10522_v60  ;;  %v8843_v63 = vpop.f32.mrb[13].mxu0 }
 0x106   :  { %v574_v1 = vadd.f32 %v573_v61, %v572_v57  ;;  %v10528_v2 = vpop.f32.mrb[14].mxu0 }
 0x107   :  { %v726_v3 = vsel %vm561_vm3, %v672_v62, 0.0  ;;  %v575_v4 = vsel %vm561_vm3, %v10528_v2, 0.0  ;;  %v673_v5 = vmul.f32 %v10528_v2, %v10528_v2  ;;  %v8844_v6 = vpop.f32.mrb[15].mxu0 }
 0x108   :  { %v727_v7 = vadd.f32 %v726_v3, %v725_v59  ;;  %v576_v8 = vadd.f32 %v575_v4, %v574_v1 }
 0x109   :  { %v728_v9 = vsel %vm561_vm3, %v673_v5, 0.0 }
 0x10a   :  { %v729_v10 = vadd.f32 %v728_v9, %v727_v7 }
 0x10c   :  { %v10536_v11 = vpop.f32.mrb[16].mxu0 }
 0x10d   :  { %v577_v12 = vsel %vm561_vm3, %v10536_v11, 0.0  ;;  %v674_v13 = vmul.f32 %v10536_v11, %v10536_v11  ;;  %v8847_v14 = vpop.f32.mrb[17].mxu0 }
 0x10e   :  { %v578_v15 = vadd.f32 %v577_v12, %v576_v8  ;;  %v10542_v16 = vpop.f32.mrb[18].mxu0 }
 0x10f   :  { %v730_v17 = vsel %vm561_vm3, %v674_v13, 0.0  ;;  %v579_v18 = vsel %vm561_vm3, %v10542_v16, 0.0  ;;  %v675_v19 = vmul.f32 %v10542_v16, %v10542_v16  ;;  %v8848_v21 = vpop.f32.mrb[19].mxu0 }
 0x110   :  { %v731_v22 = vadd.f32 %v730_v17, %v729_v10  ;;  %v580_v24 = vadd.f32 %v579_v18, %v578_v15 }
 0x111   :  { %v732_v25 = vsel %vm561_vm3, %v675_v19, 0.0 }
 0x112   :  { %v733_v26 = vadd.f32 %v732_v25, %v731_v22 }
 0x114   :  { %v10550_v27 = vpop.f32.mrb[20].mxu0 }
 0x115   :  { %v581_v28 = vsel %vm561_vm3, %v10550_v27, 0.0  ;;  %v676_v29 = vmul.f32 %v10550_v27, %v10550_v27  ;;  %v8851_v30 = vpop.f32.mrb[21].mxu0 }
 0x116   :  { %v582_v31 = vadd.f32 %v581_v28, %v580_v24  ;;  %v10556_v33 = vpop.f32.mrb[22].mxu0 }
 0x117   :  { %v734_v34 = vsel %vm561_vm3, %v676_v29, 0.0  ;;  %v583_v35 = vsel %vm561_vm3, %v10556_v33, 0.0  ;;  %v677_v36 = vmul.f32 %v10556_v33, %v10556_v33  ;;  %v8852_v38 = vpop.f32.mrb[23].mxu0 }
 0x118   :  { %v735_v39 = vadd.f32 %v734_v34, %v733_v26  ;;  %v584_v40 = vadd.f32 %v583_v35, %v582_v31 }
 0x119   :  { %v736_v41 = vsel %vm561_vm3, %v677_v36, 0.0 }
 0x11a   :  { %v737_v42 = vadd.f32 %v736_v41, %v735_v39 }
 0x11c   :  { %v10564_v43 = vpop.f32.mrb[24].mxu0 }
 0x11d   :  { %v585_v44 = vsel %vm561_vm3, %v10564_v43, 0.0  ;;  %v678_v45 = vmul.f32 %v10564_v43, %v10564_v43  ;;  %v8855_v47 = vpop.f32.mrb[25].mxu0 }
 0x11e   :  { %v586_v48 = vadd.f32 %v585_v44, %v584_v40  ;;  %v10570_v49 = vpop.f32.mrb[26].mxu0 }
 0x11f   :  { %v738_v50 = vsel %vm561_vm3, %v678_v45, 0.0  ;;  %v587_v52 = vsel %vm561_vm3, %v10570_v49, 0.0  ;;  %v679_v53 = vmul.f32 %v10570_v49, %v10570_v49  ;;  %v8856_v54 = vpop.f32.mrb[27].mxu0 }
 0x120   :  { %v739_v55 = vadd.f32 %v738_v50, %v737_v42  ;;  %v588_v56 = vadd.f32 %v587_v52, %v586_v48 }
 0x121   :  { %v740_v57 = vsel %vm561_vm3, %v679_v53, 0.0 }
 0x122   :  { %v741_v58 = vadd.f32 %v740_v57, %v739_v55 }
 0x124   :  { %v10578_v59 = vpop.f32.mrb[28].mxu0 }
 0x125   :  { %v589_v61 = vsel %vm561_vm3, %v10578_v59, 0.0  ;;  %v680_v62 = vmul.f32 %v10578_v59, %v10578_v59  ;;  %v8859_v63 = vpop.f32.mrb[29].mxu0 }
 0x126   :  { %v590_v1 = vadd.f32 %v589_v61, %v588_v56  ;;  %v10584_v3 = vpop.f32.mrb[30].mxu0 }
 0x127   :  { %v742_v4 = vsel %vm561_vm3, %v680_v62, 0.0  ;;  %v591_v5 = vsel %vm561_vm3, %v10584_v3, 0.0  ;;  %v681_v6 = vmul.f32 %v10584_v3, %v10584_v3  ;;  %v8860_v7 = vpop.f32.mrb[31].mxu0 }
 0x128   :  { %v743_v8 = vadd.f32 %v742_v4, %v741_v58  ;;  %v592_v9 = vadd.f32 %v591_v5, %v590_v1 }
 0x129   :  { %v744_v10 = vsel %vm561_vm3, %v681_v6, 0.0 }
 0x12a   :  { %v745_v12 = vadd.f32 %v744_v10, %v743_v8 }
 0x12c   :  { %v10592_v13 = vpop.f32.mrb[32].mxu0 }
 0x12d   :  { %v593_v14 = vsel %vm561_vm3, %v10592_v13, 0.0  ;;  %v682_v15 = vmul.f32 %v10592_v13, %v10592_v13  ;;  %v8863_v17 = vpop.f32.mrb[33].mxu0 }
 0x12e   :  { %v594_v18 = vadd.f32 %v593_v14, %v592_v9  ;;  %v10598_v19 = vpop.f32.mrb[34].mxu0 }
 0x12f   :  { %v746_v21 = vsel %vm561_vm3, %v682_v15, 0.0  ;;  %v595_v22 = vsel %vm561_vm3, %v10598_v19, 0.0  ;;  %v683_v24 = vmul.f32 %v10598_v19, %v10598_v19  ;;  %v8864_v25 = vpop.f32.mrb[35].mxu0 }
 0x130   :  { %v747_v26 = vadd.f32 %v746_v21, %v745_v12  ;;  %v596_v28 = vadd.f32 %v595_v22, %v594_v18 }
 0x131   :  { %v748_v29 = vsel %vm561_vm3, %v683_v24, 0.0 }
 0x132   :  { %v749_v30 = vadd.f32 %v748_v29, %v747_v26 }
 0x134   :  { %v10606_v31 = vpop.f32.mrb[36].mxu0 }
 0x135   :  { %v597_v34 = vsel %vm561_vm3, %v10606_v31, 0.0  ;;  %v684_v35 = vmul.f32 %v10606_v31, %v10606_v31  ;;  %v8867_v36 = vpop.f32.mrb[37].mxu0 }
 0x136   :  { %v598_v38 = vadd.f32 %v597_v34, %v596_v28  ;;  %v10612_v39 = vpop.f32.mrb[38].mxu0 }
 0x137   :  { %v750_v40 = vsel %vm561_vm3, %v684_v35, 0.0  ;;  %v599_v41 = vsel %vm561_vm3, %v10612_v39, 0.0  ;;  %v685_v42 = vmul.f32 %v10612_v39, %v10612_v39  ;;  %v8868_v44 = vpop.f32.mrb[39].mxu0 }
 0x138   :  { %v751_v45 = vadd.f32 %v750_v40, %v749_v30  ;;  %v600_v47 = vadd.f32 %v599_v41, %v598_v38 }
 0x139   :  { %v752_v48 = vsel %vm561_vm3, %v685_v42, 0.0 }
 0x13a   :  { %v753_v50 = vadd.f32 %v752_v48, %v751_v45 }
 0x13c   :  { %v10620_v52 = vpop.f32.mrb[40].mxu0 }
 0x13d   :  { %v601_v53 = vsel %vm561_vm3, %v10620_v52, 0.0  ;;  %v686_v54 = vmul.f32 %v10620_v52, %v10620_v52  ;;  %v8871_v55 = vpop.f32.mrb[41].mxu0 }
 0x13e   :  { %v602_v56 = vadd.f32 %v601_v53, %v600_v47  ;;  %v10626_v57 = vpop.f32.mrb[42].mxu0 }
 0x13f   :  { %v754_v58 = vsel %vm561_vm3, %v686_v54, 0.0  ;;  %v603_v61 = vsel %vm561_vm3, %v10626_v57, 0.0  ;;  %v687_v62 = vmul.f32 %v10626_v57, %v10626_v57  ;;  %v8872_v63 = vpop.f32.mrb[43].mxu0 }
 0x140   :  { %v755_v1 = vadd.f32 %v754_v58, %v753_v50  ;;  %v604_v4 = vadd.f32 %v603_v61, %v602_v56 }
 0x141   :  { %v756_v5 = vsel %vm561_vm3, %v687_v62, 0.0 }
 0x142   :  { %v757_v6 = vadd.f32 %v756_v5, %v755_v1 }
 0x144   :  { %v10634_v7 = vpop.f32.mrb[44].mxu0 }
 0x145   :  { %v605_v8 = vsel %vm561_vm3, %v10634_v7, 0.0  ;;  %v688_v9 = vmul.f32 %v10634_v7, %v10634_v7  ;;  %v8875_v10 = vpop.f32.mrb[45].mxu0 }
 0x146   :  { %v606_v12 = vadd.f32 %v605_v8, %v604_v4  ;;  %v10640_v14 = vpop.f32.mrb[46].mxu0 }
 0x147   :  { %v758_v15 = vsel %vm561_vm3, %v688_v9, 0.0  ;;  %v607_v17 = vsel %vm561_vm3, %v10640_v14, 0.0  ;;  %v689_v18 = vmul.f32 %v10640_v14, %v10640_v14  ;;  %v8876_v21 = vpop.f32.mrb[47].mxu0 }
 0x148   :  { %v759_v22 = vadd.f32 %v758_v15, %v757_v6  ;;  %v608_v24 = vadd.f32 %v607_v17, %v606_v12 }
 0x149   :  { %v760_v25 = vsel %vm561_vm3, %v689_v18, 0.0 }
 0x14a   :  { %v761_v26 = vadd.f32 %v760_v25, %v759_v22 }
 0x14c   :  { %v10648_v28 = vpop.f32.mrb[48].mxu0 }
 0x14d   :  { %v609_v29 = vsel %vm561_vm3, %v10648_v28, 0.0  ;;  %v690_v30 = vmul.f32 %v10648_v28, %v10648_v28  ;;  %v8879_v34 = vpop.f32.mrb[49].mxu0 }
 0x14e   :  { %v610_v35 = vadd.f32 %v609_v29, %v608_v24  ;;  %v10654_v36 = vpop.f32.mrb[50].mxu0 }
 0x14f   :  { %v762_v38 = vsel %vm561_vm3, %v690_v30, 0.0  ;;  %v611_v40 = vsel %vm561_vm3, %v10654_v36, 0.0  ;;  %v691_v41 = vmul.f32 %v10654_v36, %v10654_v36  ;;  %v8880_v42 = vpop.f32.mrb[51].mxu0 }
 0x150   :  { %v763_v44 = vadd.f32 %v762_v38, %v761_v26  ;;  %v612_v45 = vadd.f32 %v611_v40, %v610_v35 }
 0x151   :  { %v764_v47 = vsel %vm561_vm3, %v691_v41, 0.0 }
 0x152   :  { %v765_v48 = vadd.f32 %v764_v47, %v763_v44 }
 0x154   :  { %v10662_v50 = vpop.f32.mrb[52].mxu0 }
 0x155   :  { %v613_v53 = vsel %vm561_vm3, %v10662_v50, 0.0  ;;  %v692_v54 = vmul.f32 %v10662_v50, %v10662_v50  ;;  %v8883_v55 = vpop.f32.mrb[53].mxu0 }
 0x156   :  { %v614_v56 = vadd.f32 %v613_v53, %v612_v45  ;;  %v10668_v58 = vpop.f32.mrb[54].mxu0 }
 0x157   :  { %v766_v61 = vsel %vm561_vm3, %v692_v54, 0.0  ;;  %v615_v62 = vsel %vm561_vm3, %v10668_v58, 0.0  ;;  %v693_v63 = vmul.f32 %v10668_v58, %v10668_v58  ;;  %v8884_v1 = vpop.f32.mrb[55].mxu0 }
 0x158   :  { %v767_v4 = vadd.f32 %v766_v61, %v765_v48  ;;  %v616_v5 = vadd.f32 %v615_v62, %v614_v56 }
 0x159   :  { %v768_v6 = vsel %vm561_vm3, %v693_v63, 0.0 }
 0x15a   :  { %v769_v8 = vadd.f32 %v768_v6, %v767_v4 }
 0x15c   :  { %v10676_v9 = vpop.f32.mrb[56].mxu0 }
 0x15d   :  { %v617_v10 = vsel %vm561_vm3, %v10676_v9, 0.0  ;;  %v694_v12 = vmul.f32 %v10676_v9, %v10676_v9  ;;  %v8887_v15 = vpop.f32.mrb[57].mxu0 }
 0x15e   :  { %v618_v17 = vadd.f32 %v617_v10, %v616_v5  ;;  %v10682_v18 = vpop.f32.mrb[58].mxu0 }
 0x15f   :  { %v770_v21 = vsel %vm561_vm3, %v694_v12, 0.0  ;;  %v619_v22 = vsel %vm561_vm3, %v10682_v18, 0.0  ;;  %v695_v24 = vmul.f32 %v10682_v18, %v10682_v18  ;;  %v8888_v25 = vpop.f32.mrb[59].mxu0 }
 0x160   :  { %v771_v26 = vadd.f32 %v770_v21, %v769_v8  ;;  %v620_v29 = vadd.f32 %v619_v22, %v618_v17 }
 0x161   :  { %v772_v30 = vsel %vm561_vm3, %v695_v24, 0.0 }
 0x162   :  { %v773_v34 = vadd.f32 %v772_v30, %v771_v26 }
 0x164   :  { %v10690_v35 = vpop.f32.mrb[60].mxu0 }
 0x165   :  { %v621_v38 = vsel %vm561_vm3, %v10690_v35, 0.0  ;;  %v696_v40 = vmul.f32 %v10690_v35, %v10690_v35  ;;  %v8891_v41 = vpop.f32.mrb[61].mxu0 }
 0x166   :  { %v622_v42 = vadd.f32 %v621_v38, %v620_v29  ;;  %v10696_v44 = vpop.f32.mrb[62].mxu0 }
 0x167   :  { %v774_v45 = vsel %vm561_vm3, %v696_v40, 0.0  ;;  %v623_v47 = vsel %vm561_vm3, %v10696_v44, 0.0  ;;  %v697_v48 = vmul.f32 %v10696_v44, %v10696_v44  ;;  %v8892_v53 = vpop.f32.mrb[63].mxu0 }
 0x168   :  { %v775_v54 = vadd.f32 %v774_v45, %v773_v34  ;;  %v624_v55 = vadd.f32 %v623_v47, %v622_v42 }
 0x169   :  { %v776_v56 = vsel %vm561_vm3, %v697_v48, 0.0 }
 0x16a   :  { %v777_v61 = vadd.f32 %v776_v56, %v775_v54 }
 0x16c   :  { %v10704_v62 = vpop.f32.mrb[64].mxu0 }
 0x16d   :  { %v625_v63 = vsel %vm561_vm3, %v10704_v62, 0.0  ;;  %v698_v1 = vmul.f32 %v10704_v62, %v10704_v62  ;;  %v8895_v4 = vpop.f32.mrb[65].mxu0 }
 0x16e   :  { %v626_v5 = vadd.f32 %v625_v63, %v624_v55  ;;  %v10710_v6 = vpop.f32.mrb[66].mxu0 }
 0x16f   :  { %v778_v8 = vsel %vm561_vm3, %v698_v1, 0.0  ;;  %v627_v10 = vsel %vm561_vm3, %v10710_v6, 0.0  ;;  %v699_v12 = vmul.f32 %v10710_v6, %v10710_v6  ;;  %v8896_v15 = vpop.f32.mrb[67].mxu0 }
 0x170   :  { %v779_v17 = vadd.f32 %v778_v8, %v777_v61  ;;  %v628_v21 = vadd.f32 %v627_v10, %v626_v5 }
 0x171   :  { %v780_v22 = vsel %vm561_vm3, %v699_v12, 0.0 }
 0x172   :  { %v781_v24 = vadd.f32 %v780_v22, %v779_v17 }
 0x174   :  { %v10718_v25 = vpop.f32.mrb[68].mxu0 }
 0x175   :  { %v629_v26 = vsel %vm561_vm3, %v10718_v25, 0.0  ;;  %v700_v29 = vmul.f32 %v10718_v25, %v10718_v25  ;;  %v8899_v30 = vpop.f32.mrb[69].mxu0 }
 0x176   :  { %v630_v34 = vadd.f32 %v629_v26, %v628_v21  ;;  %v10724_v38 = vpop.f32.mrb[70].mxu0  ;;  %v8303_v26 = vld [vmem:[%s12371_s4 + $0x18] sm:$0x3] }
 0x177   :  { %v782_v40 = vsel %vm561_vm3, %v700_v29, 0.0  ;;  %v631_v41 = vsel %vm561_vm3, %v10724_v38, 0.0  ;;  %v701_v42 = vmul.f32 %v10724_v38, %v10724_v38  ;;  %v8900_v45 = vpop.f32.mrb[71].mxu0 }
 0x178   :  { %v783_v47 = vadd.f32 %v782_v40, %v781_v24  ;;  %v632_v48 = vadd.f32 %v631_v41, %v630_v34  ;;  %v8302_v24 = vld [vmem:[%s12371_s4 + $0x10] sm:$0xff]  ;;  %v12377_v34 = vmov 0.0|0.0   ;;  %v12398_v40 = vmov 0 }
 0x179   :  { %v784_v53 = vsel %vm561_vm3, %v701_v42, 0.0  ;;  %v10752_v29 = vpack.c.bf16 %v8303_v26, %v8302_v24  ;;  %9559 = vmatprep.subr.bf16.mxu1 %v12377_v34  ;;  %v12399_v40 = vsel %vm10757_vm6, 4294967295, %v12398_v40  ;;  %9811 = vmatprep.subr.bf16.mxu0 %v12377_v34 }
 0x17a   :  { %v785_v54 = vadd.f32 %v784_v53, %v783_v47  ;;  %12400 = vst [vmem:[#allocation3_spill] sm:$0xff] %v12399_v40 }
 0x17b   :  { %12397 = vst [vmem:[#allocation2_spill] sm:$0xff] %v10752_v29  ;;  %9562 = vmatpush3.bf16.msk.msra.mxu1 %vm10757_vm6, %v10752_v29  ;;  %9814 = vmatpush3.bf16.msk.msra.mxu0 %vm10757_vm6, %v10752_v29 }
 0x17c   :  { %v10732_v55 = vpop.f32.mrb[72].mxu0  ;;  %9563 = vmatprep.subr.bf16.mxu1 %v12377_v34  ;;  %9815 = vmatprep.subr.bf16.mxu0 %v12377_v34 }
 0x17d   :  { %v633_v56 = vsel %vm561_vm3, %v10732_v55, 0.0  ;;  %v702_v61 = vmul.f32 %v10732_v55, %v10732_v55  ;;  %v8903_v63 = vpop.f32.mrb[73].mxu0 }
 0x17e   :  { %v634_v1 = vadd.f32 %v633_v56, %v632_v48  ;;  %v10738_v4 = vpop.f32.mrb[74].mxu0 }
 0x17f   :  { %v786_v5 = vsel %vm561_vm3, %v702_v61, 0.0  ;;  %v635_v8 = vsel %vm561_vm3, %v10738_v4, 0.0  ;;  %v703_v10 = vmul.f32 %v10738_v4, %v10738_v4  ;;  %v8904_v12 = vpop.f32.mrb[75].mxu0 }
 0x180   :  { %v787_v15 = vadd.f32 %v786_v5, %v785_v54  ;;  %v636_v17 = vadd.f32 %v635_v8, %v634_v1 }
 0x181   :  { %v788_v21 = vsel %vm561_vm3, %v703_v10, 0.0 }
 0x182   :  { %v789_v22 = vadd.f32 %v788_v21, %v787_v15 }
 0x184   :  { %v10754_v30 = vpop.f32.mrb[76].mxu0 }
 0x185   :  { %v637_v41 = vsel %vm561_vm3, %v10754_v30, 0.0  ;;  %v704_v42 = vmul.f32 %v10754_v30, %v10754_v30  ;;  %v8907_v45 = vpop.f32.mrb[77].mxu0 }
 0x186   :  { %v638_v47 = vadd.f32 %v637_v41, %v636_v17  ;;  %v10772_v48 = vpop.f32.mrb[78].mxu0 }
 0x187   :  { %v790_v53 = vsel %vm561_vm3, %v704_v42, 0.0  ;;  %v639_v54 = vsel %vm561_vm3, %v10772_v48, 0.0  ;;  %v705_v56 = vmul.f32 %v10772_v48, %v10772_v48  ;;  %v8908_v61 = vpop.f32.mrb[79].mxu0 }
 0x188   :  { %v791_v63 = vadd.f32 %v790_v53, %v789_v22  ;;  %v640_v1 = vadd.f32 %v639_v54, %v638_v47 }
 0x189   :  { %v792_v5 = vsel %vm561_vm3, %v705_v56, 0.0 }
 0x18a   :  { %v793_v8 = vadd.f32 %v792_v5, %v791_v63 }
 0x18c   :  { %v10782_v10 = vpop.f32.mrb[80].mxu0 }
 0x18d   :  { %v641_v12 = vsel %vm561_vm3, %v10782_v10, 0.0  ;;  %v706_v15 = vmul.f32 %v10782_v10, %v10782_v10  ;;  %v8911_v17 = vpop.f32.mrb[81].mxu0 }
 0x18e   :  { %v642_v21 = vadd.f32 %v641_v12, %v640_v1  ;;  %v10788_v24 = vpop.f32.mrb[82].mxu0 }
 0x18f   :  { %v794_v26 = vsel %vm561_vm3, %v706_v15, 0.0  ;;  %v643_v22 = vsel %vm561_vm3, %v10788_v24, 0.0  ;;  %v707_v41 = vmul.f32 %v10788_v24, %v10788_v24  ;;  %v8912_v42 = vpop.f32.mrb[83].mxu0  ;;  %v10804_v15 = vpop.permute.xlu0 %1087 }
 0x190   :  { %v795_v45 = vadd.f32 %v794_v26, %v793_v8  ;;  %v644_v47 = vadd.f32 %v643_v22, %v642_v21  ;;  %12402 = vst [vmem:[#allocation5_spill] sm:$0xff] %v10804_v15 }
 0x191   :  { %v796_v53 = vsel %vm561_vm3, %v707_v41, 0.0 }
 0x192   :  { %v797_v54 = vadd.f32 %v796_v53, %v795_v45 }
 0x194   :  { %v10796_v56 = vpop.f32.mrb[84].mxu0 }
 0x195   :  { %v645_v61 = vsel %vm561_vm3, %v10796_v56, 0.0  ;;  %v708_v63 = vmul.f32 %v10796_v56, %v10796_v56  ;;  %v8915_v1 = vpop.f32.mrb[85].mxu0 }
 0x196   :  { %v646_v5 = vadd.f32 %v645_v61, %v644_v47  ;;  %v10802_v12 = vpop.f32.mrb[86].mxu0  ;;  %v10814_v47 = vpop.permute.xlu0 %1082 }
 0x197   :  { %12401 = vst [vmem:[#allocation4_spill] sm:$0xff] %v10802_v12  ;;  %v798_v8 = vsel %vm561_vm3, %v708_v63, 0.0  ;;  %v647_v17 = vsel %vm561_vm3, %v10802_v12, 0.0  ;;  %v709_v21 = vmul.f32 %v10802_v12, %v10802_v12  ;;  %v8916_v26 = vpop.f32.mrb[87].mxu0  ;;  %12404 = vst [vmem:[#allocation7_spill] sm:$0xff] %v10814_v47 }
 0x198   :  { %v799_v22 = vadd.f32 %v798_v8, %v797_v54  ;;  %v648_v41 = vadd.f32 %v647_v17, %v646_v5 }
 0x199   :  { %v800_v42 = vsel %vm561_vm3, %v709_v21, 0.0 }
 0x19a   :  { %v801_v45 = vadd.f32 %v800_v42, %v799_v22  ;;  %v10827_v22 = vpop.permute.xlu1 %1092 }
 0x19b   :  { %12406 = vst [vmem:[#allocation9_spill] sm:$0xff] %v10827_v22 }
 0x19c   :  { %v10812_v53 = vpop.f32.mrb[88].mxu0 }
 0x19d   :  { %12403 = vst [vmem:[#allocation6_spill] sm:$0xff] %v10812_v53  ;;  %v649_v61 = vsel %vm561_vm3, %v10812_v53, 0.0  ;;  %v710_v63 = vmul.f32 %v10812_v53, %v10812_v53  ;;  %v8919_v1 = vpop.f32.mrb[89].mxu0 }
 0x19e   :  { %v650_v34 = vadd.f32 %v649_v61, %v648_v41  ;;  %v10820_v0 = vpop.f32.mrb[90].mxu0  ;;  %v10830_v1 = vpop.permute.xlu0 %1122 }
 0x19f   :  { %12405 = vst [vmem:[#allocation8_spill] sm:$0xff] %v10820_v0  ;;  %v802_v54 = vsel %vm561_vm3, %v710_v63, 0.0  ;;  %v651_v5 = vsel %vm561_vm3, %v10820_v0, 0.0  ;;  %v711_v8 = vmul.f32 %v10820_v0, %v10820_v0  ;;  %v8920_v17 = vpop.f32.mrb[91].mxu0  ;;  %12407 = vst [vmem:[#allocation10_spill] sm:$0xff] %v10830_v1 }
 0x1a0   :  { %v803_v21 = vadd.f32 %v802_v54, %v801_v45  ;;  %v652_v26 = vadd.f32 %v651_v5, %v650_v34  ;;  %v10840_v34 = vpop.permute.xlu1 %1117 }
 0x1a1   :  { %v804_v42 = vsel %vm561_vm3, %v711_v8, 0.0  ;;  %12410 = vst [vmem:[#allocation13_spill] sm:$0xff] %v10840_v34 }
 0x1a2   :  { %v805_v29 = vadd.f32 %v804_v42, %v803_v21  ;;  %v10847_v22 = vpop.permute.xlu0 %1152 }
 0x1a3   :  { %12411 = vst [vmem:[#allocation14_spill] sm:$0xff] %v10847_v22 }
 0x1a4   :  { %v10832_v41 = vpop.f32.mrb[92].mxu0  ;;  %v10852_v1 = vpop.permute.xlu1 %1127 }
 0x1a5   :  { %12408 = vst [vmem:[#allocation11_spill] sm:$0xff] %v10832_v41  ;;  %v653_v61 = vsel %vm561_vm3, %v10832_v41, 0.0  ;;  %v712_v63 = vmul.f32 %v10832_v41, %v10832_v41  ;;  %v8923_v47 = vpop.f32.mrb[93].mxu0  ;;  %12412 = vst [vmem:[#allocation15_spill] sm:$0xff] %v10852_v1 }
 0x1a6   :  { %v654_v40 = vadd.f32 %v653_v61, %v652_v26  ;;  %v10838_v17 = vpop.f32.mrb[94].mxu0 }
 0x1a7   :  { %12409 = vst [vmem:[#allocation12_spill] sm:$0xff] %v10838_v17  ;;  %v806_v45 = vsel %vm561_vm3, %v712_v63, 0.0  ;;  %v655_v54 = vsel %vm561_vm3, %v10838_v17, 0.0  ;;  %v713_v5 = vmul.f32 %v10838_v17, %v10838_v17  ;;  %v8924_v8 = vpop.f32.mrb[95].mxu0 }
 0x1a8   :  { %v807_v21 = vadd.f32 %v806_v45, %v805_v29  ;;  %v656_v42 = vadd.f32 %v655_v54, %v654_v40  ;;  %v10858_v29 = vpop.permute.xlu0 %1162  ;;  %v10861_v22 = vpop.permute.xlu1 %1157 }
 0x1a9   :  { %v808_v47 = vsel %vm561_vm3, %v713_v5, 0.0  ;;  %12413 = vst [vmem:[#allocation16_spill] sm:$0xff] %v10858_v29 }
 0x1aa   :  { %v809_v26 = vadd.f32 %v808_v47, %v807_v21 }
 0x1ac   :  { %v10850_v61 = vpop.f32.mrb[96].mxu0  ;;  %v10863_v0 = vpop.permute.xlu0 %1102 }
 0x1ad   :  { %v657_v63 = vsel %vm561_vm3, %v10850_v61, 0.0  ;;  %v714_v34 = vmul.f32 %v10850_v61, %v10850_v61  ;;  %v8927_v15 = vpop.f32.mrb[97].mxu0  ;;  %12414 = vst [vmem:[#allocation17_spill] sm:$0xff] %v10863_v0 }
 0x1ae   :  { %v658_v17 = vadd.f32 %v657_v63, %v656_v42  ;;  %v558_v8 = vpop.f32.mrb[98].mxu0  ;;  %v10865_v63 = vpop.permute.xlu1 %1097 }
 0x1af   :  { %v810_v40 = vsel %vm561_vm3, %v714_v34, 0.0  ;;  %v8928_v45 = vpop.f32.mrb[99].mxu0 }
 0x1b0   :  { %v659_v54 = vrot.slane %v658_v17, 4  ;;  %v811_v5 = vadd.f32 %v810_v40, %v809_v26  ;;  %v10867_v34 = vpop.permute.xlu0 %1137  ;;  %v875_v26 = vlaneseq }
 0x1b1   :  { %12415 = vst [vmem:[#allocation18_spill] sm:$0xff] %v10867_v34 }
 0x1b2   :  { %v660_v21 = vadd.f32 %v659_v54, %v658_v17  ;;  %v812_v47 = vrot.slane %v811_v5, 4 }
 0x1b4   :  { %v661_v1 = vrot.slane %v660_v21, 2  ;;  %v813_v41 = vadd.f32 %v812_v47, %v811_v5  ;;  %v873_v5 = vld [vmem:[%s12372_s3] sm:$0x1] }
 0x1b6   :  { %v662_v53 = vadd.f32 %v661_v1, %v660_v21  ;;  %v814_v12 = vrot.slane %v813_v41, 2  ;;  %v12425_v21 = vld [vmem:[#allocation11_spill] sm:$0xff] }
 0x1b8   :  { %v663_v15 = vrot.slane %v662_v53, 1  ;;  %v815_v42 = vadd.f32 %v814_v12, %v813_v41  ;;  %v10877_v41 = vpop.permute.xlu1 %1132 }
 0x1b9   :  { %12416 = vst [vmem:[#allocation19_spill] sm:$0xff] %v10877_v41 }
 0x1ba   :  { %v664_v8 = vadd.f32 %v663_v15, %v662_v53  ;;  %v816_v29 = vrot.slane %v815_v42, 1 }
 0x1bc   :  { %v10869_v45 = vmul.f32 0.010204081, %v664_v8  ;;  %v817_v17 = vadd.f32 %v816_v29, %v815_v42  ;;  %v10923_v1 = vpop.permute.xlu1 %1167  ;;  %v12424_v8 = vld [vmem:[#allocation8_spill] sm:$0xff] }
 0x1bd   :  { %12418 = vst [vmem:[#allocation21_spill] sm:$0xff] %v10923_v1 }
 0x1be   :  { %v818_v40 = vmul.f32 0.010204081, %v817_v17  ;;  %v819_v54 = vmul.f32 %v10869_v45, %v10869_v45  ;;  %v10893_v17 = vpop.permute.xlu0 %1172  ;;  %v12430_v1 = vsub.f32 %v10480_v20, %v10869_v45  ;;  %v12434_v20 = vsub.f32 %v10508_v46, %v10869_v45 }
 0x1bf   :  { %12417 = vst [vmem:[#allocation20_spill] sm:$0xff] %v10893_v17  ;;  %v12439_v46 = vsub.f32 %v10536_v11, %v10869_v45  ;;  %v12443_v11 = vsub.f32 %v10564_v43, %v10869_v45 }
 0x1c0   :  { %v820_v47 = vsub.f32 %v818_v40, %v819_v54  ;;  %v853_v40 = vsub.f32 %v10682_v18, %v10869_v45  ;;  %v12420_v18 = vld [vmem:[#allocation4_spill] sm:$0xff]  ;;  %v10973_v12 = vpop.permute.xlu1 %1107 }
 0x1c1   :  { %12422 = vst [vmem:[#allocation4_spill] sm:$0xff] %v10973_v12 }
 0x1c2   :  { %v821_v15 = vmax.f32 %v820_v47, 0.0  ;;  %v852_v47 = vsub.f32 %v10676_v9, %v10869_v45  ;;  %v10939_v29 = vpop.permute.xlu0 %1112  ;;  %v12426_v9 = vld [vmem:[#allocation12_spill] sm:$0xff] }
 0x1c3   :  { %12419 = vst [vmem:[#allocation22_spill] sm:$0xff] %v10939_v29 }
 0x1c4   :  { %v822_v54 = vadd.f32 1e-05, %v821_v15  ;;  %v12421_v15 = vld [vmem:[#allocation6_spill] sm:$0xff] }
 0x1c6   :  { %10101 = vrsqrt.f32 %v822_v54  ;;  %v10975_v54 = vshrl.u32 %v875_v26, 7  ;;  %v10983_v42 = vpop.permute.xlu0 %1147  ;;  %v10989_v26 = vpop.permute.xlu1 %1142 }
 0x1c7   :  { %12427 = vst [vmem:[#allocation8_spill] sm:$0xff] %v10983_v42  ;;  %12428 = vst [vmem:[#allocation11_spill] sm:$0xff] %v10989_v26  ;;  %v12431_v42 = vsub.f32 %v10484_v23, %v10869_v45  ;;  %v12432_v26 = vsub.f32 %v10494_v32, %v10869_v45  ;;  %v12435_v23 = vsub.f32 %v10514_v51, %v10869_v45 }
 0x1c8   :  { %12423 = vst [vmem:[#allocation6_spill] sm:$0xff] %v10975_v54  ;;  %v12395_v53 = vsub.s32 0, %v10975_v54  ;;  %v12436_v32 = vsub.f32 %v10522_v60, %v10869_v45  ;;  %v12440_v51 = vsub.f32 %v10542_v16, %v10869_v45  ;;  %v12441_v60 = vsub.f32 %v10550_v27, %v10869_v45 }
 0x1c9   :  { %v12444_v16 = vsub.f32 %v10570_v49, %v10869_v45  ;;  %v12445_v27 = vsub.f32 %v10578_v59, %v10869_v45  ;;  %v11076_v49 = vld [vmem:[%s12372_s3 + $0x1] ss:$0 sm:$0xff]  ;;  %v12451_v54 = vsub.f32 %v10612_v39, %v10869_v45  ;;  %v12455_v39 = vsub.f32 %v10640_v14, %v10869_v45 }
 0x1ca   :  { %v10991_v41 = vpop.permute.xlu0 %1182 }
 0x1cb   :  { %12429 = vst [vmem:[#allocation12_spill] sm:$0xff] %v10991_v41 }
 0x1ce   :  { %v11071_v43 = vpop.permute.xlu0 %1192 }
 0x1cf   :  { %12447 = vst [vmem:[#allocation24_spill] sm:$0xff] %v11071_v43 }
 0x1d0   :  { %v10102_v12 = vpop.eup %10101 }
 0x1d1   :  { %v874_v34 = vmul.f32 %v10102_v12, %v873_v5 }
 0x1d3   :  { %v10995_v29 = vrot.slane %v874_v34, %v12395_v53  ;;  %v12433_v34 = vsub.f32 %v10500_v37, %v10869_v45  ;;  %v12437_v37 = vsub.f32 %v10528_v2, %v10869_v45  ;;  %v11031_v53 = vpop.permute.xlu1 %1177 }
 0x1d4   :  { %12438 = vst [vmem:[#allocation23_spill] sm:$0xff] %v11031_v53 }
 0x1d5   :  { %v879_v17 = vmul.f32 %v10995_v29, %v12430_v1  ;;  %v880_v0 = vmul.f32 %v10995_v29, %v12431_v42  ;;  %v11009_v12 = vmul.f32 %v10995_v29, %v12432_v26  ;;  %v882_v5 = vmul.f32 %v10995_v29, %v12433_v34 }
 0x1d6   :  { %v883_v1 = vmul.f32 %v10995_v29, %v12434_v20  ;;  %v884_v42 = vmul.f32 %v10995_v29, %v12435_v23  ;;  %v885_v26 = vmul.f32 %v10995_v29, %v12436_v32  ;;  %v886_v34 = vmul.f32 %v10995_v29, %v12437_v37 }
 0x1d7   :  { %v887_v20 = vmul.f32 %v10995_v29, %v12439_v46  ;;  %v11041_v23 = vmul.f32 %v10995_v29, %v12440_v51  ;;  %v889_v2 = vmul.f32 %v10995_v29, %v12441_v60  ;;  %v12442_v32 = vsub.f32 %v10556_v33, %v10869_v45 }
 0x1d8   :  { %v891_v46 = vmul.f32 %v10995_v29, %v12443_v11  ;;  %v892_v51 = vmul.f32 %v10995_v29, %v12444_v16  ;;  %v11063_v60 = vmul.f32 %v10995_v29, %v12445_v27  ;;  %v12446_v33 = vsub.f32 %v10584_v3, %v10869_v45 }
 0x1d9   :  { %v890_v37 = vmul.f32 %v10995_v29, %v12442_v32  ;;  %v12448_v11 = vsub.f32 %v10592_v13, %v10869_v45  ;;  %v12449_v16 = vsub.f32 %v10598_v19, %v10869_v45  ;;  %v12450_v27 = vsub.f32 %v10606_v31, %v10869_v45 }
 0x1da   :  { %v11069_v32 = vmul.f32 %v10995_v29, %v12446_v33  ;;  %v898_v43 = vmul.f32 %v10995_v29, %v12451_v54  ;;  %v12452_v13 = vsub.f32 %v10620_v52, %v10869_v45  ;;  %v12453_v19 = vsub.f32 %v10626_v57, %v10869_v45 }
 0x1db   :  { %v895_v59 = vmul.f32 %v10995_v29, %v12448_v11  ;;  %v896_v3 = vmul.f32 %v10995_v29, %v12449_v16  ;;  %v897_v33 = vmul.f32 %v10995_v29, %v12450_v27  ;;  %v12454_v31 = vsub.f32 %v10634_v7, %v10869_v45  ;;  %v11121_v7 = vpop.permute.xlu1 %1187 }
 0x1dc   :  { %v899_v11 = vmul.f32 %v10995_v29, %v12452_v13  ;;  %v900_v16 = vmul.f32 %v10995_v29, %v12453_v19  ;;  %v902_v54 = vmul.f32 %v10995_v29, %v12455_v39  ;;  %v907_v41 = vmul.f32 %v10995_v29, %v852_v47  ;;  %12456 = vst [vmem:[#allocation25_spill] sm:$0xff] %v11121_v7  ;;  %v12469_v7 = vld [vmem:[#allocation10_spill] sm:$0xff] }
 0x1dd   :  { %v901_v27 = vmul.f32 %v10995_v29, %v12454_v31  ;;  %v908_v52 = vmul.f32 %v10995_v29, %v853_v40  ;;  %v11113_v13 = vadd.f32 %v11076_v49, %v882_v5  ;;  %v11116_v57 = vadd.f32 %v11076_v49, %v883_v1  ;;  %v11138_v1 = vpop.permute.xlu0 %1222 }
 0x1de   :  { %v11119_v19 = vadd.f32 %v11076_v49, %v884_v42  ;;  %v11127_v14 = vadd.f32 %v11076_v49, %v885_v26  ;;  %v11130_v47 = vadd.f32 %v11076_v49, %v889_v2  ;;  %v11133_v40 = vadd.f32 %v11076_v49, %v890_v37  ;;  %12458 = vst [vmem:[#allocation27_spill] sm:$0xff] %v11138_v1 }
 0x1df   :  { %v11124_v31 = vadd.f32 %v11076_v49, %v908_v52  ;;  %v11136_v5 = vadd.f32 %v11076_v49, %v891_v46  ;;  %v11141_v42 = vadd.f32 %v11076_v49, %v892_v51  ;;  %v11144_v39 = vadd.f32 %v11076_v49, %v895_v59 }
 0x1e0   :  { %v11147_v26 = vadd.f32 %v11076_v49, %v896_v3  ;;  %v11150_v2 = vadd.f32 %v11076_v49, %v897_v33  ;;  %v11153_v37 = vadd.f32 %v11076_v49, %v898_v43  ;;  %v11156_v46 = vadd.f32 %v11076_v49, %v899_v11 }
 0x1e1   :  { %12457 = vst [vmem:[#allocation26_spill] sm:$0xff] %v11124_v31  ;;  %v11159_v52 = vadd.f32 %v11076_v49, %v900_v16  ;;  %v11162_v51 = vadd.f32 %v11076_v49, %v901_v27  ;;  %v934_v59 = vadd.f32 %v11076_v49, %v880_v0  ;;  %v11166_v3 = vadd.f32 %v11076_v49, %v902_v54  ;;  %v11175_v31 = vpop.permute.xlu1 %1197  ;;  %v11179_v1 = vpop.permute.xlu0 %1232  ;;  %v1374_v54 = vld [vmem:[%s12371_s4] sm:$0xff] }
 0x1e2   :  { %12459 = vst [vmem:[#allocation28_spill] sm:$0xff] %v11156_v46  ;;  %v11169_v33 = vadd.f32 %v11076_v49, %v907_v41  ;;  %v12464_v43 = vsub.f32 %v10690_v35, %v10869_v45  ;;  %12465 = vst [vmem:[#allocation33_spill] sm:$0xff] %v11175_v31  ;;  %v940_v16 = vadd.f32 %v11076_v49, %v886_v34  ;;  %v1375_v41 = vld [vmem:[%s12371_s4 + $0x8] sm:$0x3] }
 0x1e3   :  { %12460 = vst [vmem:[#allocation29_spill] sm:$0xff] %v11159_v52  ;;  %12461 = vst [vmem:[#allocation30_spill] sm:$0xff] %v11162_v51  ;;  %v941_v27 = vadd.f32 %v11076_v49, %v887_v20  ;;  %v983_v0 = vmax.f32 %v934_v59, 0.0  ;;  %v11189_v31 = vpack.c.bf16 %v1375_v41, %v1374_v54  ;;  %v933_v34 = vadd.f32 %v11076_v49, %v879_v17  ;;  %v12467_v20 = vld [vmem:[#allocation5_spill] sm:$0xff]  ;;  %v8309_v17 = vld [vmem:[%s12371_s4 + $0x28] sm:$0x3] }
 0x1e4   :  { %12462 = vst [vmem:[#allocation31_spill] sm:$0xff] %v11166_v3  ;;  %12463 = vst [vmem:[#allocation32_spill] sm:$0xff] %v11169_v33  ;;  %v909_v11 = vmul.f32 %v10995_v29, %v12464_v43  ;;  %v989_v35 = vmax.f32 %v940_v16, 0.0  ;;  %v12468_v51 = vld [vmem:[#allocation13_spill] sm:$0xff]  ;;  %v8308_v16 = vld [vmem:[%s12371_s4 + $0x20] sm:$0xff]  ;;  %v12474_v54 = vmov 0.0|0.0  }
 0x1e5   :  { %v990_v33 = vmax.f32 %v941_v27, 0.0  ;;  %v11187_v43 = vpop.permute.xlu1 %1227  ;;  %v1326_v3 = vmul.f32 %v12467_v20, %v983_v0  ;;  %v11199_v46 = vpop.permute.xlu0 %1207  ;;  %v12472_v0 = vmov 0.0   ;;  %v11219_v41 = vpack.c.bf16 %v8309_v17, %v8308_v16 }
 0x1e6   :  { %12466 = vst [vmem:[#allocation34_spill] sm:$0xff] %v11187_v43  ;;  %v11194_v59 = vmul.f32 %v12468_v51, %v989_v35  ;;  %12470 = vst [vmem:[#allocation5_spill] sm:$0xff] %v11199_v46  ;;  %v982_v51 = vmax.f32 %v933_v34, 0.0  ;;  %v12475_v35 = vsub.f32 %v10648_v28, %v10869_v45  ;;  %v12476_v34 = vsub.f32 %v10654_v36, %v10869_v45  ;;  %v12483_v43 = vld [vmem:[#allocation7_spill] sm:$0xff] }
 0x1e7   :  { %v11197_v52 = vmul.f32 %v12469_v7, %v990_v33  ;;  %8934 = vmatmul.mubr.msk.f32.vlgmr.msra.gmra.mrb[0].mxu1 %vm561_vm3, %v1326_v3  ;;  %v935_v7 = vadd.f32 %v11076_v49, %v11009_v12  ;;  %v963_v3 = vadd.f32 %v11076_v49, %v909_v11  ;;  %v12477_v12 = vsub.f32 %v10696_v44, %v10869_v45 }
 0x1e8   :  { %9566 = vmatpush3.bf16.msk.msra.mxu1 %vm10757_vm6, %v11189_v31  ;;  %8940 = vmatprep.mubr.msk.f32.mxu1 %vm10106_vm0, %v12472_v0  ;;  %v903_v20 = vmul.f32 %v10995_v29, %v12475_v35  ;;  %v904_v46 = vmul.f32 %v10995_v29, %v12476_v34  ;;  %v12479_v28 = vsub.f32 %v10662_v50, %v10869_v45 }
 0x1e9   :  { %v11216_v33 = vpop.permute.xlu1 %1202  ;;  %9567 = vmatprep.subr.bf16.mxu1 %v12474_v54  ;;  %v910_v11 = vmul.f32 %v10995_v29, %v12477_v12  ;;  %v11237_v17 = vpop.permute.xlu0 %1242  ;;  %v12480_v36 = vsub.f32 %v10668_v58, %v10869_v45  ;;  %v12481_v44 = vsub.f32 %v10710_v6, %v10869_v45  ;;  %v1325_v53 = vmul.f32 %v12483_v43, %v982_v51  ;;  %v8313_v51 = vld [vmem:[%s12371_s4 + $0x38] sm:$0x3] }
 0x1ea   :  { %12473 = vst [vmem:[#allocation13_spill] sm:$0xff] %v11216_v33  ;;  %v12478_v33 = vsub.f32 %v10704_v62, %v10869_v45  ;;  %v905_v35 = vmul.f32 %v10995_v29, %v12479_v28  ;;  %v12482_v62 = vsub.f32 %v10718_v25, %v10869_v45  ;;  %v11257_v50 = vadd.f32 %v11076_v49, %v903_v20 }
 0x1eb   :  { %v906_v34 = vmul.f32 %v10995_v29, %v12480_v36  ;;  %v912_v12 = vmul.f32 %v10995_v29, %v12481_v44  ;;  %v11260_v28 = vadd.f32 %v11076_v49, %v904_v46  ;;  %v964_v58 = vadd.f32 %v11076_v49, %v910_v11  ;;  %v8312_v46 = vld [vmem:[%s12371_s4 + $0x30] sm:$0xff] }
 0x1ec   :  { %v911_v16 = vmul.f32 %v10995_v29, %v12478_v33  ;;  %v913_v33 = vmul.f32 %v10995_v29, %v12482_v62  ;;  %v11264_v36 = vadd.f32 %v11076_v49, %v905_v35  ;;  %v984_v11 = vmax.f32 %v935_v7, 0.0 }
 0x1ed   :  { %v11267_v6 = vadd.f32 %v11076_v49, %v906_v34  ;;  %v11270_v25 = vadd.f32 %v11076_v49, %v912_v12  ;;  %v1013_v43 = vmax.f32 %v964_v58, 0.0  ;;  %v1238_v20 = vpop.permute.xlu1 %1237  ;;  %v11290_v34 = vpop.permute.xlu0 %1217  ;;  %v11292_v12 = vpack.c.bf16 %v8313_v51, %v8312_v46 }
 0x1ee   :  { %v11273_v44 = vadd.f32 %v11076_v49, %v913_v33  ;;  %v12485_v62 = vsub.f32 %v10724_v38, %v10869_v45  ;;  %v12486_v58 = vsub.f32 %v10732_v55, %v10869_v45  ;;  %v12487_v7 = vsub.f32 %v10738_v4, %v10869_v45 }
 0x1ef   :  { %8941 = vmatmul.mubr.msk.f32.vlgmr.msra.gmra.mrb[0].mxu1 %vm561_vm3, %v1325_v53  ;;  %v11287_v35 = vmul.f32 %v1238_v20, %v1013_v43  ;;  %v1012_v53 = vmax.f32 %v963_v3, 0.0  ;;  %v12488_v3 = vsub.f32 %v10796_v56, %v10869_v45  ;;  %v12489_v38 = vsub.f32 %v12420_v18, %v10869_v45  ;;  %v12493_v18 = vld [vmem:[#allocation9_spill] sm:$0xff] }
 0x1f0   :  { %12484 = vst [vmem:[#allocation10_spill] sm:$0xff] %v11273_v44  ;;  %9570 = vmatpush3.bf16.msk.msra.mxu1 %vm10757_vm6, %v11219_v41  ;;  %8947 = vmatprep.mubr.msk.f32.mxu1 %vm10106_vm0, %v12472_v0  ;;  %v914_v33 = vmul.f32 %v10995_v29, %v12485_v62  ;;  %v915_v44 = vmul.f32 %v10995_v29, %v12486_v58 }
 0x1f1   :  { %9571 = vmatprep.subr.bf16.mxu1 %v12474_v54  ;;  %v916_v43 = vmul.f32 %v10995_v29, %v12487_v7  ;;  %v921_v46 = vmul.f32 %v10995_v29, %v12488_v3  ;;  %9375 = vmatmul.mubr.msk.f32.vlgmr.msra.gmra.mrb[100].mxu0 %vm561_vm3, %v11287_v35  ;;  %v922_v55 = vmul.f32 %v10995_v29, %v12489_v38 }
 0x1f2   :  { %v12490_v51 = vsub.f32 %v12421_v15, %v10869_v45  ;;  %v12491_v20 = vsub.f32 %v10772_v48, %v10869_v45  ;;  %v12492_v62 = vsub.f32 %v10754_v30, %v10869_v45  ;;  %9818 = vmatpush3.bf16.msk.msra.mxu0 %vm10757_vm6, %v11189_v31  ;;  %v11336_v15 = vmul.f32 %v12493_v18, %v984_v11  ;;  %v11349_v30 = vpop.permute.xlu1 %1212 }
 0x1f3   :  { %v11339_v7 = vadd.f32 %v11076_v49, %v914_v33  ;;  %v11342_v48 = vadd.f32 %v11076_v49, %v915_v44  ;;  %v11345_v3 = vadd.f32 %v11076_v49, %v921_v46  ;;  %9381 = vmatprep.mubr.msk.f32.mxu0 %vm10106_vm0, %v12472_v0  ;;  %v11352_v38 = vadd.f32 %v11076_v49, %v922_v55  ;;  %v11358_v44 = vpop.permute.xlu0 %1252  ;;  %v8316_v46 = vld [vmem:[%s12371_s4 + $0x40] sm:$0xff] }
 0x1f4   :  { %v11320_v4 = vmul.f32 %v10995_v29, %v12490_v51  ;;  %v11326_v56 = vmul.f32 %v10995_v29, %v12491_v20  ;;  %v917_v58 = vmul.f32 %v10995_v29, %v12492_v62  ;;  %9819 = vmatprep.subr.bf16.mxu0 %v12474_v54  ;;  %v965_v11 = vadd.f32 %v11076_v49, %v911_v16  ;;  %v8317_v16 = vld [vmem:[%s12371_s4 + $0x48] sm:$0x3] }
 0x1f5   :  { %12494 = vst [vmem:[#allocation3_spill] sm:$0xff] %v11352_v38  ;;  %v11366_v33 = vmul.f32 %v11179_v1, %v1012_v53  ;;  %v12495_v55 = vsub.f32 %v10782_v10, %v10869_v45  ;;  %v12496_v20 = vsub.f32 %v10788_v24, %v10869_v45  ;;  %v12497_v53 = vsub.f32 %v12425_v21, %v10869_v45 }
 0x1f6   :  { %v12498_v18 = vsub.f32 %v12424_v8, %v10869_v45  ;;  %v1014_v10 = vmax.f32 %v965_v11, 0.0  ;;  %v12499_v24 = vsub.f32 %v12426_v9, %v10869_v45  ;;  %v12500_v21 = vsub.f32 %v10850_v61, %v10869_v45 }
 0x1f7   :  { %8948 = vmatmul.mubr.msk.f32.vlgmr.msra.gmra.mrb[0].mxu1 %vm561_vm3, %v11336_v15  ;;  %v919_v51 = vmul.f32 %v10995_v29, %v12495_v55  ;;  %v920_v1 = vmul.f32 %v10995_v29, %v12496_v20  ;;  %v925_v62 = vmul.f32 %v10995_v29, %v12497_v53  ;;  %v11393_v55 = vpop.permute.xlu1 %1247  ;;  %v11408_v8 = vpack.c.bf16 %v8317_v16, %v8316_v46  ;;  %v11423_v45 = vpop.permute.xlu0 %1262 }
 0x1f8   :  { %9574 = vmatpush3.bf16.msk.msra.mxu1 %vm10757_vm6, %v11292_v12  ;;  %8954 = vmatprep.mubr.msk.f32.mxu1 %vm10106_vm0, %v12472_v0  ;;  %v924_v38 = vmul.f32 %v10995_v29, %v12498_v18  ;;  %v926_v20 = vmul.f32 %v10995_v29, %v12499_v24  ;;  %v927_v53 = vmul.f32 %v10995_v29, %v12500_v21 }
 0x1f9   :  { %9575 = vmatprep.subr.bf16.mxu1 %v12474_v54  ;;  %9382 = vmatmul.mubr.msk.f32.vlgmr.msra.gmra.mrb[100].mxu0 %vm561_vm3, %v11366_v33  ;;  %v11411_v11 = vadd.f32 %v11076_v49, %v919_v51  ;;  %v11414_v9 = vadd.f32 %v11076_v49, %v920_v1  ;;  %v11417_v18 = vadd.f32 %v11076_v49, %v925_v62  ;;  %v8320_v51 = vld [vmem:[%s12371_s4 + $0x50] sm:$0xff] }
 0x1fa   :  { %9822 = vmatpush3.bf16.msk.msra.mxu0 %vm10757_vm6, %v11219_v41  ;;  %9388 = vmatprep.mubr.msk.f32.mxu0 %vm10106_vm0, %v12472_v0  ;;  %v11420_v61 = vadd.f32 %v11076_v49, %v924_v38  ;;  %v11426_v29 = vadd.f32 %v11076_v49, %v926_v20  ;;  %v11429_v46 = vadd.f32 %v11076_v49, %v927_v53 }
 0x1fb   :  { %9823 = vmatprep.subr.bf16.mxu0 %v12474_v54  ;;  %v11439_v38 = vmul.f32 %v11237_v17, %v1014_v10  ;;  %v970_v16 = vadd.f32 %v11076_v49, %v916_v43  ;;  %v11449_v1 = vpop.permute.xlu1 %1257  ;;  %v11453_v62 = vpop.permute.xlu0 %1292  ;;  %v942_v43 = vadd.f32 %v11076_v49, %v11041_v23  ;;  %v971_v53 = vadd.f32 %v11076_v49, %v917_v58  ;;  %v8324_v23 = vld [vmem:[%s12371_s4 + $0x60] sm:$0xff] }
 0x1fc   :  { %12501 = vst [vmem:[#allocation7_spill] sm:$0xff] %v11429_v46 }
 0x1fd   :  { %v1019_v10 = vmax.f32 %v970_v16, 0.0  ;;  %v991_v20 = vmax.f32 %v942_v43, 0.0 }
 0x1ff   :  { %8955 = vmatmul.mubr.msk.f32.vlgmr.msra.gmra.mrb[0].mxu1 %vm561_vm3, %v11194_v59  ;;  %v8321_v59 = vld [vmem:[%s12371_s4 + $0x58] sm:$0x3]  ;;  %v1268_v24 = vpop.permute.xlu1 %1267  ;;  %v1303_v16 = vpop.permute.xlu0 %1302 }
 0x200   :  { %9578 = vmatpush3.bf16.msk.msra.mxu1 %vm10757_vm6, %v11408_v8  ;;  %8961 = vmatprep.mubr.msk.f32.mxu1 %vm10106_vm0, %v12472_v0  ;;  %v11460_v17 = vpack.c.bf16 %v8321_v59, %v8320_v51  ;;  %v11472_v21 = vmul.f32 %v1268_v24, %v1019_v10  ;;  %v947_v51 = vadd.f32 %v11076_v49, %v11063_v60  ;;  %v12502_v59 = vld [vmem:[#allocation15_spill] sm:$0xff]  ;;  %v1020_v10 = vmax.f32 %v971_v53, 0.0  ;;  %v8328_v53 = vld [vmem:[%s12371_s4 + $0x70] sm:$0xff] }
 0x201   :  { %9579 = vmatprep.subr.bf16.mxu1 %v12474_v54  ;;  %9389 = vmatmul.mubr.msk.f32.vlgmr.msra.gmra.mrb[100].mxu0 %vm561_vm3, %v11439_v38  ;;  %v11494_v43 = vmul.f32 %v12502_v59, %v991_v20  ;;  %v972_v60 = vadd.f32 %v11076_v49, %v11326_v56 }
 0x202   :  { %9826 = vmatpush3.bf16.msk.msra.mxu0 %vm10757_vm6, %v11292_v12  ;;  %9395 = vmatprep.mubr.msk.f32.mxu0 %vm10106_vm0, %v12472_v0 }
 0x203   :  { %9827 = vmatprep.subr.bf16.mxu0 %v12474_v54  ;;  %v1273_v24 = vpop.permute.xlu0 %1272  ;;  %v11513_v59 = vpop.permute.xlu1 %1297  ;;  %v1021_v46 = vmax.f32 %v972_v60, 0.0  ;;  %v8332_v60 = vld [vmem:[%s12371_s4 + $0x80] sm:$0xff] }
 0x204   :  { %v1363_v20 = vmul.f32 %v1273_v24, %v1020_v10  ;;  %v12503_v10 = vld [vmem:[#allocation14_spill] sm:$0xff] }
 0x207   :  { %8962 = vmatmul.mubr.msk.f32.vlgmr.msra.gmra.mrb[0].mxu1 %vm561_vm3, %v11197_v52  ;;  %v8325_v52 = vld [vmem:[%s12371_s4 + $0x68] sm:$0x3] }
 0x208   :  { %9582 = vmatpush3.bf16.msk.msra.mxu1 %vm10757_vm6, %v11460_v17  ;;  %8968 = vmatprep.mubr.msk.f32.mxu1 %vm10106_vm0, %v12472_v0  ;;  %v11489_v58 = vpack.c.bf16 %v8325_v52, %v8324_v23  ;;  %v996_v23 = vmax.f32 %v947_v51, 0.0  ;;  %v8329_v52 = vld [vmem:[%s12371_s4 + $0x78] sm:$0x3]  ;;  %v948_v51 = vadd.f32 %v11076_v49, %v11069_v32  ;;  %v977_v32 = vadd.f32 %v11076_v49, %v11320_v4 }
 0x209   :  { %9583 = vmatprep.subr.bf16.mxu1 %v12474_v54  ;;  %9396 = vmatmul.mubr.msk.f32.vlgmr.msra.gmra.mrb[100].mxu0 %vm561_vm3, %v11472_v21  ;;  %v11521_v56 = vpack.c.bf16 %v8329_v52, %v8328_v53  ;;  %v8333_v52 = vld [vmem:[%s12371_s4 + $0x88] sm:$0x3] }
 0x20a   :  { %9830 = vmatpush3.bf16.msk.msra.mxu0 %vm10757_vm6, %v11408_v8  ;;  %9402 = vmatprep.mubr.msk.f32.mxu0 %vm10106_vm0, %v12472_v0  ;;  %v11526_v24 = vmul.f32 %v12503_v10, %v996_v23  ;;  %v997_v53 = vmax.f32 %v948_v51, 0.0  ;;  %v11554_v49 = vpack.c.bf16 %v8333_v52, %v8332_v60  ;;  %v998_v51 = vmax.f32 %v11144_v39, 0.0  ;;  %v12505_v60 = vld [vmem:[#allocation2_spill] sm:$0xff] }
 0x20b   :  { %9831 = vmatprep.subr.bf16.mxu0 %v12474_v54 }
 0x20c   :  { %v11557_v4 = vmul.f32 %v10861_v22, %v997_v53  ;;  %v11571_v22 = vpop.permute.xlu0 %1287  ;;  %v12504_v53 = vld [vmem:[#allocation16_spill] sm:$0xff] }
 0x20d   :  { %v11582_v39 = vmul.f32 %v12504_v53, %v998_v51 }
 0x20f   :  { %8969 = vmatmul.mubr.msk.f32.vlgmr.msra.gmra.mrb[0].mxu1 %vm561_vm3, %v11494_v43 }
 0x210   :  { %9586 = vmatpush3.bf16.msk.msra.mxu1 %vm10757_vm6, %v11489_v58  ;;  %8975 = vmatprep.mubr.msk.f32.mxu1 %vm10106_vm0, %v12472_v0 }
 0x211   :  { %9587 = vmatprep.subr.bf16.mxu1 %v12474_v54  ;;  %9403 = vmatmul.mubr.msk.f32.vlgmr.msra.gmra.mrb[100].mxu0 %vm561_vm3, %v1363_v20  ;;  %v1278_v20 = vpop.permute.xlu1 %1277 }
 0x212   :  { %9834 = vmatpush3.bf16.msk.msra.mxu0 %vm10757_vm6, %v11460_v17  ;;  %9409 = vmatprep.mubr.msk.f32.mxu0 %vm10106_vm0, %v12472_v0  ;;  %v11538_v23 = vmul.f32 %v1278_v20, %v1021_v46  ;;  %v1026_v46 = vmax.f32 %v977_v32, 0.0  ;;  %v985_v20 = vmax.f32 %v11113_v13, 0.0  ;;  %v1308_v32 = vpop.permute.xlu0 %1307 }
 0x213   :  { %9835 = vmatprep.subr.bf16.mxu0 %v12474_v54 }
 0x214   :  { %v11568_v10 = vmul.f32 %v1303_v16, %v1026_v46  ;;  %v1027_v16 = vmax.f32 %v11420_v61, 0.0  ;;  %v1328_v13 = vmul.f32 %v10865_v63, %v985_v20  ;;  %v1028_v61 = vmax.f32 %v11417_v18, 0.0  ;;  %v12506_v20 = vld [vmem:[#allocation17_spill] sm:$0xff] }
 0x215   :  { %v11595_v46 = vpop.permute.xlu1 %1282  ;;  %v986_v18 = vmax.f32 %v11116_v57, 0.0  ;;  %v992_v57 = vmax.f32 %v11130_v47, 0.0  ;;  %v999_v47 = vmax.f32 %v11147_v26, 0.0  ;;  %v987_v26 = vmax.f32 %v11119_v19, 0.0 }
 0x216   :  { %v1370_v52 = vmul.f32 %v1308_v32, %v1027_v16  ;;  %v12508_v32 = vld [vmem:[#allocation18_spill] sm:$0xff]  ;;  %v988_v19 = vmax.f32 %v11127_v14, 0.0  ;;  %v994_v14 = vmax.f32 %v11136_v5, 0.0  ;;  %v1001_v5 = vmax.f32 %v11153_v37, 0.0  ;;  %v12517_v37 = vld [vmem:[#allocation12_spill] sm:$0xff] }
 0x217   :  { %8976 = vmatmul.mubr.msk.f32.vlgmr.msra.gmra.mrb[0].mxu1 %vm561_vm3, %v11526_v24  ;;  %v1329_v53 = vmul.f32 %v12506_v20, %v986_v18  ;;  %v12511_v20 = vld [vmem:[#allocation4_spill] sm:$0xff] }
 0x218   :  { %9590 = vmatpush3.bf16.msk.msra.mxu1 %vm10757_vm6, %v11521_v56  ;;  %8982 = vmatprep.mubr.msk.f32.mxu1 %vm10106_vm0, %v12472_v0 }
 0x219   :  { %9591 = vmatprep.subr.bf16.mxu1 %v12474_v54  ;;  %9410 = vmatmul.mubr.msk.f32.vlgmr.msra.gmra.mrb[100].mxu0 %vm561_vm3, %v11538_v23  ;;  %v1313_v63 = vpop.permute.xlu1 %1312 }
 0x21a   :  { %9838 = vmatpush3.bf16.msk.msra.mxu0 %vm10757_vm6, %v11489_v58  ;;  %9416 = vmatprep.mubr.msk.f32.mxu0 %vm10106_vm0, %v12472_v0  ;;  %v11612_v51 = vmul.f32 %v1313_v63, %v1028_v61  ;;  %v1000_v61 = vmax.f32 %v11150_v2, 0.0  ;;  %v12510_v63 = vld [vmem:[#allocation20_spill] sm:$0xff]  ;;  %v12512_v2 = vld [vmem:[#allocation22_spill] sm:$0xff] }
 0x21b   :  { %9839 = vmatprep.subr.bf16.mxu0 %v12474_v54 }
 0x21c   :  { %v11684_v18 = vmul.f32 %v12510_v63, %v1000_v61  ;;  %v12519_v63 = vld [vmem:[#allocation25_spill] sm:$0xff] }
 0x21f   :  { %8983 = vmatmul.mubr.msk.f32.vlgmr.msra.gmra.mrb[0].mxu1 %vm561_vm3, %v11557_v4 }
 0x220   :  { %9594 = vmatpush3.bf16.msk.msra.mxu1 %vm10757_vm6, %v11554_v49  ;;  %8989 = vmatprep.mubr.msk.f32.mxu1 %vm10106_vm0, %v12472_v0 }
 0x221   :  { %9595 = vmatprep.subr.bf16.mxu1 %v12474_v54  ;;  %9417 = vmatmul.mubr.msk.f32.vlgmr.msra.gmra.mrb[100].mxu0 %vm561_vm3, %v11568_v10 }
 0x222   :  { %9842 = vmatpush3.bf16.msk.msra.mxu0 %vm10757_vm6, %v11521_v56  ;;  %9423 = vmatprep.mubr.msk.f32.mxu0 %vm10106_vm0, %v12472_v0 }
 0x223   :  { %9843 = vmatprep.subr.bf16.mxu0 %v12474_v54 }
 0x227   :  { %8990 = vmatmul.mubr.msk.f32.vlgmr.msra.gmra.mrb[0].mxu1 %vm561_vm3, %v11582_v39 }
 0x228   :  { %9598 = vmatpush3.bf16.msk.msra.mxu1 %vm10757_vm6, %v12505_v60  ;;  %8996 = vmatprep.mubr.msk.f32.mxu1 %vm10106_vm0, %v12472_v0 }
 0x229   :  { %9599 = vmatprep.subr.bf16.mxu1 %v12474_v54  ;;  %9424 = vmatmul.mubr.msk.f32.vlgmr.msra.gmra.mrb[100].mxu0 %vm561_vm3, %v1370_v52 }
 0x22a   :  { %9846 = vmatpush3.bf16.msk.msra.mxu0 %vm10757_vm6, %v11554_v49  ;;  %9430 = vmatprep.mubr.msk.f32.mxu0 %vm10106_vm0, %v12472_v0 }
 0x22b   :  { %8997 = vmatmul.mubr.msk.f32.vlgmr.msra.gmra.mrb[2].mxu1 %vm561_vm3, %v1328_v13  ;;  %9883 = vmatprep.subr.bf16.mxu0 %v12474_v54 }
 0x22c   :  { %9602 = vmatpush3.bf16.msk.msra.mxu1 %vm10757_vm6, %v11189_v31  ;;  %9003 = vmatprep.mubr.msk.f32.mxu1 %vm10106_vm0, %v12472_v0 }
 0x22d   :  { %9603 = vmatprep.subr.bf16.mxu1 %v12474_v54 }
 0x231   :  { %9431 = vmatmul.mubr.msk.f32.vlgmr.msra.gmra.mrb[100].mxu0 %vm561_vm3, %v11612_v51 }
 0x232   :  { %9500 = vmatprep.mubr.msk.f32.mxu0 %vm10106_vm0, %v12472_v0 }
 0x233   :  { %9004 = vmatmul.mubr.msk.f32.vlgmr.msra.gmra.mrb[2].mxu1 %vm561_vm3, %v11336_v15  ;;  %v12507_v15 = vld [vmem:[#allocation19_spill] sm:$0xff] }
 0x234   :  { %9606 = vmatpush3.bf16.msk.msra.mxu1 %vm10757_vm6, %v11219_v41  ;;  %9010 = vmatprep.mubr.msk.f32.mxu1 %vm10106_vm0, %v12472_v0  ;;  %v1335_v16 = vmul.f32 %v12507_v15, %v992_v57  ;;  %v1330_v57 = vmul.f32 %v12511_v20, %v987_v26  ;;  %v1331_v15 = vmul.f32 %v12512_v2, %v988_v19  ;;  %v12521_v2 = vld [vmem:[#allocation24_spill] sm:$0xff] }
 0x235   :  { %9607 = vmatprep.subr.bf16.mxu1 %v12474_v54 }
 0x23b   :  { %9011 = vmatmul.mubr.msk.f32.vlgmr.msra.gmra.mrb[2].mxu1 %vm561_vm3, %v1329_v53 }
 0x23c   :  { %9610 = vmatpush3.bf16.msk.msra.mxu1 %vm10757_vm6, %v11292_v12  ;;  %9017 = vmatprep.mubr.msk.f32.mxu1 %vm10106_vm0, %v12472_v0 }
 0x23d   :  { %9611 = vmatprep.subr.bf16.mxu1 %v12474_v54 }
 0x243   :  { %9018 = vmatmul.mubr.msk.f32.vlgmr.msra.gmra.mrb[2].mxu1 %vm561_vm3, %v11494_v43  ;;  %v993_v43 = vmax.f32 %v11133_v40, 0.0  ;;  %v12509_v40 = vld [vmem:[#allocation21_spill] sm:$0xff] }
 0x244   :  { %9614 = vmatpush3.bf16.msk.msra.mxu1 %vm10757_vm6, %v11408_v8  ;;  %9024 = vmatprep.mubr.msk.f32.mxu1 %vm10106_vm0, %v12472_v0  ;;  %v11671_v52 = vmul.f32 %v12509_v40, %v999_v47  ;;  %v12516_v40 = vld [vmem:[#allocation28_spill] sm:$0xff] }
 0x245   :  { %9615 = vmatprep.subr.bf16.mxu1 %v12474_v54  ;;  %v1336_v13 = vmul.f32 %v12508_v32, %v993_v43  ;;  %v995_v43 = vmax.f32 %v11141_v42, 0.0  ;;  %v12514_v32 = vld [vmem:[#allocation8_spill] sm:$0xff]  ;;  %v12515_v42 = vld [vmem:[#allocation23_spill] sm:$0xff]  ;;  %v1002_v61 = vmax.f32 %v12516_v40, 0.0  ;;  %v12526_v40 = vld [vmem:[#allocation26_spill] sm:$0xff] }
 0x246   :  { %v11753_v47 = vmul.f32 %v12515_v42, %v1001_v5  ;;  %v12525_v5 = vld [vmem:[#allocation27_spill] sm:$0xff] }
 0x247   :  { %v11765_v26 = vmul.f32 %v12517_v37, %v1002_v61  ;;  %v1011_v61 = vmax.f32 %v12526_v40, 0.0  ;;  %v12527_v37 = vld [vmem:[#allocation34_spill] sm:$0xff] }
 0x24b   :  { %9025 = vmatmul.mubr.msk.f32.vlgmr.msra.gmra.mrb[2].mxu1 %vm561_vm3, %v1335_v16 }
 0x24c   :  { %9618 = vmatpush3.bf16.msk.msra.mxu1 %vm10757_vm6, %v11460_v17  ;;  %9031 = vmatprep.mubr.msk.f32.mxu1 %vm10106_vm0, %v12472_v0 }
 0x24d   :  { %9619 = vmatprep.subr.bf16.mxu1 %v12474_v54 }
 0x253   :  { %9032 = vmatmul.mubr.msk.f32.vlgmr.msra.gmra.mrb[2].mxu1 %vm561_vm3, %v1336_v13 }
 0x254   :  { %9622 = vmatpush3.bf16.msk.msra.mxu1 %vm10757_vm6, %v11489_v58  ;;  %9038 = vmatprep.mubr.msk.f32.mxu1 %vm10106_vm0, %v12472_v0 }
 0x255   :  { %9623 = vmatprep.subr.bf16.mxu1 %v12474_v54 }
 0x25b   :  { %9039 = vmatmul.mubr.msk.f32.vlgmr.msra.gmra.mrb[2].mxu1 %vm561_vm3, %v11582_v39 }
 0x25c   :  { %9626 = vmatpush3.bf16.msk.msra.mxu1 %vm10757_vm6, %v11521_v56  ;;  %9045 = vmatprep.mubr.msk.f32.mxu1 %vm10106_vm0, %v12472_v0 }
 0x25d   :  { %9627 = vmatprep.subr.bf16.mxu1 %v12474_v54 }
 0x263   :  { %9046 = vmatmul.mubr.msk.f32.vlgmr.msra.gmra.mrb[2].mxu1 %vm561_vm3, %v11671_v52 }
 0x264   :  { %9630 = vmatpush3.bf16.msk.msra.mxu1 %vm10757_vm6, %v11554_v49  ;;  %9052 = vmatprep.mubr.msk.f32.mxu1 %vm10106_vm0, %v12472_v0 }
 0x265   :  { %9631 = vmatprep.subr.bf16.mxu1 %v12474_v54 }
 0x26b   :  { %9053 = vmatmul.mubr.msk.f32.vlgmr.msra.gmra.mrb[2].mxu1 %vm561_vm3, %v11684_v18 }
 0x26c   :  { %9634 = vmatpush3.bf16.msk.msra.mxu1 %vm10757_vm6, %v12505_v60  ;;  %9059 = vmatprep.mubr.msk.f32.mxu1 %vm10106_vm0, %v12472_v0 }
 0x26d   :  { %9635 = vmatprep.subr.bf16.mxu1 %v12474_v54 }
 0x26f   :  { %9060 = vmatmul.mubr.msk.f32.vlgmr.msra.gmra.mrb[4].mxu1 %vm561_vm3, %v1330_v57  ;;  %v12520_v57 = vld [vmem:[#allocation30_spill] sm:$0xff] }
 0x270   :  { %9638 = vmatpush3.bf16.msk.msra.mxu1 %vm10757_vm6, %v11189_v31  ;;  %9066 = vmatprep.mubr.msk.f32.mxu1 %vm10106_vm0, %v12472_v0  ;;  %v1004_v19 = vmax.f32 %v12520_v57, 0.0  ;;  %v12528_v57 = vld [vmem:[#allocation13_spill] sm:$0xff] }
 0x271   :  { %9639 = vmatprep.subr.bf16.mxu1 %v12474_v54 }
 0x277   :  { %9067 = vmatmul.mubr.msk.f32.vlgmr.msra.gmra.mrb[4].mxu1 %vm561_vm3, %v1329_v53  ;;  %v12513_v53 = vld [vmem:[#allocation11_spill] sm:$0xff] }
 0x278   :  { %9642 = vmatpush3.bf16.msk.msra.mxu1 %vm10757_vm6, %v11219_v41  ;;  %9073 = vmatprep.mubr.msk.f32.mxu1 %vm10106_vm0, %v12472_v0  ;;  %v1337_v16 = vmul.f32 %v12513_v53, %v994_v14  ;;  %v12522_v14 = vld [vmem:[#allocation31_spill] sm:$0xff] }
 0x279   :  { %9643 = vmatprep.subr.bf16.mxu1 %v12474_v54  ;;  %v1005_v53 = vmax.f32 %v12522_v14, 0.0 }
 0x27f   :  { %9074 = vmatmul.mubr.msk.f32.vlgmr.msra.gmra.mrb[4].mxu1 %vm561_vm3, %v1331_v15  ;;  %v1347_v15 = vmul.f32 %v12521_v2, %v1004_v19  ;;  %v1007_v2 = vmax.f32 %v11260_v28, 0.0 }
 0x280   :  { %9646 = vmatpush3.bf16.msk.msra.mxu1 %vm10757_vm6, %v11292_v12  ;;  %9080 = vmatprep.mubr.msk.f32.mxu1 %vm10106_vm0, %v12472_v0 }
 0x281   :  { %9647 = vmatprep.subr.bf16.mxu1 %v12474_v54 }
 0x287   :  { %9081 = vmatmul.mubr.msk.f32.vlgmr.msra.gmra.mrb[4].mxu1 %vm561_vm3, %v1336_v13  ;;  %v1338_v13 = vmul.f32 %v12514_v32, %v995_v43  ;;  %v12524_v32 = vld [vmem:[#allocation32_spill] sm:$0xff] }
 0x288   :  { %9650 = vmatpush3.bf16.msk.msra.mxu1 %vm10757_vm6, %v11408_v8  ;;  %9087 = vmatprep.mubr.msk.f32.mxu1 %vm10106_vm0, %v12472_v0 }
 0x289   :  { %9651 = vmatprep.subr.bf16.mxu1 %v12474_v54 }
 0x28f   :  { %9088 = vmatmul.mubr.msk.f32.vlgmr.msra.gmra.mrb[4].mxu1 %vm561_vm3, %v1337_v16  ;;  %v12523_v16 = vld [vmem:[#allocation33_spill] sm:$0xff] }
 0x290   :  { %9654 = vmatpush3.bf16.msk.msra.mxu1 %vm10757_vm6, %v11460_v17  ;;  %9094 = vmatprep.mubr.msk.f32.mxu1 %vm10106_vm0, %v12472_v0  ;;  %v1348_v43 = vmul.f32 %v12523_v16, %v1005_v53 }
 0x291   :  { %9655 = vmatprep.subr.bf16.mxu1 %v12474_v54 }
 0x297   :  { %9095 = vmatmul.mubr.msk.f32.vlgmr.msra.gmra.mrb[4].mxu1 %vm561_vm3, %v1338_v13  ;;  %v1010_v13 = vmax.f32 %v12524_v32, 0.0 }
 0x298   :  { %9658 = vmatpush3.bf16.msk.msra.mxu1 %vm10757_vm6, %v11489_v58  ;;  %9101 = vmatprep.mubr.msk.f32.mxu1 %vm10106_vm0, %v12472_v0 }
 0x299   :  { %9659 = vmatprep.subr.bf16.mxu1 %v12474_v54  ;;  %v11828_v42 = vmul.f32 %v12525_v5, %v1010_v13 }
 0x29f   :  { %9102 = vmatmul.mubr.msk.f32.vlgmr.msra.gmra.mrb[4].mxu1 %vm561_vm3, %v11684_v18 }
 0x2a0   :  { %9662 = vmatpush3.bf16.msk.msra.mxu1 %vm10757_vm6, %v11521_v56  ;;  %9108 = vmatprep.mubr.msk.f32.mxu1 %vm10106_vm0, %v12472_v0 }
 0x2a1   :  { %9663 = vmatprep.subr.bf16.mxu1 %v12474_v54 }
 0x2a7   :  { %9109 = vmatmul.mubr.msk.f32.vlgmr.msra.gmra.mrb[4].mxu1 %vm561_vm3, %v11753_v47 }
 0x2a8   :  { %9666 = vmatpush3.bf16.msk.msra.mxu1 %vm10757_vm6, %v11554_v49  ;;  %9115 = vmatprep.mubr.msk.f32.mxu1 %vm10106_vm0, %v12472_v0 }
 0x2a9   :  { %9667 = vmatprep.subr.bf16.mxu1 %v12474_v54 }
 0x2af   :  { %9116 = vmatmul.mubr.msk.f32.vlgmr.msra.gmra.mrb[4].mxu1 %vm561_vm3, %v11765_v26 }
 0x2b0   :  { %9670 = vmatpush3.bf16.msk.msra.mxu1 %vm10757_vm6, %v12505_v60  ;;  %9122 = vmatprep.mubr.msk.f32.mxu1 %vm10106_vm0, %v12472_v0 }
 0x2b1   :  { %9671 = vmatprep.subr.bf16.mxu1 %v12474_v54 }
 0x2b3   :  { %9123 = vmatmul.mubr.msk.f32.vlgmr.msra.gmra.mrb[6].mxu1 %vm561_vm3, %v11557_v4 }
 0x2b4   :  { %9674 = vmatpush3.bf16.msk.msra.mxu1 %vm10757_vm6, %v11189_v31  ;;  %9129 = vmatprep.mubr.msk.f32.mxu1 %vm10106_vm0, %v12472_v0 }
 0x2b5   :  { %9675 = vmatprep.subr.bf16.mxu1 %v12474_v54 }
 0x2bb   :  { %9130 = vmatmul.mubr.msk.f32.vlgmr.msra.gmra.mrb[6].mxu1 %vm561_vm3, %v11526_v24  ;;  %v12518_v24 = vld [vmem:[#allocation29_spill] sm:$0xff] }
 0x2bc   :  { %9678 = vmatpush3.bf16.msk.msra.mxu1 %vm10757_vm6, %v11219_v41  ;;  %9136 = vmatprep.mubr.msk.f32.mxu1 %vm10106_vm0, %v12472_v0  ;;  %v1003_v4 = vmax.f32 %v12518_v24, 0.0  ;;  %v11840_v24 = vmul.f32 %v12527_v37, %v1011_v61 }
 0x2bd   :  { %9679 = vmatprep.subr.bf16.mxu1 %v12474_v54 }
 0x2be   :  { %v1346_v20 = vmul.f32 %v12519_v63, %v1003_v4 }
 0x2c3   :  { %9137 = vmatmul.mubr.msk.f32.vlgmr.msra.gmra.mrb[6].mxu1 %vm561_vm3, %v11582_v39 }
 0x2c4   :  { %9682 = vmatpush3.bf16.msk.msra.mxu1 %vm10757_vm6, %v11292_v12  ;;  %9143 = vmatprep.mubr.msk.f32.mxu1 %vm10106_vm0, %v12472_v0 }
 0x2c5   :  { %9683 = vmatprep.subr.bf16.mxu1 %v12474_v54 }
 0x2cb   :  { %9144 = vmatmul.mubr.msk.f32.vlgmr.msra.gmra.mrb[6].mxu1 %vm561_vm3, %v1346_v20 }
 0x2cc   :  { %9686 = vmatpush3.bf16.msk.msra.mxu1 %vm10757_vm6, %v11408_v8  ;;  %9150 = vmatprep.mubr.msk.f32.mxu1 %vm10106_vm0, %v12472_v0 }
 0x2cd   :  { %9687 = vmatprep.subr.bf16.mxu1 %v12474_v54 }
 0x2d3   :  { %9151 = vmatmul.mubr.msk.f32.vlgmr.msra.gmra.mrb[6].mxu1 %vm561_vm3, %v1347_v15  ;;  %v12529_v15 = vld [vmem:[#allocation5_spill] sm:$0xff] }
 0x2d4   :  { %9690 = vmatpush3.bf16.msk.msra.mxu1 %vm10757_vm6, %v11460_v17  ;;  %9157 = vmatprep.mubr.msk.f32.mxu1 %vm10106_vm0, %v12472_v0  ;;  %v11904_v14 = vmul.f32 %v12529_v15, %v1007_v2 }
 0x2d5   :  { %9691 = vmatprep.subr.bf16.mxu1 %v12474_v54 }
 0x2db   :  { %9158 = vmatmul.mubr.msk.f32.vlgmr.msra.gmra.mrb[6].mxu1 %vm561_vm3, %v1348_v43 }
 0x2dc   :  { %9694 = vmatpush3.bf16.msk.msra.mxu1 %vm10757_vm6, %v11489_v58  ;;  %9164 = vmatprep.mubr.msk.f32.mxu1 %vm10106_vm0, %v12472_v0 }
 0x2dd   :  { %9695 = vmatprep.subr.bf16.mxu1 %v12474_v54 }
 0x2e3   :  { %9165 = vmatmul.mubr.msk.f32.vlgmr.msra.gmra.mrb[6].mxu1 %vm561_vm3, %v11828_v42 }
 0x2e4   :  { %9698 = vmatpush3.bf16.msk.msra.mxu1 %vm10757_vm6, %v11521_v56  ;;  %9171 = vmatprep.mubr.msk.f32.mxu1 %vm10106_vm0, %v12472_v0 }
 0x2e5   :  { %9699 = vmatprep.subr.bf16.mxu1 %v12474_v54 }
 0x2eb   :  { %9172 = vmatmul.mubr.msk.f32.vlgmr.msra.gmra.mrb[6].mxu1 %vm561_vm3, %v11840_v24 }
 0x2ec   :  { %9702 = vmatpush3.bf16.msk.msra.mxu1 %vm10757_vm6, %v11554_v49  ;;  %9178 = vmatprep.mubr.msk.f32.mxu1 %vm10106_vm0, %v12472_v0 }
 0x2ed   :  { %9703 = vmatprep.subr.bf16.mxu1 %v12474_v54 }
 0x2f3   :  { %9179 = vmatmul.mubr.msk.f32.vlgmr.msra.gmra.mrb[6].mxu1 %vm561_vm3, %v11366_v33 }
 0x2f4   :  { %9706 = vmatpush3.bf16.msk.msra.mxu1 %vm10757_vm6, %v12505_v60  ;;  %9185 = vmatprep.mubr.msk.f32.mxu1 %vm10106_vm0, %v12472_v0 }
 0x2f5   :  { %9707 = vmatprep.subr.bf16.mxu1 %v12474_v54 }
 0x2f7   :  { %9186 = vmatmul.mubr.msk.f32.vlgmr.msra.gmra.mrb[8].mxu1 %vm561_vm3, %v11671_v52 }
 0x2f8   :  { %9710 = vmatpush3.bf16.msk.msra.mxu1 %vm10757_vm6, %v11189_v31  ;;  %9192 = vmatprep.mubr.msk.f32.mxu1 %vm10106_vm0, %v12472_v0 }
 0x2f9   :  { %9711 = vmatprep.subr.bf16.mxu1 %v12474_v54 }
 0x2fa   :  { %v11866_v4 = vpop.f32.mrb[0].mxu1 }
 0x2fb   :  { %v8991_v63 = vpop.f32.mrb[1].mxu1  ;;  %v2092_v28 = vsel %vm561_vm3, %v11866_v4, 0.0 }
 0x2fc   :  { %v2093_v16 = vrot.slane %v2092_v28, 4 }
 0x2ff   :  { %9193 = vmatmul.mubr.msk.f32.vlgmr.msra.gmra.mrb[8].mxu1 %vm561_vm3, %v11582_v39  ;;  %v1006_v39 = vmax.f32 %v11257_v50, 0.0  ;;  %v2100_v50 = vmul.f32 %v11866_v4, %v11866_v4 }
 0x300   :  { %9714 = vmatpush3.bf16.msk.msra.mxu1 %vm10757_vm6, %v11219_v41  ;;  %9199 = vmatprep.mubr.msk.f32.mxu1 %vm10106_vm0, %v12472_v0 }
 0x301   :  { %9715 = vmatprep.subr.bf16.mxu1 %v12474_v54  ;;  %v1349_v19 = vmul.f32 %v12528_v57, %v1006_v39  ;;  %v2101_v53 = vsel %vm561_vm3, %v2100_v50, 0.0 }
 0x304   :  { %v11876_v52 = vpop.f32.mrb[100].mxu0 }
 0x305   :  { %v9432_v20 = vpop.f32.mrb[101].mxu0 }
 0x307   :  { %9200 = vmatmul.mubr.msk.f32.vlgmr.msra.gmra.mrb[8].mxu1 %vm561_vm3, %v11684_v18 }
 0x308   :  { %9718 = vmatpush3.bf16.msk.msra.mxu1 %vm10757_vm6, %v11292_v12  ;;  %9206 = vmatprep.mubr.msk.f32.mxu1 %vm10106_vm0, %v12472_v0 }
 0x309   :  { %9719 = vmatprep.subr.bf16.mxu1 %v12474_v54 }
 0x30f   :  { %9207 = vmatmul.mubr.msk.f32.vlgmr.msra.gmra.mrb[8].mxu1 %vm561_vm3, %v1348_v43  ;;  %v2094_v43 = vadd.f32 %v2093_v16, %v2092_v28 }
 0x310   :  { %9722 = vmatpush3.bf16.msk.msra.mxu1 %vm10757_vm6, %v11408_v8  ;;  %9213 = vmatprep.mubr.msk.f32.mxu1 %vm10106_vm0, %v12472_v0 }
 0x311   :  { %9723 = vmatprep.subr.bf16.mxu1 %v12474_v54  ;;  %v2095_v13 = vrot.slane %v2094_v43, 2 }
 0x313   :  { %v2096_v39 = vadd.f32 %v2095_v13, %v2094_v43 }
 0x315   :  { %v2097_v28 = vrot.slane %v2096_v39, 1 }
 0x317   :  { %9214 = vmatmul.mubr.msk.f32.vlgmr.msra.gmra.mrb[8].mxu1 %vm561_vm3, %v1349_v19 }
 0x318   :  { %9726 = vmatpush3.bf16.msk.msra.mxu1 %vm10757_vm6, %v11460_v17  ;;  %9220 = vmatprep.mubr.msk.f32.mxu1 %vm10106_vm0, %v12472_v0 }
 0x319   :  { %9727 = vmatprep.subr.bf16.mxu1 %v12474_v54 }
 0x31f   :  { %9221 = vmatmul.mubr.msk.f32.vlgmr.msra.gmra.mrb[8].mxu1 %vm561_vm3, %v11904_v14 }
 0x320   :  { %9730 = vmatpush3.bf16.msk.msra.mxu1 %vm10757_vm6, %v11489_v58  ;;  %9227 = vmatprep.mubr.msk.f32.mxu1 %vm10106_vm0, %v12472_v0 }
 0x321   :  { %9731 = vmatprep.subr.bf16.mxu1 %v12474_v54 }
 0x327   :  { %9228 = vmatmul.mubr.msk.f32.vlgmr.msra.gmra.mrb[8].mxu1 %vm561_vm3, %v11366_v33 }
 0x328   :  { %9734 = vmatpush3.bf16.msk.msra.mxu1 %vm10757_vm6, %v11521_v56  ;;  %9234 = vmatprep.mubr.msk.f32.mxu1 %vm10106_vm0, %v12472_v0 }
 0x329   :  { %9735 = vmatprep.subr.bf16.mxu1 %v12474_v54 }
 0x32f   :  { %9235 = vmatmul.mubr.msk.f32.vlgmr.msra.gmra.mrb[8].mxu1 %vm561_vm3, %v11287_v35  ;;  %v2102_v35 = vrot.slane %v2101_v53, 4 }
 0x330   :  { %9738 = vmatpush3.bf16.msk.msra.mxu1 %vm10757_vm6, %v11554_v49  ;;  %9241 = vmatprep.mubr.msk.f32.mxu1 %vm10106_vm0, %v12472_v0 }
 0x331   :  { %9739 = vmatprep.subr.bf16.mxu1 %v12474_v54  ;;  %v2103_v32 = vadd.f32 %v2102_v35, %v2101_v53 }
 0x333   :  { %v2104_v37 = vrot.slane %v2103_v32, 2 }
 0x335   :  { %v2105_v2 = vadd.f32 %v2104_v37, %v2103_v32 }
 0x337   :  { %9242 = vmatmul.mubr.msk.f32.vlgmr.msra.gmra.mrb[8].mxu1 %vm561_vm3, %v11439_v38  ;;  %v2106_v35 = vrot.slane %v2105_v2, 1 }
 0x338   :  { %9742 = vmatpush3.bf16.msk.msra.mxu1 %vm10757_vm6, %v12505_v60  ;;  %9248 = vmatprep.mubr.msk.f32.mxu1 %vm10106_vm0, %v12472_v0 }
 0x339   :  { %9743 = vmatprep.subr.bf16.mxu1 %v12474_v54 }
 0x33b   :  { %9249 = vmatmul.mubr.msk.f32.vlgmr.msra.gmra.mrb[10].mxu1 %vm561_vm3, %v11753_v47 }
 0x33c   :  { %9746 = vmatpush3.bf16.msk.msra.mxu1 %vm10757_vm6, %v11189_v31  ;;  %9255 = vmatprep.mubr.msk.f32.mxu1 %vm10106_vm0, %v12472_v0 }
 0x33d   :  { %9747 = vmatprep.subr.bf16.mxu1 %v12474_v54 }
 0x33e   :  { %v11951_v5 = vpop.f32.mrb[2].mxu1 }
 0x33f   :  { %v2764_v40 = vsel %vm561_vm3, %v11951_v5, 0.0  ;;  %v2772_v61 = vmul.f32 %v11951_v5, %v11951_v5  ;;  %v9054_v47 = vpop.f32.mrb[3].mxu1 }
 0x340   :  { %v2765_v63 = vrot.slane %v2764_v40, 4 }
 0x341   :  { %v2773_v20 = vsel %vm561_vm3, %v2772_v61, 0.0  ;;  %v2107_v61 = vadd.f32 %v2106_v35, %v2105_v2 }
 0x342   :  { %v2766_v57 = vadd.f32 %v2765_v63, %v2764_v40  ;;  %v2774_v19 = vrot.slane %v2773_v20, 4  ;;  %v2098_v40 = vadd.f32 %v2097_v28, %v2096_v39 }
 0x343   :  { %9256 = vmatmul.mubr.msk.f32.vlgmr.msra.gmra.mrb[10].mxu1 %vm561_vm3, %v11684_v18 }
 0x344   :  { %v2767_v15 = vrot.slane %v2766_v57, 2  ;;  %v2775_v50 = vadd.f32 %v2774_v19, %v2773_v20  ;;  %9750 = vmatpush3.bf16.msk.msra.mxu1 %vm10757_vm6, %v11219_v41  ;;  %9262 = vmatprep.mubr.msk.f32.mxu1 %vm10106_vm0, %v12472_v0 }
 0x345   :  { %9751 = vmatprep.subr.bf16.mxu1 %v12474_v54 }
 0x346   :  { %v2768_v53 = vadd.f32 %v2767_v15, %v2766_v57  ;;  %v2776_v16 = vrot.slane %v2775_v50, 2 }
 0x348   :  { %v2769_v43 = vrot.slane %v2768_v53, 1  ;;  %v2777_v13 = vadd.f32 %v2776_v16, %v2775_v50 }
 0x34a   :  { %v2770_v18 = vadd.f32 %v2769_v43, %v2768_v53  ;;  %v2778_v32 = vrot.slane %v2777_v13, 1 }
 0x34b   :  { %9263 = vmatmul.mubr.msk.f32.vlgmr.msra.gmra.mrb[10].mxu1 %vm561_vm3, %v11765_v26  ;;  %v1008_v26 = vmax.f32 %v11264_v36, 0.0  ;;  %v1015_v36 = vmax.f32 %v11270_v25, 0.0 }
 0x34c   :  { %v11968_v47 = vadd.f32 %v2770_v18, %v2098_v40  ;;  %v2779_v37 = vadd.f32 %v2778_v32, %v2777_v13  ;;  %9754 = vmatpush3.bf16.msk.msra.mxu1 %vm10757_vm6, %v11292_v12  ;;  %9269 = vmatprep.mubr.msk.f32.mxu1 %vm10106_vm0, %v12472_v0 }
 0x34d   :  { %9755 = vmatprep.subr.bf16.mxu1 %v12474_v54  ;;  %v1351_v20 = vmul.f32 %v11349_v30, %v1008_v26 }
 0x34e   :  { %v11976_v63 = vadd.f32 %v2779_v37, %v2107_v61  ;;  %v1017_v61 = vmax.f32 %v11339_v7, 0.0 }
 0x350   :  { %v1360_v26 = vmul.f32 %v11449_v1, %v1017_v61  ;;  %v12531_v1 = vld [vmem:[#allocation3_spill] sm:$0xff] }
 0x353   :  { %9270 = vmatmul.mubr.msk.f32.vlgmr.msra.gmra.mrb[10].mxu1 %vm561_vm3, %v11904_v14  ;;  %v1009_v14 = vmax.f32 %v11267_v6, 0.0  ;;  %v12014_v6 = vmul.f32 %v11393_v55, %v1015_v36 }
 0x354   :  { %9758 = vmatpush3.bf16.msk.msra.mxu1 %vm10757_vm6, %v11408_v8  ;;  %9276 = vmatprep.mubr.msk.f32.mxu1 %vm10106_vm0, %v12472_v0 }
 0x355   :  { %9759 = vmatprep.subr.bf16.mxu1 %v12474_v54  ;;  %v1352_v39 = vmul.f32 %v11290_v34, %v1009_v14  ;;  %v12530_v34 = vld [vmem:[#allocation10_spill] sm:$0xff] }
 0x356   :  { %v1016_v30 = vmax.f32 %v12530_v34, 0.0 }
 0x358   :  { %v12026_v25 = vmul.f32 %v11358_v44, %v1016_v30 }
 0x35b   :  { %9277 = vmatmul.mubr.msk.f32.vlgmr.msra.gmra.mrb[10].mxu1 %vm561_vm3, %v1351_v20 }
 0x35c   :  { %9762 = vmatpush3.bf16.msk.msra.mxu1 %vm10757_vm6, %v11460_v17  ;;  %9283 = vmatprep.mubr.msk.f32.mxu1 %vm10106_vm0, %v12472_v0 }
 0x35d   :  { %9763 = vmatprep.subr.bf16.mxu1 %v12474_v54 }
 0x363   :  { %9284 = vmatmul.mubr.msk.f32.vlgmr.msra.gmra.mrb[10].mxu1 %vm561_vm3, %v1352_v39 }
 0x364   :  { %9766 = vmatpush3.bf16.msk.msra.mxu1 %vm10757_vm6, %v11489_v58  ;;  %9290 = vmatprep.mubr.msk.f32.mxu1 %vm10106_vm0, %v12472_v0 }
 0x365   :  { %9767 = vmatprep.subr.bf16.mxu1 %v12474_v54 }
 0x36b   :  { %9291 = vmatmul.mubr.msk.f32.vlgmr.msra.gmra.mrb[10].mxu1 %vm561_vm3, %v11439_v38 }
 0x36c   :  { %9770 = vmatpush3.bf16.msk.msra.mxu1 %vm10757_vm6, %v11521_v56  ;;  %9297 = vmatprep.mubr.msk.f32.mxu1 %vm10106_vm0, %v12472_v0 }
 0x36d   :  { %9771 = vmatprep.subr.bf16.mxu1 %v12474_v54 }
 0x373   :  { %9298 = vmatmul.mubr.msk.f32.vlgmr.msra.gmra.mrb[10].mxu1 %vm561_vm3, %v12014_v6 }
 0x374   :  { %9774 = vmatpush3.bf16.msk.msra.mxu1 %vm10757_vm6, %v11554_v49  ;;  %9304 = vmatprep.mubr.msk.f32.mxu1 %vm10106_vm0, %v12472_v0 }
 0x375   :  { %9775 = vmatprep.subr.bf16.mxu1 %v12474_v54 }
 0x37b   :  { %9305 = vmatmul.mubr.msk.f32.vlgmr.msra.gmra.mrb[10].mxu1 %vm561_vm3, %v12026_v25 }
 0x37c   :  { %9778 = vmatpush3.bf16.msk.msra.mxu1 %vm10757_vm6, %v12505_v60  ;;  %9311 = vmatprep.mubr.msk.f32.mxu1 %vm10106_vm0, %v12472_v0 }
 0x37d   :  { %9779 = vmatprep.subr.bf16.mxu1 %v12474_v54 }
 0x37f   :  { %9312 = vmatmul.mubr.msk.f32.vlgmr.msra.gmra.mrb[12].mxu1 %vm561_vm3, %v11840_v24 }
 0x380   :  { %9782 = vmatpush3.bf16.msk.msra.mxu1 %vm10757_vm6, %v11189_v31  ;;  %9318 = vmatprep.mubr.msk.f32.mxu1 %vm10106_vm0, %v12472_v0 }
 0x381   :  { %9783 = vmatprep.subr.bf16.mxu1 %v12474_v54 }
 0x382   :  { %v12044_v44 = vpop.f32.mrb[4].mxu1 }
 0x383   :  { %v3436_v55 = vsel %vm561_vm3, %v12044_v44, 0.0  ;;  %v3444_v57 = vmul.f32 %v12044_v44, %v12044_v44  ;;  %v9117_v19 = vpop.f32.mrb[5].mxu1 }
 0x384   :  { %v3437_v2 = vrot.slane %v3436_v55, 4 }
 0x385   :  { %v3445_v24 = vsel %vm561_vm3, %v3444_v57, 0.0 }
 0x386   :  { %v3438_v15 = vadd.f32 %v3437_v2, %v3436_v55  ;;  %v3446_v50 = vrot.slane %v3445_v24, 4 }
 0x387   :  { %9319 = vmatmul.mubr.msk.f32.vlgmr.msra.gmra.mrb[12].mxu1 %vm561_vm3, %v11828_v42 }
 0x388   :  { %v3439_v28 = vrot.slane %v3438_v15, 2  ;;  %v3447_v53 = vadd.f32 %v3446_v50, %v3445_v24  ;;  %9786 = vmatpush3.bf16.msk.msra.mxu1 %vm10757_vm6, %v11219_v41  ;;  %9325 = vmatprep.mubr.msk.f32.mxu1 %vm10106_vm0, %v12472_v0 }
 0x389   :  { %9787 = vmatprep.subr.bf16.mxu1 %v12474_v54 }
 0x38a   :  { %v3440_v16 = vadd.f32 %v3439_v28, %v3438_v15  ;;  %v3448_v35 = vrot.slane %v3447_v53, 2 }
 0x38c   :  { %v3441_v43 = vrot.slane %v3440_v16, 1  ;;  %v3449_v13 = vadd.f32 %v3448_v35, %v3447_v53 }
 0x38e   :  { %v3442_v40 = vadd.f32 %v3441_v43, %v3440_v16  ;;  %v3450_v18 = vrot.slane %v3449_v13, 1 }
 0x38f   :  { %9326 = vmatmul.mubr.msk.f32.vlgmr.msra.gmra.mrb[12].mxu1 %vm561_vm3, %v11366_v33  ;;  %v1018_v33 = vmax.f32 %v11342_v48, 0.0  ;;  %v1024_v48 = vmax.f32 %v11345_v3, 0.0 }
 0x390   :  { %v12062_v42 = vadd.f32 %v3442_v40, %v11968_v47  ;;  %v3451_v32 = vadd.f32 %v3450_v18, %v3449_v13  ;;  %9790 = vmatpush3.bf16.msk.msra.mxu1 %vm10757_vm6, %v11292_v12  ;;  %9332 = vmatprep.mubr.msk.f32.mxu1 %vm10106_vm0, %v12472_v0 }
 0x391   :  { %9791 = vmatprep.subr.bf16.mxu1 %v12474_v54  ;;  %v1361_v7 = vmul.f32 %v11423_v45, %v1018_v33  ;;  %v1367_v45 = vmul.f32 %v11453_v62, %v1024_v48 }
 0x392   :  { %v3452_v37 = vadd.f32 %v3451_v32, %v11976_v63 }
 0x397   :  { %9333 = vmatmul.mubr.msk.f32.vlgmr.msra.gmra.mrb[12].mxu1 %vm561_vm3, %v1360_v26 }
 0x398   :  { %9794 = vmatpush3.bf16.msk.msra.mxu1 %vm10757_vm6, %v11408_v8  ;;  %9339 = vmatprep.mubr.msk.f32.mxu1 %vm10106_vm0, %v12472_v0 }
 0x399   :  { %9795 = vmatprep.subr.bf16.mxu1 %v12474_v54 }
 0x39f   :  { %9340 = vmatmul.mubr.msk.f32.vlgmr.msra.gmra.mrb[12].mxu1 %vm561_vm3, %v1361_v7 }
 0x3a0   :  { %9798 = vmatpush3.bf16.msk.msra.mxu1 %vm10757_vm6, %v11460_v17  ;;  %9346 = vmatprep.mubr.msk.f32.mxu1 %vm10106_vm0, %v12472_v0 }
 0x3a1   :  { %9799 = vmatprep.subr.bf16.mxu1 %v12474_v54 }
 0x3a7   :  { %9347 = vmatmul.mubr.msk.f32.vlgmr.msra.gmra.mrb[12].mxu1 %vm561_vm3, %v11472_v21  ;;  %v1025_v21 = vmax.f32 %v12531_v1, 0.0 }
 0x3a8   :  { %9802 = vmatpush3.bf16.msk.msra.mxu1 %vm10757_vm6, %v11489_v58  ;;  %9353 = vmatprep.mubr.msk.f32.mxu1 %vm10106_vm0, %v12472_v0 }
 0x3a9   :  { %9803 = vmatprep.subr.bf16.mxu1 %v12474_v54  ;;  %v1368_v47 = vmul.f32 %v11513_v59, %v1025_v21 }
 0x3af   :  { %9354 = vmatmul.mubr.msk.f32.vlgmr.msra.gmra.mrb[12].mxu1 %vm561_vm3, %v1367_v45 }
 0x3b0   :  { %9806 = vmatpush3.bf16.msk.msra.mxu1 %vm10757_vm6, %v11521_v56  ;;  %9360 = vmatprep.mubr.msk.f32.mxu1 %vm10106_vm0, %v12472_v0 }
 0x3b1   :  { %9807 = vmatprep.subr.bf16.mxu1 %v12474_v54 }
 0x3b7   :  { %9361 = vmatmul.mubr.msk.f32.vlgmr.msra.gmra.mrb[12].mxu1 %vm561_vm3, %v1368_v47 }
 0x3b8   :  { %9810 = vmatpush3.bf16.msk.msra.mxu1 %vm10757_vm6, %v11554_v49  ;;  %9367 = vmatprep.mubr.msk.f32.mxu1 %vm10106_vm0, %v12472_v0 }
 0x3b9   :  { %9847 = vmatprep.subr.bf16.mxu1 %v12474_v54 }
 0x3bf   :  { %9368 = vmatmul.mubr.msk.f32.vlgmr.msra.gmra.mrb[12].mxu1 %vm561_vm3, %v11568_v10 }
 0x3c0   :  { %9850 = vmatpush3.bf16.msk.msra.mxu1 %vm10757_vm6, %v12505_v60  ;;  %9437 = vmatprep.mubr.msk.f32.mxu1 %vm10106_vm0, %v12472_v0 }
 0x3c1   :  { %9851 = vmatprep.subr.bf16.mxu1 %v12474_v54 }
 0x3c3   :  { %9438 = vmatmul.mubr.msk.f32.vlgmr.msra.gmra.mrb[14].mxu1 %vm561_vm3, %v12014_v6 }
 0x3c4   :  { %9854 = vmatpush3.bf16.msk.msra.mxu1 %vm10757_vm6, %v11189_v31  ;;  %9444 = vmatprep.mubr.msk.f32.mxu1 %vm10106_vm0, %v12472_v0 }
 0x3c5   :  { %9855 = vmatprep.subr.bf16.mxu1 %v12474_v54 }
 0x3c6   :  { %v12131_v3 = vpop.f32.mrb[6].mxu1 }
 0x3c7   :  { %v4108_v62 = vsel %vm561_vm3, %v12131_v3, 0.0  ;;  %v4116_v59 = vmul.f32 %v12131_v3, %v12131_v3  ;;  %v9180_v10 = vpop.f32.mrb[7].mxu1 }
 0x3c8   :  { %v4109_v60 = vrot.slane %v4108_v62, 4 }
 0x3c9   :  { %v4117_v63 = vsel %vm561_vm3, %v4116_v59, 0.0 }
 0x3ca   :  { %v4110_v20 = vadd.f32 %v4109_v60, %v4108_v62  ;;  %v4118_v14 = vrot.slane %v4117_v63, 4 }
 0x3cb   :  { %9445 = vmatmul.mubr.msk.f32.vlgmr.msra.gmra.mrb[14].mxu1 %vm561_vm3, %v11439_v38 }
 0x3cc   :  { %v4111_v31 = vrot.slane %v4110_v20, 2  ;;  %v4119_v39 = vadd.f32 %v4118_v14, %v4117_v63  ;;  %9858 = vmatpush3.bf16.msk.msra.mxu1 %vm10757_vm6, %v11219_v41  ;;  %9451 = vmatprep.mubr.msk.f32.mxu1 %vm10106_vm0, %v12472_v0 }
 0x3cd   :  { %9859 = vmatprep.subr.bf16.mxu1 %v12474_v54 }
 0x3ce   :  { %v4112_v36 = vadd.f32 %v4111_v31, %v4110_v20  ;;  %v4120_v6 = vrot.slane %v4119_v39, 2 }
 0x3d0   :  { %v4113_v34 = vrot.slane %v4112_v36, 1  ;;  %v4121_v30 = vadd.f32 %v4120_v6, %v4119_v39 }
 0x3d2   :  { %v4114_v55 = vadd.f32 %v4113_v34, %v4112_v36  ;;  %v4122_v57 = vrot.slane %v4121_v30, 1  ;;  %v8481_v34 = vld [vmem:[%s12373_s6 + $0x10] sm:$0xff] }
 0x3d3   :  { %9452 = vmatmul.mubr.msk.f32.vlgmr.msra.gmra.mrb[14].mxu1 %vm561_vm3, %v12026_v25  ;;  %v1022_v25 = vmax.f32 %v11411_v11, 0.0  ;;  %v1029_v11 = vmax.f32 %v11426_v29, 0.0 }
 0x3d4   :  { %v4115_v38 = vadd.f32 %v4114_v55, %v12062_v42  ;;  %v4123_v19 = vadd.f32 %v4122_v57, %v4121_v30  ;;  %9862 = vmatpush3.bf16.msk.msra.mxu1 %vm10757_vm6, %v11292_v12  ;;  %9458 = vmatprep.mubr.msk.f32.mxu1 %vm10106_vm0, %v12472_v0  ;;  %v8482_v30 = vld [vmem:[%s12373_s6 + $0x18] sm:$0x3]  ;;  %v6786_v57 = vmul.f32 %v11876_v52, %v11876_v52 }
 0x3d5   :  { %9863 = vmatprep.subr.bf16.mxu1 %v12474_v54  ;;  %v1365_v12 = vmul.f32 %v11595_v46, %v1022_v25  ;;  %v9884_v55 = vpack.c.bf16 %v8482_v30, %v8481_v34 }
 0x3d6   :  { %v4124_v41 = vadd.f32 %v4123_v19, %v3452_v37  ;;  %v6787_v19 = vsel %vm561_vm3, %v6786_v57, 0.0 }
 0x3d7   :  { %9886 = vmatpush3.bf16.msk.msra.mxu0 %vm10757_vm6, %v9884_v55  ;;  %v6788_v25 = vrot.slane %v6787_v19, 4 }
 0x3d8   :  { %9887 = vmatprep.subr.bf16.mxu0 %v12474_v54 }
 0x3db   :  { %9459 = vmatmul.mubr.msk.f32.vlgmr.msra.gmra.mrb[14].mxu1 %vm561_vm3, %v11538_v23 }
 0x3dc   :  { %9866 = vmatpush3.bf16.msk.msra.mxu1 %vm10757_vm6, %v11408_v8  ;;  %9465 = vmatprep.mubr.msk.f32.mxu1 %vm10106_vm0, %v12472_v0  ;;  %v1023_v8 = vmax.f32 %v11414_v9, 0.0  ;;  %v1318_v9 = vpop.permute.xlu1 %1317 }
 0x3dd   :  { %9867 = vmatprep.subr.bf16.mxu1 %v12474_v54 }
 0x3de   :  { %v1366_v23 = vmul.f32 %v11571_v22, %v1023_v8  ;;  %v1323_v22 = vpop.permute.xlu0 %1322  ;;  %v6789_v8 = vadd.f32 %v6788_v25, %v6787_v19 }
 0x3e3   :  { %9466 = vmatmul.mubr.msk.f32.vlgmr.msra.gmra.mrb[14].mxu1 %vm561_vm3, %v1365_v12 }
 0x3e4   :  { %9870 = vmatpush3.bf16.msk.msra.mxu1 %vm10757_vm6, %v11460_v17  ;;  %9472 = vmatprep.mubr.msk.f32.mxu1 %vm10106_vm0, %v12472_v0  ;;  %v1372_v17 = vmul.f32 %v1318_v9, %v1029_v11 }
 0x3e5   :  { %9871 = vmatprep.subr.bf16.mxu1 %v12474_v54 }
 0x3eb   :  { %9473 = vmatmul.mubr.msk.f32.vlgmr.msra.gmra.mrb[14].mxu1 %vm561_vm3, %v1366_v23 }
 0x3ec   :  { %9874 = vmatpush3.bf16.msk.msra.mxu1 %vm10757_vm6, %v11489_v58  ;;  %9479 = vmatprep.mubr.msk.f32.mxu1 %vm10106_vm0, %v12472_v0  ;;  %v12532_v58 = vld [vmem:[#allocation7_spill] sm:$0xff] }
 0x3ed   :  { %9875 = vmatprep.subr.bf16.mxu1 %v12474_v54 }
 0x3f3   :  { %9480 = vmatmul.mubr.msk.f32.vlgmr.msra.gmra.mrb[14].mxu1 %vm561_vm3, %v11612_v51 }
 0x3f4   :  { %9878 = vmatpush3.bf16.msk.msra.mxu1 %vm10757_vm6, %v11521_v56  ;;  %9486 = vmatprep.mubr.msk.f32.mxu1 %vm10106_vm0, %v12472_v0  ;;  %v1030_v56 = vmax.f32 %v12532_v58, 0.0 }
 0x3f5   :  { %9879 = vmatprep.subr.bf16.mxu1 %v12474_v54 }
 0x3f6   :  { %v1373_v46 = vmul.f32 %v1323_v22, %v1030_v56 }
 0x3fb   :  { %9487 = vmatmul.mubr.msk.f32.vlgmr.msra.gmra.mrb[14].mxu1 %vm561_vm3, %v1372_v17 }
 0x3fc   :  { %9882 = vmatpush3.bf16.msk.msra.mxu1 %vm10757_vm6, %v11554_v49  ;;  %9493 = vmatprep.mubr.msk.f32.mxu1 %vm10106_vm0, %v12472_v0 }
 0x403   :  { %9494 = vmatmul.mubr.msk.f32.vlgmr.msra.gmra.mrb[14].mxu1 %vm561_vm3, %v1373_v46  ;;  %v6790_v46 = vrot.slane %v6789_v8, 2 }
 0x40a   :  { %v12198_v29 = vpop.f32.mrb[8].mxu1 }
 0x40b   :  { %v4774_v51 = vsel %vm561_vm3, %v12198_v29, 0.0  ;;  %v4782_v2 = vmul.f32 %v12198_v29, %v12198_v29  ;;  %v9243_v24 = vpop.f32.mrb[9].mxu1 }
 0x40c   :  { %v4775_v15 = vrot.slane %v4774_v51, 4 }
 0x40d   :  { %v4783_v49 = vsel %vm561_vm3, %v4782_v2, 0.0 }
 0x40e   :  { %v4776_v50 = vadd.f32 %v4775_v15, %v4774_v51  ;;  %v4784_v28 = vrot.slane %v4783_v49, 4 }
 0x410   :  { %v4777_v53 = vrot.slane %v4776_v50, 2  ;;  %v4785_v16 = vadd.f32 %v4784_v28, %v4783_v49 }
 0x412   :  { %v4778_v35 = vadd.f32 %v4777_v53, %v4776_v50  ;;  %v4786_v43 = vrot.slane %v4785_v16, 2  ;;  %v6791_v50 = vadd.f32 %v6790_v46, %v6789_v8 }
 0x414   :  { %v4779_v13 = vrot.slane %v4778_v35, 1  ;;  %v4787_v40 = vadd.f32 %v4786_v43, %v4785_v16 }
 0x416   :  { %v4780_v18 = vadd.f32 %v4779_v13, %v4778_v35  ;;  %v4788_v42 = vrot.slane %v4787_v40, 1  ;;  %v6792_v13 = vrot.slane %v6791_v50, 1 }
 0x418   :  { %v4781_v32 = vadd.f32 %v4780_v18, %v4115_v38  ;;  %v4789_v61 = vadd.f32 %v4788_v42, %v4787_v40  ;;  %v6778_v38 = vsel %vm561_vm3, %v11876_v52, 0.0 }
 0x41a   :  { %v4790_v37 = vadd.f32 %v4789_v61, %v4124_v41  ;;  %v6779_v41 = vrot.slane %v6778_v38, 4 }
 0x41c   :  { %v6780_v12 = vadd.f32 %v6779_v41, %v6778_v38 }
 0x41e   :  { %v6781_v58 = vrot.slane %v6780_v12, 2 }
 0x420   :  { %v6782_v24 = vadd.f32 %v6781_v58, %v6780_v12 }
 0x422   :  { %v6783_v16 = vrot.slane %v6782_v24, 1 }
 0x424   :  { %v6784_v42 = vadd.f32 %v6783_v16, %v6782_v24  ;;  %v12533_v24 = vld [vmem:[#allocation6_spill] sm:$0xff] }
 0x44e   :  { %v12205_v26 = vpop.f32.mrb[10].mxu1 }
 0x44f   :  { %v5440_v33 = vsel %vm561_vm3, %v12205_v26, 0.0  ;;  %v5448_v7 = vmul.f32 %v12205_v26, %v12205_v26  ;;  %v9306_v48 = vpop.f32.mrb[11].mxu1 }
 0x450   :  { %v5441_v45 = vrot.slane %v5440_v33, 4 }
 0x451   :  { %v5449_v1 = vsel %vm561_vm3, %v5448_v7, 0.0 }
 0x452   :  { %v5442_v21 = vadd.f32 %v5441_v45, %v5440_v33  ;;  %v5450_v47 = vrot.slane %v5449_v1, 4 }
 0x454   :  { %v5443_v62 = vrot.slane %v5442_v21, 2  ;;  %v5451_v59 = vadd.f32 %v5450_v47, %v5449_v1 }
 0x456   :  { %v5444_v10 = vadd.f32 %v5443_v62, %v5442_v21  ;;  %v5452_v60 = vrot.slane %v5451_v59, 2 }
 0x458   :  { %v5445_v63 = vrot.slane %v5444_v10, 1  ;;  %v5453_v20 = vadd.f32 %v5452_v60, %v5451_v59 }
 0x45a   :  { %v5446_v14 = vadd.f32 %v5445_v63, %v5444_v10  ;;  %v5454_v31 = vrot.slane %v5453_v20, 1 }
 0x45c   :  { %v5447_v39 = vadd.f32 %v5446_v14, %v4781_v32  ;;  %v5455_v36 = vadd.f32 %v5454_v31, %v5453_v20 }
 0x45e   :  { %v5456_v6 = vadd.f32 %v5455_v36, %v4790_v37  ;;  %v6793_v37 = vadd.f32 %v6792_v13, %v6791_v50 }
 0x492   :  { %v12226_v23 = vpop.f32.mrb[12].mxu1 }
 0x493   :  { %v6112_v11 = vsel %vm561_vm3, %v12226_v23, 0.0  ;;  %v6120_v9 = vmul.f32 %v12226_v23, %v12226_v23  ;;  %v9369_v17 = vpop.f32.mrb[13].mxu1 }
 0x494   :  { %v6113_v56 = vrot.slane %v6112_v11, 4 }
 0x495   :  { %v6121_v22 = vsel %vm561_vm3, %v6120_v9, 0.0 }
 0x496   :  { %v6114_v51 = vadd.f32 %v6113_v56, %v6112_v11  ;;  %v6122_v2 = vrot.slane %v6121_v22, 4 }
 0x498   :  { %v6115_v15 = vrot.slane %v6114_v51, 2  ;;  %v6123_v49 = vadd.f32 %v6122_v2, %v6121_v22 }
 0x49a   :  { %v6116_v28 = vadd.f32 %v6115_v15, %v6114_v51  ;;  %v6124_v53 = vrot.slane %v6123_v49, 2 }
 0x49c   :  { %v6117_v35 = vrot.slane %v6116_v28, 1  ;;  %v6125_v43 = vadd.f32 %v6124_v53, %v6123_v49  ;;  %v7484_v49 = vld [vmem:[%s12373_s6 + $0x8] sm:$0x3] }
 0x49e   :  { %v6118_v40 = vadd.f32 %v6117_v35, %v6116_v28  ;;  %v6126_v18 = vrot.slane %v6125_v43, 1 }
 0x4a0   :  { %v6119_v32 = vadd.f32 %v6118_v40, %v5447_v39  ;;  %v6127_v61 = vadd.f32 %v6126_v18, %v6125_v43 }
 0x4a2   :  { %v6128_v33 = vadd.f32 %v6127_v61, %v5456_v6  ;;  %v6785_v7 = vadd.f32 %v6784_v42, %v6119_v32  ;;  %v8487_v32 = vld [vmem:[%s12373_s6 + $0x20] sm:$0xff]  ;;  %v8488_v61 = vld [vmem:[%s12373_s6 + $0x28] sm:$0x3] }
 0x4a4   :  { %v6794_v48 = vadd.f32 %v6793_v37, %v6128_v33  ;;  %v9892_v33 = vpack.c.bf16 %v8488_v61, %v8487_v32 }
 0x4d6   :  { %v7439_v45 = vpop.f32.mrb[14].mxu1 }
 0x4d7   :  { %v7444_v1 = vsel %vm561_vm3, %v7439_v45, 0.0  ;;  %v7452_v21 = vmul.f32 %v7439_v45, %v7439_v45  ;;  %v9495_v47 = vpop.f32.mrb[15].mxu1 }
 0x4d8   :  { %v7445_v62 = vrot.slane %v7444_v1, 4 }
 0x4d9   :  { %v7453_v59 = vsel %vm561_vm3, %v7452_v21, 0.0 }
 0x4da   :  { %v7446_v10 = vadd.f32 %v7445_v62, %v7444_v1  ;;  %v7454_v60 = vrot.slane %v7453_v59, 4  ;;  %v8492_v1 = vld [vmem:[%s12373_s6 + $0x38] sm:$0x3] }
 0x4dc   :  { %v7447_v63 = vrot.slane %v7446_v10, 2  ;;  %v7455_v20 = vadd.f32 %v7454_v60, %v7453_v59  ;;  %v8495_v59 = vld [vmem:[%s12373_s6 + $0x40] sm:$0xff] }
 0x4de   :  { %v7448_v14 = vadd.f32 %v7447_v63, %v7446_v10  ;;  %v7456_v31 = vrot.slane %v7455_v20, 2  ;;  %v8496_v10 = vld [vmem:[%s12373_s6 + $0x48] sm:$0x3] }
 0x4df   :  { %v9900_v60 = vpack.c.bf16 %v8496_v10, %v8495_v59 }
 0x4e0   :  { %v7449_v39 = vrot.slane %v7448_v14, 1  ;;  %v7457_v36 = vadd.f32 %v7456_v31, %v7455_v20  ;;  %v8500_v31 = vld [vmem:[%s12373_s6 + $0x58] sm:$0x3] }
 0x4e2   :  { %v7450_v34 = vadd.f32 %v7449_v39, %v7448_v14  ;;  %v7458_v6 = vrot.slane %v7457_v36, 1  ;;  %v8499_v14 = vld [vmem:[%s12373_s6 + $0x50] sm:$0xff] }
 0x4e3   :  { %v9904_v39 = vpack.c.bf16 %v8500_v31, %v8499_v14 }
 0x4e4   :  { %v7451_v30 = vadd.f32 %v7450_v34, %v6785_v7  ;;  %v7459_v55 = vadd.f32 %v7458_v6, %v7457_v36  ;;  %v8503_v6 = vld [vmem:[%s12373_s6 + $0x60] sm:$0xff] }
 0x4e6   :  { %v7460_v57 = vadd.f32 %v7459_v55, %v6794_v48  ;;  %v7461_v38 = vmul.f32 0.055555556, %v7451_v30  ;;  %v8504_v30 = vld [vmem:[%s12373_s6 + $0x68] sm:$0x3] }
 0x4e7   :  { %v9908_v55 = vpack.c.bf16 %v8504_v30, %v8503_v6 }
 0x4e8   :  { %v7462_v19 = vmul.f32 0.055555556, %v7460_v57  ;;  %v7463_v41 = vmul.f32 %v7461_v38, %v7461_v38  ;;  %v8148_v25 = vsub.f32 %v7439_v45, %v7461_v38  ;;  %v7485_v12 = vsub.f32 %v11951_v5, %v7461_v38  ;;  %v8491_v45 = vld [vmem:[%s12373_s6 + $0x30] sm:$0xff] }
 0x4e9   :  { %v7471_v8 = vsub.f32 %v11866_v4, %v7461_v38  ;;  %v7644_v11 = vsub.f32 %v12044_v44, %v7461_v38  ;;  %v7728_v9 = vsub.f32 %v12131_v3, %v7461_v38  ;;  %v7812_v17 = vsub.f32 %v12198_v29, %v7461_v38  ;;  %v7468_v4 = vld [vmem:[%s12374_s5] sm:$0x1]  ;;  %v12251_v29 = vld [vmem:[%s12374_s5 + $0x1] ss:$0 sm:$0xff] }
 0x4ea   :  { %v7464_v58 = vsub.f32 %v7462_v19, %v7463_v41  ;;  %v7896_v56 = vsub.f32 %v12205_v26, %v7461_v38  ;;  %v7980_v22 = vsub.f32 %v12226_v23, %v7461_v38  ;;  %v8064_v46 = vsub.f32 %v11876_v52, %v7461_v38  ;;  %v7483_v23 = vld [vmem:[%s12373_s6] sm:$0xff]  ;;  %v8507_v19 = vld [vmem:[%s12373_s6 + $0x70] sm:$0xff]  ;;  %v8508_v41 = vld [vmem:[%s12373_s6 + $0x78] sm:$0x3] }
 0x4eb   :  { %v12534_v3 = vsub.s32 0, %v12533_v24  ;;  %v9888_v40 = vpack.c.bf16 %v7484_v49, %v7483_v23  ;;  %v9896_v21 = vpack.c.bf16 %v8492_v1, %v8491_v45 }
 0x4ec   :  { %v7465_v51 = vmax.f32 %v7464_v58, 0.0 }
 0x4ee   :  { %v7466_v2 = vadd.f32 1e-05, %v7465_v51 }
 0x4f0   :  { %10103 = vrsqrt.f32 %v7466_v2 }
 0x4fa   :  { %v10104_v5 = vpop.eup %10103 }
 0x4fb   :  { %v7469_v44 = vmul.f32 %v10104_v5, %v7468_v4 }
 0x4fd   :  { %v7475_v15 = vrot.slane %v7469_v44, %v12534_v3 }
 0x4ff   :  { %v12253_v26 = vmul.f32 %v8148_v25, %v7475_v15  ;;  %v7486_v52 = vmul.f32 %v7485_v12, %v7475_v15  ;;  %v7476_v50 = vmul.f32 %v7475_v15, %v7471_v8  ;;  %v7645_v28 = vmul.f32 %v7644_v11, %v7475_v15  ;;  %v8511_v11 = vld [vmem:[%s12373_s6 + $0x80] sm:$0xff] }
 0x500   :  { %v7729_v53 = vmul.f32 %v7728_v9, %v7475_v15  ;;  %v7813_v16 = vmul.f32 %v7812_v17, %v7475_v15  ;;  %v7897_v35 = vmul.f32 %v7896_v56, %v7475_v15  ;;  %v7981_v43 = vmul.f32 %v7980_v22, %v7475_v15  ;;  %v8512_v9 = vld [vmem:[%s12373_s6 + $0x88] sm:$0x3] }
 0x501   :  { %v7487_v13 = vadd.f32 %v12251_v29, %v7486_v52  ;;  %v7481_v42 = vadd.f32 %v12251_v29, %v7476_v50  ;;  %v8065_v37 = vmul.f32 %v8064_v46, %v7475_v15  ;;  %v7646_v48 = vadd.f32 %v12251_v29, %v7645_v28 }
 0x502   :  { %v7730_v62 = vadd.f32 %v12251_v29, %v7729_v53  ;;  %v7814_v20 = vadd.f32 %v12251_v29, %v7813_v16  ;;  %v7898_v34 = vadd.f32 %v12251_v29, %v7897_v35  ;;  %v7982_v38 = vadd.f32 %v12251_v29, %v7981_v43 }
 0x503   :  { %v7488_v18 = vmax.f32 %v7487_v13, 0.0  ;;  %v7482_v7 = vmax.f32 %v7481_v42, 0.0  ;;  %v7647_v47 = vmax.f32 %v7646_v48, 0.0  ;;  %v9912_v25 = vpack.c.bf16 %v8508_v41, %v8507_v19 }
 0x504   :  { %v7731_v63 = vmax.f32 %v7730_v62, 0.0  ;;  %v7815_v36 = vmax.f32 %v7814_v20, 0.0  ;;  %v7899_v57 = vmax.f32 %v7898_v34, 0.0  ;;  %v7983_v12 = vmax.f32 %v7982_v38, 0.0 }
 0x505   :  { %9501 = vmatmul.mubr.msk.f32.vlgmr.msra.gmra.mrb[102].mxu0 %vm561_vm3, %v7488_v18  ;;  %v8066_v8 = vadd.f32 %v12251_v29, %v8065_v37  ;;  %v9916_v17 = vpack.c.bf16 %v8512_v9, %v8511_v11  ;;  %v8150_v58 = vadd.f32 %v12251_v29, %v12253_v26 }
 0x506   :  { %9890 = vmatpush3.bf16.msk.msra.mxu0 %vm10757_vm6, %v9888_v40  ;;  %9507 = vmatprep.mubr.msk.f32.mxu0 %vm10106_vm0, %v12472_v0  ;;  %v8515_v40 = vld [vmem:[%s12375_s7] ss:$0 sm:$0xff] }
 0x507   :  { %9891 = vmatprep.subr.bf16.mxu0 %v12474_v54  ;;  %v8067_v56 = vmax.f32 %v8066_v8, 0.0  ;;  %v8151_v22 = vmax.f32 %v8150_v58, 0.0 }
 0x509   :  { %9508 = vmatmul.mubr.msk.f32.vlgmr.msra.gmra.mrb[104].mxu0 %vm561_vm3, %v7482_v7 }
 0x50a   :  { %9894 = vmatpush3.bf16.msk.msra.mxu0 %vm10757_vm6, %v9892_v33  ;;  %9514 = vmatprep.mubr.msk.f32.mxu0 %vm10106_vm0, %v12472_v0 }
 0x50b   :  { %9895 = vmatprep.subr.bf16.mxu0 %v12474_v54 }
 0x50d   :  { %9515 = vmatmul.mubr.msk.f32.vlgmr.msra.gmra.mrb[106].mxu0 %vm561_vm3, %v7647_v47 }
 0x50e   :  { %9898 = vmatpush3.bf16.msk.msra.mxu0 %vm10757_vm6, %v9896_v21  ;;  %9521 = vmatprep.mubr.msk.f32.mxu0 %vm10106_vm0, %v12472_v0 }
 0x50f   :  { %9899 = vmatprep.subr.bf16.mxu0 %v12474_v54 }
 0x511   :  { %9522 = vmatmul.mubr.msk.f32.vlgmr.msra.gmra.mrb[108].mxu0 %vm561_vm3, %v7731_v63 }
 0x512   :  { %9902 = vmatpush3.bf16.msk.msra.mxu0 %vm10757_vm6, %v9900_v60  ;;  %9528 = vmatprep.mubr.msk.f32.mxu0 %vm10106_vm0, %v12472_v0 }
 0x513   :  { %9903 = vmatprep.subr.bf16.mxu0 %v12474_v54 }
 0x515   :  { %9529 = vmatmul.mubr.msk.f32.vlgmr.msra.gmra.mrb[110].mxu0 %vm561_vm3, %v7815_v36 }
 0x516   :  { %9906 = vmatpush3.bf16.msk.msra.mxu0 %vm10757_vm6, %v9904_v39  ;;  %9535 = vmatprep.mubr.msk.f32.mxu0 %vm10106_vm0, %v12472_v0 }
 0x517   :  { %9907 = vmatprep.subr.bf16.mxu0 %v12474_v54 }
 0x519   :  { %9536 = vmatmul.mubr.msk.f32.vlgmr.msra.gmra.mrb[112].mxu0 %vm561_vm3, %v7899_v57 }
 0x51a   :  { %9910 = vmatpush3.bf16.msk.msra.mxu0 %vm10757_vm6, %v9908_v55  ;;  %9542 = vmatprep.mubr.msk.f32.mxu0 %vm10106_vm0, %v12472_v0 }
 0x51b   :  { %9911 = vmatprep.subr.bf16.mxu0 %v12474_v54 }
 0x51d   :  { %9543 = vmatmul.mubr.msk.f32.vlgmr.msra.gmra.mrb[114].mxu0 %vm561_vm3, %v7983_v12 }
 0x51e   :  { %9914 = vmatpush3.bf16.msk.msra.mxu0 %vm10757_vm6, %v9912_v25  ;;  %9549 = vmatprep.mubr.msk.f32.mxu0 %vm10106_vm0, %v12472_v0 }
 0x51f   :  { %9915 = vmatprep.subr.bf16.mxu0 %v12474_v54 }
 0x521   :  { %9550 = vmatmul.mubr.msk.f32.vlgmr.msra.gmra.mrb[116].mxu0 %vm561_vm3, %v8067_v56 }
 0x522   :  { %9918 = vmatpush3.bf16.msk.msra.mxu0 %vm10757_vm6, %v9916_v17  ;;  %9556 = vmatprep.mubr.msk.f32.mxu0 %vm10106_vm0, %v12472_v0 }
 0x525   :  { %9557 = vmatmul.mubr.msk.f32.vlgmr.msra.gmra.mrb[118].mxu0 %vm561_vm3, %v8151_v22 }
 0x5d8   :  { %v7564_v46 = vpop.f32.mrb[102].mxu0 }
 0x5d9   :  { %v9502_v51 = vpop.f32.mrb[103].mxu0 }
 0x5dc   :  { %v7640_v2 = vpop.f32.mrb[104].mxu0 }
 0x5dd   :  { %v7641_v4 = vadd.f32 %v7640_v2, %v7564_v46  ;;  %v9509_v5 = vpop.f32.mrb[105].mxu0 }
 0x5e0   :  { %v7723_v44 = vpop.f32.mrb[106].mxu0 }
 0x5e1   :  { %v7727_v24 = vadd.f32 %v7723_v44, %v7641_v4  ;;  %v9516_v54 = vpop.f32.mrb[107].mxu0 }
 0x5e4   :  { %v7807_v3 = vpop.f32.mrb[108].mxu0 }
 0x5e5   :  { %v7811_v15 = vadd.f32 %v7807_v3, %v7727_v24  ;;  %v9523_v29 = vpop.f32.mrb[109].mxu0 }
 0x5e8   :  { %v7891_v26 = vpop.f32.mrb[110].mxu0 }
 0x5e9   :  { %v7895_v27 = vadd.f32 %v7891_v26, %v7811_v15  ;;  %v9530_v52 = vpop.f32.mrb[111].mxu0 }
 0x5ec   :  { %v7975_v23 = vpop.f32.mrb[112].mxu0 }
 0x5ed   :  { %v7979_v49 = vadd.f32 %v7975_v23, %v7895_v27  ;;  %v9537_v0 = vpop.f32.mrb[113].mxu0 }
 0x5f0   :  { %v8059_v50 = vpop.f32.mrb[114].mxu0 }
 0x5f1   :  { %v8063_v28 = vadd.f32 %v8059_v50, %v7979_v49  ;;  %v9544_v53 = vpop.f32.mrb[115].mxu0 }
 0x5f4   :  { %v8143_v16 = vpop.f32.mrb[116].mxu0 }
 0x5f5   :  { %v8147_v35 = vadd.f32 %v8143_v16, %v8063_v28  ;;  %v9551_v43 = vpop.f32.mrb[117].mxu0 }
 0x5f8   :  { %v8227_v13 = vpop.f32.mrb[118].mxu0 }
 0x5f9   :  { %v8231_v18 = vadd.f32 %v8227_v13, %v8147_v35  ;;  %v9558_v42 = vpop.f32.mrb[119].mxu0 }
 0x5fb   :  { %v8239_v32 = vadd.f32 %v8515_v40, %v8231_v18 }
 0x5fd   :  { %8240 = vst.msk [vmem:[%s12376_s8] sm:$0xff] %vm561_vm3, %v8239_v32 }

</bundles_post_ra>
